<compile_context>
chip_gen: v7x
topology: tpu7x:2x2x1
jax: 0.10.0
libtpu: 0.0.40
codegen_flags: <defaults>
</compile_context>

<pallas_src>
import numpy as np
import jax
import jax.numpy as jnp
from jax.experimental import pallas as pl
from jax.experimental.pallas import tpu as pltpu

EMBED_DIM = 128                 # d_model (module default)
NHEAD = 4
HEAD_DIM = EMBED_DIM // NHEAD
FFN_DIM = 2048                  # PyTorch TransformerEncoderLayer default dim_feedforward
NUM_LAYERS = 2
LN_EPS = 1e-5


def _layer_norm(x, gamma, beta):
    mean = jnp.mean(x, axis=-1, keepdims=True)
    var = jnp.mean(jnp.square(x - mean), axis=-1, keepdims=True)
    return (x - mean) * jax.lax.rsqrt(var + LN_EPS) * gamma + beta


# ----------------------------------------------------------------------------
# Fused Pallas kernel (one grid step == one batch sample):
# embedding output -> 2 encoder layers -> fc (padded vocab)
# ----------------------------------------------------------------------------
def fused_forward_kernel(
        x_ref,
        wqkv_ref, bqkv_ref, wo_ref, bo_ref,
        g1_ref, be1_ref, w1_ref, b1_ref, w2_ref, b2_ref, g2_ref, be2_ref,
        wfc_ref, bfc_ref,
        out_ref):
    f32 = jnp.float32
    bf16 = jnp.bfloat16

    x = x_ref[0]                               # (S, E) f32, one sample's tokens

    for l in range(NUM_LAYERS):                # static unroll (NUM_LAYERS = 2)
        # ---- multi-head self-attention (full attention within the sample) ----
        xb = x.astype(bf16)
        # fused QKV: one lane-dense (S,E) @ (E,3E) matmul, single bias add.
        # 1/sqrt(HEAD_DIM) already folded into the Q columns / bias at prep time.
        qkv = jnp.dot(xb, wqkv_ref[l], preferred_element_type=f32) + bqkv_ref[l]

        ctx_heads = []
        for h in range(NHEAD):                 # static unroll
            q0 = h * HEAD_DIM
            k0 = EMBED_DIM + h * HEAD_DIM
            v0 = 2 * EMBED_DIM + h * HEAD_DIM
            qh = qkv[:, q0:q0 + HEAD_DIM].astype(bf16)
            kh = qkv[:, k0:k0 + HEAD_DIM].astype(bf16)
            vh = qkv[:, v0:v0 + HEAD_DIM].astype(bf16)
            # bf16 MXU operands, f32 accumulate; softmax math stays f32.
            s = jnp.einsum('qd,kd->qk', qh, kh, preferred_element_type=f32)
            s = s - jnp.max(s, axis=-1, keepdims=True)
            p = jnp.exp(s)
            p = p * pl.reciprocal(jnp.sum(p, axis=-1, keepdims=True), approx=True)
            ctx_heads.append(jnp.dot(p.astype(bf16), vh,
                                     preferred_element_type=f32))     # (S, HD)

        # lane-concat of head contexts -> one full-depth (S,E)@(E,E) out-proj.
        ctx = jnp.concatenate(ctx_heads, axis=-1)                     # (S, E) f32
        attn = jnp.dot(ctx.astype(bf16), wo_ref[l],
                       preferred_element_type=f32) + bo_ref[l]

        # residual + LayerNorm1 (post-norm, PyTorch norm_first=False)
        x1 = _layer_norm(x + attn, g1_ref[l], be1_ref[l])

        # ---- feed-forward (bf16 MXU inputs, f32 accumulate / elementwise) ----
        h1 = jnp.dot(x1.astype(bf16), w1_ref[l],
                     preferred_element_type=f32) + b1_ref[l]
        h1 = jnp.maximum(h1, 0.0)
        ffn = jnp.dot(h1.astype(bf16), w2_ref[l],
                      preferred_element_type=f32) + b2_ref[l]
        x = _layer_norm(x1 + ffn, g2_ref[l], be2_ref[l])

    # final fc; vocab dim padded to a multiple of 128 for lane-dense stores
    out_ref[0] = jnp.dot(x.astype(bf16), wfc_ref[...],
                         preferred_element_type=f32) + bfc_ref[...]


# ----------------------------------------------------------------------------
# Wrapper: embedding gather in JAX, single pallas_call gridded over batch.
# TODO(synk): the embedding gather (data-dependent indexing) stays in plain
# JAX; it could be moved in-kernel with scalar prefetch + pl.Element rows.
# ----------------------------------------------------------------------------
@jax.jit
def _forward_padded(token_ids, kp):
    (embed, wqkv, bqkv, wo, bo,
     g1, be1, w1, b1, w2, b2, g2, be2, wfc_p, bfc_p) = kp
    B, S = token_ids.shape
    vpad = wfc_p.shape[1]

    x = jnp.take(embed, token_ids, axis=0)            # (B, S, E) f32

    def resident(a):                                   # weights: constant index_map
        zeros = (0,) * a.ndim
        return pl.BlockSpec(a.shape, lambda b, _z=zeros: _z)

    weight_args = (wqkv, bqkv, wo, bo, g1, be1, w1, b1, w2, b2, g2, be2,
                   wfc_p, bfc_p)
    in_specs = ([pl.BlockSpec((1, S, EMBED_DIM), lambda b: (b, 0, 0))]
                + [resident(a) for a in weight_args])
    out_specs = pl.BlockSpec((1, S, vpad), lambda b: (b, 0, 0))

    out = pl.pallas_call(
        fused_forward_kernel,
        out_shape=jax.ShapeDtypeStruct((B, S, vpad), jnp.float32),
        grid=(B,),
        in_specs=in_specs,
        out_specs=out_specs,
        compiler_params=pltpu.CompilerParams(
            dimension_semantics=("parallel",)),
    )(x, *weight_args)
    return out


def model_forward(token_ids, kernel_params, vocab_size):
    return _forward_padded(token_ids, kernel_params)[:, :, :vocab_size]


# ----------------------------------------------------------------------------
# Parameter preparation (layout plumbing done once, outside the kernel)
# ----------------------------------------------------------------------------
def prepare_kernel_params(params):
    embed, layer_params, (wfc, bfc) = params
    scale = 1.0 / np.sqrt(HEAD_DIM)

    wqkv_l, bqkv_l, wo_l, bo_l = [], [], [], []
    g1_l, be1_l, w1_l, b1_l, w2_l, b2_l, g2_l, be2_l = ([] for _ in range(8))
    for (wq, bq, wk, bk, wv, bv, wo, bo,
         g1, bn1, w1, b1, w2, b2, g2, bn2) in layer_params:
        # fused QKV weight (E, 3E); 1/sqrt(head_dim) folded into Q columns/bias
        wqkv_l.append(jnp.concatenate([wq * scale, wk, wv], axis=1).astype(jnp.bfloat16))
        bqkv_l.append(jnp.concatenate([bq * scale, bk, bv], axis=1))          # (1, 3E) f32
        wo_l.append(wo.astype(jnp.bfloat16)); bo_l.append(bo)
        g1_l.append(g1); be1_l.append(bn1)
        w1_l.append(w1.astype(jnp.bfloat16)); b1_l.append(b1)
        w2_l.append(w2.astype(jnp.bfloat16)); b2_l.append(b2)
        g2_l.append(g2); be2_l.append(bn2)

    V = wfc.shape[1]
    vpad = ((V + 127) // 128) * 128
    wfc_p = jnp.zeros((EMBED_DIM, vpad), jnp.float32).at[:, :V].set(wfc).astype(jnp.bfloat16)
    bfc_p = jnp.zeros((1, vpad), jnp.float32).at[:, :V].set(bfc)

    return (embed,
            jnp.stack(wqkv_l), jnp.stack(bqkv_l), jnp.stack(wo_l), jnp.stack(bo_l),
            jnp.stack(g1_l), jnp.stack(be1_l),
            jnp.stack(w1_l), jnp.stack(b1_l), jnp.stack(w2_l), jnp.stack(b2_l),
            jnp.stack(g2_l), jnp.stack(be2_l),
            wfc_p, bfc_p)


# ----------------------------------------------------------------------------
# Deterministic parameter init (shapes match the PyTorch module's __init__)
# ----------------------------------------------------------------------------
def _linear(key, fan_in, fan_out):
    kw, kb = jax.random.split(key)
    bound = 1.0 / np.sqrt(fan_in)
    w = jax.random.uniform(kw, (fan_in, fan_out), jnp.float32, -bound, bound)
    b = jax.random.uniform(kb, (1, fan_out), jnp.float32, -bound, bound)
    return w, b


def init_params(key, vocab_size):
    keys = jax.random.split(key, 2 + NUM_LAYERS)
    embed = jax.random.normal(keys[0], (vocab_size + 2, EMBED_DIM), jnp.float32) * 0.02

    layer_params = []
    for l in range(NUM_LAYERS):
        lk = jax.random.split(keys[1 + l], 6)
        wq, bq = _linear(lk[0], EMBED_DIM, EMBED_DIM)
        wk, bk = _linear(lk[1], EMBED_DIM, EMBED_DIM)
        wv, bv = _linear(lk[2], EMBED_DIM, EMBED_DIM)
        wo, bo = _linear(lk[3], EMBED_DIM, EMBED_DIM)
        w1, b1 = _linear(lk[4], EMBED_DIM, FFN_DIM)
        w2, b2 = _linear(lk[5], FFN_DIM, EMBED_DIM)
        g1 = jnp.ones((1, EMBED_DIM), jnp.float32)
        bn1 = jnp.zeros((1, EMBED_DIM), jnp.float32)
        g2 = jnp.ones((1, EMBED_DIM), jnp.float32)
        bn2 = jnp.zeros((1, EMBED_DIM), jnp.float32)
        layer_params.append((wq, bq, wk, bk, wv, bv, wo, bo,
                             g1, bn1, w1, b1, w2, b2, g2, bn2))

    wfc, bfc = _linear(keys[-1], EMBED_DIM, vocab_size)
    return embed, layer_params, (wfc, bfc)


# ----------------------------------------------------------------------------
# References for correctness checks
# ----------------------------------------------------------------------------
def reference_forward_f32(token_ids, params):
    """Pure-f32 JAX reference with PyTorch TransformerEncoder semantics."""
    embed, layer_params, (wfc, bfc) = params
    x = jnp.take(embed, token_ids, axis=0)              # (B, S, E)
    B, S, E = x.shape
    for (wq, bq, wk, bk, wv, bv, wo, bo,
         g1, bn1, w1, b1, w2, b2, g2, bn2) in layer_params:
        q = x @ wq + bq
        k = x @ wk + bk
        v = x @ wv + bv

        def split(t):
            return t.reshape(B, S, NHEAD, HEAD_DIM).transpose(0, 2, 1, 3)

        qh, kh, vh = split(q), split(k), split(v)
        scores = jnp.einsum('bhqd,bhkd->bhqk', qh, kh) / (HEAD_DIM ** 0.5)
        p = jax.nn.softmax(scores, axis=-1)
        ctx = jnp.einsum('bhqk,bhkd->bhqd', p, vh).transpose(0, 2, 1, 3).reshape(B, S, E)
        x1 = _layer_norm(x + ctx @ wo + bo, g1, bn1)
        ffn = jnp.maximum(x1 @ w1 + b1, 0.0) @ w2 + b2
        x = _layer_norm(x1 + ffn, g2, bn2)
    return x @ wfc + bfc


def reference_forward_matched(token_ids, kp):
    """Plain-JAX mirror of the kernel numerics (bf16 MXU operands, f32 accumulate)."""
    (embed, wqkv_l, bqkv_l, wo_l, bo_l,
     g1_l, be1_l, w1_l, b1_l, w2_l, b2_l, g2_l, be2_l, wfc_p, bfc_p) = kp
    f32 = jnp.float32
    bf16 = jnp.bfloat16
    x = jnp.take(embed, token_ids, axis=0)               # (B, S, E)
    for l in range(NUM_LAYERS):
        xb = x.astype(bf16)
        qkv = jnp.einsum('bsd,de->bse', xb, wqkv_l[l],
                         preferred_element_type=f32) + bqkv_l[l]
        ctxs = []
        for h in range(NHEAD):
            q0 = h * HEAD_DIM
            k0 = EMBED_DIM + h * HEAD_DIM
            v0 = 2 * EMBED_DIM + h * HEAD_DIM
            qh = qkv[..., q0:q0 + HEAD_DIM].astype(bf16)
            kh = qkv[..., k0:k0 + HEAD_DIM].astype(bf16)
            vh = qkv[..., v0:v0 + HEAD_DIM].astype(bf16)
            s = jnp.einsum('bqd,bkd->bqk', qh, kh, preferred_element_type=f32)
            p = jax.nn.softmax(s, axis=-1)
            ctxs.append(jnp.einsum('bqk,bkd->bqd', p.astype(bf16), vh,
                                   preferred_element_type=f32))
        ctx = jnp.concatenate(ctxs, axis=-1)
        attn = jnp.einsum('bsd,de->bse', ctx.astype(bf16), wo_l[l],
                          preferred_element_type=f32) + bo_l[l]
        x1 = _layer_norm(x + attn, g1_l[l], be1_l[l])
        h1 = jnp.maximum(jnp.einsum('bsd,df->bsf', x1.astype(bf16), w1_l[l],
                                    preferred_element_type=f32) + b1_l[l], 0.0)
        ffn = jnp.einsum('bsf,fd->bsd', h1.astype(bf16), w2_l[l],
                         preferred_element_type=f32) + b2_l[l]
        x = _layer_norm(x1 + ffn, g2_l[l], be2_l[l])
    return jnp.einsum('bsd,dv->bsv', x.astype(bf16), wfc_p,
                      preferred_element_type=f32) + bfc_p


# ----------------------------------------------------------------------------
if __name__ == "__main__":
    VOCAB_SIZE = 64          # synthetic vocab (stands in for len(account_dict))
    B, S = 2, 8              # small batch / sequence

    key = jax.random.PRNGKey(0)
    pkey, dkey = jax.random.split(key)
    params = init_params(pkey, VOCAB_SIZE)
    kparams = prepare_kernel_params(params)
    tokens = jax.random.randint(dkey, (B, S), 0, VOCAB_SIZE + 2, dtype=jnp.int32)

    logits = model_forward(tokens, kparams, VOCAB_SIZE)
    logits = jax.block_until_ready(logits)
    assert logits.shape == (B, S, VOCAB_SIZE)

    # 1) tight check against a plain-JAX mirror of the kernel's numerics
    ref_matched = reference_forward_matched(tokens, kparams)[:, :, :VOCAB_SIZE]
    np.testing.assert_allclose(np.asarray(logits), np.asarray(ref_matched),
                               rtol=2e-2, atol=2e-2)

    # 2) semantic check against the pure-f32 PyTorch-equivalent reference
    #    (looser tolerance only because of the intentional bf16 MXU operands)
    ref_f32 = reference_forward_f32(tokens, params)
    np.testing.assert_allclose(np.asarray(logits), np.asarray(ref_f32),
                               rtol=1e-1, atol=1e-1)

    print("KERNEL_OK")
</pallas_src>

<mosaic_0001>
module attributes {stable_mosaic.version = 11 : i64} {
  func.func @fused_forward_kernel(%arg0: i32, %arg1: memref<1x8x128xf32, #tpu.memory_space<vmem>>, %arg2: memref<2x128x384xbf16, #tpu.memory_space<vmem>>, %arg3: memref<2x1x384xf32, #tpu.memory_space<vmem>>, %arg4: memref<2x128x128xbf16, #tpu.memory_space<vmem>>, %arg5: memref<2x1x128xf32, #tpu.memory_space<vmem>>, %arg6: memref<2x1x128xf32, #tpu.memory_space<vmem>>, %arg7: memref<2x1x128xf32, #tpu.memory_space<vmem>>, %arg8: memref<2x128x2048xbf16, #tpu.memory_space<vmem>>, %arg9: memref<2x1x2048xf32, #tpu.memory_space<vmem>>, %arg10: memref<2x2048x128xbf16, #tpu.memory_space<vmem>>, %arg11: memref<2x1x128xf32, #tpu.memory_space<vmem>>, %arg12: memref<2x1x128xf32, #tpu.memory_space<vmem>>, %arg13: memref<2x1x128xf32, #tpu.memory_space<vmem>>, %arg14: memref<128x128xbf16, #tpu.memory_space<vmem>>, %arg15: memref<1x128xf32, #tpu.memory_space<vmem>>, %arg16: memref<1x8x128xf32, #tpu.memory_space<vmem>>) attributes {dimension_semantics = [#tpu.dimension_semantics<parallel>], iteration_bounds = array<i64: 2>, scalar_prefetch = 0 : i64, scratch_operands = 0 : i64, tpu.core_type = #tpu.core_type<tc>, window_params = [{transform_indices = @transform_0, window_bounds = array<i64: 1, 8, 128>}, {pipeline_mode = #tpu.pipeline_mode<synchronous>, transform_indices = @transform_1, window_bounds = array<i64: 2, 128, 384>}, {pipeline_mode = #tpu.pipeline_mode<synchronous>, transform_indices = @transform_2, window_bounds = array<i64: 2, 1, 384>}, {pipeline_mode = #tpu.pipeline_mode<synchronous>, transform_indices = @transform_3, window_bounds = array<i64: 2, 128, 128>}, {pipeline_mode = #tpu.pipeline_mode<synchronous>, transform_indices = @transform_4, window_bounds = array<i64: 2, 1, 128>}, {pipeline_mode = #tpu.pipeline_mode<synchronous>, transform_indices = @transform_5, window_bounds = array<i64: 2, 1, 128>}, {pipeline_mode = #tpu.pipeline_mode<synchronous>, transform_indices = @transform_6, window_bounds = array<i64: 2, 1, 128>}, {pipeline_mode = #tpu.pipeline_mode<synchronous>, transform_indices = @transform_7, window_bounds = array<i64: 2, 128, 2048>}, {pipeline_mode = #tpu.pipeline_mode<synchronous>, transform_indices = @transform_8, window_bounds = array<i64: 2, 1, 2048>}, {pipeline_mode = #tpu.pipeline_mode<synchronous>, transform_indices = @transform_9, window_bounds = array<i64: 2, 2048, 128>}, {pipeline_mode = #tpu.pipeline_mode<synchronous>, transform_indices = @transform_10, window_bounds = array<i64: 2, 1, 128>}, {pipeline_mode = #tpu.pipeline_mode<synchronous>, transform_indices = @transform_11, window_bounds = array<i64: 2, 1, 128>}, {pipeline_mode = #tpu.pipeline_mode<synchronous>, transform_indices = @transform_12, window_bounds = array<i64: 2, 1, 128>}, {pipeline_mode = #tpu.pipeline_mode<synchronous>, transform_indices = @transform_13, window_bounds = array<i64: 128, 128>}, {pipeline_mode = #tpu.pipeline_mode<synchronous>, transform_indices = @transform_14, window_bounds = array<i64: 1, 128>}, {transform_indices = @transform_15, window_bounds = array<i64: 1, 8, 128>}]} {
    %c0 = arith.constant 0 : index
    %c0_0 = arith.constant 0 : index
    %c0_1 = arith.constant 0 : index
    %0 = vector.load %arg1[%c0, %c0_0, %c0_1] : memref<1x8x128xf32, #tpu.memory_space<vmem>>, vector<1x8x128xf32>
    %1 = vector.shape_cast %0 : vector<1x8x128xf32> to vector<8x128xf32>
    %2 = arith.truncf %1 : vector<8x128xf32> to vector<8x128xbf16>
    %c0_2 = arith.constant 0 : index
    %c0_3 = arith.constant 0 : index
    %c0_4 = arith.constant 0 : index
    %3 = vector.load %arg2[%c0_2, %c0_3, %c0_4] : memref<2x128x384xbf16, #tpu.memory_space<vmem>>, vector<1x128x384xbf16>
    %4 = vector.shape_cast %3 : vector<1x128x384xbf16> to vector<128x384xbf16>
    %cst = arith.constant dense<0.000000e+00> : vector<8x384xf32>
    %5 = tpu.matmul %2, %4, %cst {dimension_numbers = #tpu.dot_dimension_numbers<[1], [0], [0], [1], [0, 0, 1, 1], [], []>} : vector<8x128xbf16>, vector<128x384xbf16>, vector<8x384xf32> -> vector<8x384xf32>
    %c0_5 = arith.constant 0 : index
    %c0_6 = arith.constant 0 : index
    %c0_7 = arith.constant 0 : index
    %6 = vector.load %arg3[%c0_5, %c0_6, %c0_7] : memref<2x1x384xf32, #tpu.memory_space<vmem>>, vector<1x1x384xf32>
    %7 = vector.shape_cast %6 : vector<1x1x384xf32> to vector<1x384xf32>
    %8 = vector.broadcast %7 : vector<1x384xf32> to vector<8x384xf32>
    %9 = arith.addf %5, %8 : vector<8x384xf32>
    %10 = vector.extract_strided_slice %9 {offsets = [0, 0], sizes = [8, 32], strides = [1, 1]} : vector<8x384xf32> to vector<8x32xf32>
    %11 = arith.truncf %10 : vector<8x32xf32> to vector<8x32xbf16>
    %12 = vector.extract_strided_slice %9 {offsets = [0, 128], sizes = [8, 32], strides = [1, 1]} : vector<8x384xf32> to vector<8x32xf32>
    %13 = arith.truncf %12 : vector<8x32xf32> to vector<8x32xbf16>
    %14 = vector.extract_strided_slice %9 {offsets = [0, 256], sizes = [8, 32], strides = [1, 1]} : vector<8x384xf32> to vector<8x32xf32>
    %15 = arith.truncf %14 : vector<8x32xf32> to vector<8x32xbf16>
    "tpu.trace_start"() <{level = 10 : i32, message = "qd,kd->qk"}> : () -> ()
    %cst_8 = arith.constant dense<0.000000e+00> : vector<8x8xf32>
    %16 = tpu.matmul %11, %13, %cst_8 {dimension_numbers = #tpu.dot_dimension_numbers<[1], [1], [0], [0], [0, 0, 1, 0], [], []>} : vector<8x32xbf16>, vector<8x32xbf16>, vector<8x8xf32> -> vector<8x8xf32>
    "tpu.trace_stop"() : () -> ()
    %cst_9 = arith.constant dense<0xFF800000> : vector<8xf32>
    %17 = vector.multi_reduction <maximumf>, %16, %cst_9 [1] : vector<8x8xf32> to vector<8xf32>
    %18 = vector.shape_cast %17 : vector<8xf32> to vector<8x1xf32>
    %19 = vector.broadcast %18 : vector<8x1xf32> to vector<8x8xf32>
    %20 = arith.subf %16, %19 : vector<8x8xf32>
    %21 = math.exp %20 : vector<8x8xf32>
    %cst_10 = arith.constant dense<0.000000e+00> : vector<8xf32>
    %22 = vector.multi_reduction <add>, %21, %cst_10 [1] : vector<8x8xf32> to vector<8xf32>
    %23 = vector.shape_cast %22 : vector<8xf32> to vector<8x1xf32>
    %24 = tpu.reciprocal %23 {approx = true} : vector<8x1xf32> -> vector<8x1xf32>
    %25 = vector.broadcast %24 : vector<8x1xf32> to vector<8x8xf32>
    %26 = arith.mulf %21, %25 : vector<8x8xf32>
    %27 = arith.truncf %26 : vector<8x8xf32> to vector<8x8xbf16>
    %cst_11 = arith.constant dense<0.000000e+00> : vector<8x32xf32>
    %28 = tpu.matmul %27, %15, %cst_11 {dimension_numbers = #tpu.dot_dimension_numbers<[1], [0], [0], [1], [0, 0, 1, 1], [], []>} : vector<8x8xbf16>, vector<8x32xbf16>, vector<8x32xf32> -> vector<8x32xf32>
    %29 = vector.extract_strided_slice %9 {offsets = [0, 32], sizes = [8, 32], strides = [1, 1]} : vector<8x384xf32> to vector<8x32xf32>
    %30 = arith.truncf %29 : vector<8x32xf32> to vector<8x32xbf16>
    %31 = vector.extract_strided_slice %9 {offsets = [0, 160], sizes = [8, 32], strides = [1, 1]} : vector<8x384xf32> to vector<8x32xf32>
    %32 = arith.truncf %31 : vector<8x32xf32> to vector<8x32xbf16>
    %33 = vector.extract_strided_slice %9 {offsets = [0, 288], sizes = [8, 32], strides = [1, 1]} : vector<8x384xf32> to vector<8x32xf32>
    %34 = arith.truncf %33 : vector<8x32xf32> to vector<8x32xbf16>
    "tpu.trace_start"() <{level = 10 : i32, message = "qd,kd->qk"}> : () -> ()
    %cst_12 = arith.constant dense<0.000000e+00> : vector<8x8xf32>
    %35 = tpu.matmul %30, %32, %cst_12 {dimension_numbers = #tpu.dot_dimension_numbers<[1], [1], [0], [0], [0, 0, 1, 0], [], []>} : vector<8x32xbf16>, vector<8x32xbf16>, vector<8x8xf32> -> vector<8x8xf32>
    "tpu.trace_stop"() : () -> ()
    %cst_13 = arith.constant dense<0xFF800000> : vector<8xf32>
    %36 = vector.multi_reduction <maximumf>, %35, %cst_13 [1] : vector<8x8xf32> to vector<8xf32>
    %37 = vector.shape_cast %36 : vector<8xf32> to vector<8x1xf32>
    %38 = vector.broadcast %37 : vector<8x1xf32> to vector<8x8xf32>
    %39 = arith.subf %35, %38 : vector<8x8xf32>
    %40 = math.exp %39 : vector<8x8xf32>
    %cst_14 = arith.constant dense<0.000000e+00> : vector<8xf32>
    %41 = vector.multi_reduction <add>, %40, %cst_14 [1] : vector<8x8xf32> to vector<8xf32>
    %42 = vector.shape_cast %41 : vector<8xf32> to vector<8x1xf32>
    %43 = tpu.reciprocal %42 {approx = true} : vector<8x1xf32> -> vector<8x1xf32>
    %44 = vector.broadcast %43 : vector<8x1xf32> to vector<8x8xf32>
    %45 = arith.mulf %40, %44 : vector<8x8xf32>
    %46 = arith.truncf %45 : vector<8x8xf32> to vector<8x8xbf16>
    %cst_15 = arith.constant dense<0.000000e+00> : vector<8x32xf32>
    %47 = tpu.matmul %46, %34, %cst_15 {dimension_numbers = #tpu.dot_dimension_numbers<[1], [0], [0], [1], [0, 0, 1, 1], [], []>} : vector<8x8xbf16>, vector<8x32xbf16>, vector<8x32xf32> -> vector<8x32xf32>
    %48 = vector.extract_strided_slice %9 {offsets = [0, 64], sizes = [8, 32], strides = [1, 1]} : vector<8x384xf32> to vector<8x32xf32>
    %49 = arith.truncf %48 : vector<8x32xf32> to vector<8x32xbf16>
    %50 = vector.extract_strided_slice %9 {offsets = [0, 192], sizes = [8, 32], strides = [1, 1]} : vector<8x384xf32> to vector<8x32xf32>
    %51 = arith.truncf %50 : vector<8x32xf32> to vector<8x32xbf16>
    %52 = vector.extract_strided_slice %9 {offsets = [0, 320], sizes = [8, 32], strides = [1, 1]} : vector<8x384xf32> to vector<8x32xf32>
    %53 = arith.truncf %52 : vector<8x32xf32> to vector<8x32xbf16>
    "tpu.trace_start"() <{level = 10 : i32, message = "qd,kd->qk"}> : () -> ()
    %cst_16 = arith.constant dense<0.000000e+00> : vector<8x8xf32>
    %54 = tpu.matmul %49, %51, %cst_16 {dimension_numbers = #tpu.dot_dimension_numbers<[1], [1], [0], [0], [0, 0, 1, 0], [], []>} : vector<8x32xbf16>, vector<8x32xbf16>, vector<8x8xf32> -> vector<8x8xf32>
    "tpu.trace_stop"() : () -> ()
    %cst_17 = arith.constant dense<0xFF800000> : vector<8xf32>
    %55 = vector.multi_reduction <maximumf>, %54, %cst_17 [1] : vector<8x8xf32> to vector<8xf32>
    %56 = vector.shape_cast %55 : vector<8xf32> to vector<8x1xf32>
    %57 = vector.broadcast %56 : vector<8x1xf32> to vector<8x8xf32>
    %58 = arith.subf %54, %57 : vector<8x8xf32>
    %59 = math.exp %58 : vector<8x8xf32>
    %cst_18 = arith.constant dense<0.000000e+00> : vector<8xf32>
    %60 = vector.multi_reduction <add>, %59, %cst_18 [1] : vector<8x8xf32> to vector<8xf32>
    %61 = vector.shape_cast %60 : vector<8xf32> to vector<8x1xf32>
    %62 = tpu.reciprocal %61 {approx = true} : vector<8x1xf32> -> vector<8x1xf32>
    %63 = vector.broadcast %62 : vector<8x1xf32> to vector<8x8xf32>
    %64 = arith.mulf %59, %63 : vector<8x8xf32>
    %65 = arith.truncf %64 : vector<8x8xf32> to vector<8x8xbf16>
    %cst_19 = arith.constant dense<0.000000e+00> : vector<8x32xf32>
    %66 = tpu.matmul %65, %53, %cst_19 {dimension_numbers = #tpu.dot_dimension_numbers<[1], [0], [0], [1], [0, 0, 1, 1], [], []>} : vector<8x8xbf16>, vector<8x32xbf16>, vector<8x32xf32> -> vector<8x32xf32>
    %67 = vector.extract_strided_slice %9 {offsets = [0, 96], sizes = [8, 32], strides = [1, 1]} : vector<8x384xf32> to vector<8x32xf32>
    %68 = arith.truncf %67 : vector<8x32xf32> to vector<8x32xbf16>
    %69 = vector.extract_strided_slice %9 {offsets = [0, 224], sizes = [8, 32], strides = [1, 1]} : vector<8x384xf32> to vector<8x32xf32>
    %70 = arith.truncf %69 : vector<8x32xf32> to vector<8x32xbf16>
    %71 = vector.extract_strided_slice %9 {offsets = [0, 352], sizes = [8, 32], strides = [1, 1]} : vector<8x384xf32> to vector<8x32xf32>
    %72 = arith.truncf %71 : vector<8x32xf32> to vector<8x32xbf16>
    "tpu.trace_start"() <{level = 10 : i32, message = "qd,kd->qk"}> : () -> ()
    %cst_20 = arith.constant dense<0.000000e+00> : vector<8x8xf32>
    %73 = tpu.matmul %68, %70, %cst_20 {dimension_numbers = #tpu.dot_dimension_numbers<[1], [1], [0], [0], [0, 0, 1, 0], [], []>} : vector<8x32xbf16>, vector<8x32xbf16>, vector<8x8xf32> -> vector<8x8xf32>
    "tpu.trace_stop"() : () -> ()
    %cst_21 = arith.constant dense<0xFF800000> : vector<8xf32>
    %74 = vector.multi_reduction <maximumf>, %73, %cst_21 [1] : vector<8x8xf32> to vector<8xf32>
    %75 = vector.shape_cast %74 : vector<8xf32> to vector<8x1xf32>
    %76 = vector.broadcast %75 : vector<8x1xf32> to vector<8x8xf32>
    %77 = arith.subf %73, %76 : vector<8x8xf32>
    %78 = math.exp %77 : vector<8x8xf32>
    %cst_22 = arith.constant dense<0.000000e+00> : vector<8xf32>
    %79 = vector.multi_reduction <add>, %78, %cst_22 [1] : vector<8x8xf32> to vector<8xf32>
    %80 = vector.shape_cast %79 : vector<8xf32> to vector<8x1xf32>
    %81 = tpu.reciprocal %80 {approx = true} : vector<8x1xf32> -> vector<8x1xf32>
    %82 = vector.broadcast %81 : vector<8x1xf32> to vector<8x8xf32>
    %83 = arith.mulf %78, %82 : vector<8x8xf32>
    %84 = arith.truncf %83 : vector<8x8xf32> to vector<8x8xbf16>
    %cst_23 = arith.constant dense<0.000000e+00> : vector<8x32xf32>
    %85 = tpu.matmul %84, %72, %cst_23 {dimension_numbers = #tpu.dot_dimension_numbers<[1], [0], [0], [1], [0, 0, 1, 1], [], []>} : vector<8x8xbf16>, vector<8x32xbf16>, vector<8x32xf32> -> vector<8x32xf32>
    %86 = tpu.concatenate %28, %47, %66, %85 in 1 : vector<8x32xf32>, vector<8x32xf32>, vector<8x32xf32>, vector<8x32xf32> -> vector<8x128xf32>
    %87 = arith.truncf %86 : vector<8x128xf32> to vector<8x128xbf16>
    %c0_24 = arith.constant 0 : index
    %c0_25 = arith.constant 0 : index
    %c0_26 = arith.constant 0 : index
    %88 = vector.load %arg4[%c0_24, %c0_25, %c0_26] : memref<2x128x128xbf16, #tpu.memory_space<vmem>>, vector<1x128x128xbf16>
    %89 = vector.shape_cast %88 : vector<1x128x128xbf16> to vector<128x128xbf16>
    %cst_27 = arith.constant dense<0.000000e+00> : vector<8x128xf32>
    %90 = tpu.matmul %87, %89, %cst_27 {dimension_numbers = #tpu.dot_dimension_numbers<[1], [0], [0], [1], [0, 0, 1, 1], [], []>} : vector<8x128xbf16>, vector<128x128xbf16>, vector<8x128xf32> -> vector<8x128xf32>
    %c0_28 = arith.constant 0 : index
    %c0_29 = arith.constant 0 : index
    %c0_30 = arith.constant 0 : index
    %91 = vector.load %arg5[%c0_28, %c0_29, %c0_30] : memref<2x1x128xf32, #tpu.memory_space<vmem>>, vector<1x1x128xf32>
    %92 = vector.shape_cast %91 : vector<1x1x128xf32> to vector<1x128xf32>
    %93 = vector.broadcast %92 : vector<1x128xf32> to vector<8x128xf32>
    %94 = arith.addf %90, %93 : vector<8x128xf32>
    %95 = arith.addf %1, %94 : vector<8x128xf32>
    %c0_31 = arith.constant 0 : index
    %c0_32 = arith.constant 0 : index
    %c0_33 = arith.constant 0 : index
    %96 = vector.load %arg6[%c0_31, %c0_32, %c0_33] : memref<2x1x128xf32, #tpu.memory_space<vmem>>, vector<1x1x128xf32>
    %97 = vector.shape_cast %96 : vector<1x1x128xf32> to vector<1x128xf32>
    %c0_34 = arith.constant 0 : index
    %c0_35 = arith.constant 0 : index
    %c0_36 = arith.constant 0 : index
    %98 = vector.load %arg7[%c0_34, %c0_35, %c0_36] : memref<2x1x128xf32, #tpu.memory_space<vmem>>, vector<1x1x128xf32>
    %99 = vector.shape_cast %98 : vector<1x1x128xf32> to vector<1x128xf32>
    %cst_37 = arith.constant dense<0.000000e+00> : vector<8xf32>
    %100 = vector.multi_reduction <add>, %95, %cst_37 [1] : vector<8x128xf32> to vector<8xf32>
    %101 = vector.shape_cast %100 : vector<8xf32> to vector<8x1xf32>
    %cst_38 = arith.constant 1.280000e+02 : f32
    %102 = vector.broadcast %cst_38 : f32 to vector<8x1xf32>
    %103 = arith.divf %101, %102 : vector<8x1xf32>
    %104 = vector.broadcast %103 : vector<8x1xf32> to vector<8x128xf32>
    %105 = arith.subf %95, %104 : vector<8x128xf32>
    %106 = arith.mulf %105, %105 : vector<8x128xf32>
    %cst_39 = arith.constant dense<0.000000e+00> : vector<8xf32>
    %107 = vector.multi_reduction <add>, %106, %cst_39 [1] : vector<8x128xf32> to vector<8xf32>
    %108 = vector.shape_cast %107 : vector<8xf32> to vector<8x1xf32>
    %cst_40 = arith.constant 1.280000e+02 : f32
    %109 = vector.broadcast %cst_40 : f32 to vector<8x1xf32>
    %110 = arith.divf %108, %109 : vector<8x1xf32>
    %111 = vector.broadcast %103 : vector<8x1xf32> to vector<8x128xf32>
    %112 = arith.subf %95, %111 : vector<8x128xf32>
    %cst_41 = arith.constant 9.99999974E-6 : f32
    %113 = vector.broadcast %cst_41 : f32 to vector<8x1xf32>
    %114 = arith.addf %110, %113 : vector<8x1xf32>
    %115 = math.rsqrt %114 : vector<8x1xf32>
    %116 = vector.broadcast %115 : vector<8x1xf32> to vector<8x128xf32>
    %117 = arith.mulf %112, %116 : vector<8x128xf32>
    %118 = vector.broadcast %97 : vector<1x128xf32> to vector<8x128xf32>
    %119 = arith.mulf %117, %118 : vector<8x128xf32>
    %120 = vector.broadcast %99 : vector<1x128xf32> to vector<8x128xf32>
    %121 = arith.addf %119, %120 : vector<8x128xf32>
    %122 = arith.truncf %121 : vector<8x128xf32> to vector<8x128xbf16>
    %c0_42 = arith.constant 0 : index
    %c0_43 = arith.constant 0 : index
    %c0_44 = arith.constant 0 : index
    %123 = vector.load %arg8[%c0_42, %c0_43, %c0_44] : memref<2x128x2048xbf16, #tpu.memory_space<vmem>>, vector<1x128x2048xbf16>
    %124 = vector.shape_cast %123 : vector<1x128x2048xbf16> to vector<128x2048xbf16>
    %cst_45 = arith.constant dense<0.000000e+00> : vector<8x2048xf32>
    %125 = tpu.matmul %122, %124, %cst_45 {dimension_numbers = #tpu.dot_dimension_numbers<[1], [0], [0], [1], [0, 0, 1, 1], [], []>} : vector<8x128xbf16>, vector<128x2048xbf16>, vector<8x2048xf32> -> vector<8x2048xf32>
    %c0_46 = arith.constant 0 : index
    %c0_47 = arith.constant 0 : index
    %c0_48 = arith.constant 0 : index
    %126 = vector.load %arg9[%c0_46, %c0_47, %c0_48] : memref<2x1x2048xf32, #tpu.memory_space<vmem>>, vector<1x1x2048xf32>
    %127 = vector.shape_cast %126 : vector<1x1x2048xf32> to vector<1x2048xf32>
    %128 = vector.broadcast %127 : vector<1x2048xf32> to vector<8x2048xf32>
    %129 = arith.addf %125, %128 : vector<8x2048xf32>
    %cst_49 = arith.constant 0.000000e+00 : f32
    %130 = vector.broadcast %cst_49 : f32 to vector<8x2048xf32>
    %131 = arith.maximumf %129, %130 : vector<8x2048xf32>
    %132 = arith.truncf %131 : vector<8x2048xf32> to vector<8x2048xbf16>
    %c0_50 = arith.constant 0 : index
    %c0_51 = arith.constant 0 : index
    %c0_52 = arith.constant 0 : index
    %133 = vector.load %arg10[%c0_50, %c0_51, %c0_52] : memref<2x2048x128xbf16, #tpu.memory_space<vmem>>, vector<1x2048x128xbf16>
    %134 = vector.shape_cast %133 : vector<1x2048x128xbf16> to vector<2048x128xbf16>
    %cst_53 = arith.constant dense<0.000000e+00> : vector<8x128xf32>
    %135 = tpu.matmul %132, %134, %cst_53 {dimension_numbers = #tpu.dot_dimension_numbers<[1], [0], [0], [1], [0, 0, 1, 1], [], []>} : vector<8x2048xbf16>, vector<2048x128xbf16>, vector<8x128xf32> -> vector<8x128xf32>
    %c0_54 = arith.constant 0 : index
    %c0_55 = arith.constant 0 : index
    %c0_56 = arith.constant 0 : index
    %136 = vector.load %arg11[%c0_54, %c0_55, %c0_56] : memref<2x1x128xf32, #tpu.memory_space<vmem>>, vector<1x1x128xf32>
    %137 = vector.shape_cast %136 : vector<1x1x128xf32> to vector<1x128xf32>
    %138 = vector.broadcast %137 : vector<1x128xf32> to vector<8x128xf32>
    %139 = arith.addf %135, %138 : vector<8x128xf32>
    %140 = arith.addf %121, %139 : vector<8x128xf32>
    %c0_57 = arith.constant 0 : index
    %c0_58 = arith.constant 0 : index
    %c0_59 = arith.constant 0 : index
    %141 = vector.load %arg12[%c0_57, %c0_58, %c0_59] : memref<2x1x128xf32, #tpu.memory_space<vmem>>, vector<1x1x128xf32>
    %142 = vector.shape_cast %141 : vector<1x1x128xf32> to vector<1x128xf32>
    %c0_60 = arith.constant 0 : index
    %c0_61 = arith.constant 0 : index
    %c0_62 = arith.constant 0 : index
    %143 = vector.load %arg13[%c0_60, %c0_61, %c0_62] : memref<2x1x128xf32, #tpu.memory_space<vmem>>, vector<1x1x128xf32>
    %144 = vector.shape_cast %143 : vector<1x1x128xf32> to vector<1x128xf32>
    %cst_63 = arith.constant dense<0.000000e+00> : vector<8xf32>
    %145 = vector.multi_reduction <add>, %140, %cst_63 [1] : vector<8x128xf32> to vector<8xf32>
    %146 = vector.shape_cast %145 : vector<8xf32> to vector<8x1xf32>
    %cst_64 = arith.constant 1.280000e+02 : f32
    %147 = vector.broadcast %cst_64 : f32 to vector<8x1xf32>
    %148 = arith.divf %146, %147 : vector<8x1xf32>
    %149 = vector.broadcast %148 : vector<8x1xf32> to vector<8x128xf32>
    %150 = arith.subf %140, %149 : vector<8x128xf32>
    %151 = arith.mulf %150, %150 : vector<8x128xf32>
    %cst_65 = arith.constant dense<0.000000e+00> : vector<8xf32>
    %152 = vector.multi_reduction <add>, %151, %cst_65 [1] : vector<8x128xf32> to vector<8xf32>
    %153 = vector.shape_cast %152 : vector<8xf32> to vector<8x1xf32>
    %cst_66 = arith.constant 1.280000e+02 : f32
    %154 = vector.broadcast %cst_66 : f32 to vector<8x1xf32>
    %155 = arith.divf %153, %154 : vector<8x1xf32>
    %156 = vector.broadcast %148 : vector<8x1xf32> to vector<8x128xf32>
    %157 = arith.subf %140, %156 : vector<8x128xf32>
    %cst_67 = arith.constant 9.99999974E-6 : f32
    %158 = vector.broadcast %cst_67 : f32 to vector<8x1xf32>
    %159 = arith.addf %155, %158 : vector<8x1xf32>
    %160 = math.rsqrt %159 : vector<8x1xf32>
    %161 = vector.broadcast %160 : vector<8x1xf32> to vector<8x128xf32>
    %162 = arith.mulf %157, %161 : vector<8x128xf32>
    %163 = vector.broadcast %142 : vector<1x128xf32> to vector<8x128xf32>
    %164 = arith.mulf %162, %163 : vector<8x128xf32>
    %165 = vector.broadcast %144 : vector<1x128xf32> to vector<8x128xf32>
    %166 = arith.addf %164, %165 : vector<8x128xf32>
    %167 = arith.truncf %166 : vector<8x128xf32> to vector<8x128xbf16>
    %c1 = arith.constant 1 : index
    %c0_68 = arith.constant 0 : index
    %c0_69 = arith.constant 0 : index
    %168 = vector.load %arg2[%c1, %c0_68, %c0_69] : memref<2x128x384xbf16, #tpu.memory_space<vmem>>, vector<1x128x384xbf16>
    %169 = vector.shape_cast %168 : vector<1x128x384xbf16> to vector<128x384xbf16>
    %cst_70 = arith.constant dense<0.000000e+00> : vector<8x384xf32>
    %170 = tpu.matmul %167, %169, %cst_70 {dimension_numbers = #tpu.dot_dimension_numbers<[1], [0], [0], [1], [0, 0, 1, 1], [], []>} : vector<8x128xbf16>, vector<128x384xbf16>, vector<8x384xf32> -> vector<8x384xf32>
    %c1_71 = arith.constant 1 : index
    %c0_72 = arith.constant 0 : index
    %c0_73 = arith.constant 0 : index
    %171 = vector.load %arg3[%c1_71, %c0_72, %c0_73] : memref<2x1x384xf32, #tpu.memory_space<vmem>>, vector<1x1x384xf32>
    %172 = vector.shape_cast %171 : vector<1x1x384xf32> to vector<1x384xf32>
    %173 = vector.broadcast %172 : vector<1x384xf32> to vector<8x384xf32>
    %174 = arith.addf %170, %173 : vector<8x384xf32>
    %175 = vector.extract_strided_slice %174 {offsets = [0, 0], sizes = [8, 32], strides = [1, 1]} : vector<8x384xf32> to vector<8x32xf32>
    %176 = arith.truncf %175 : vector<8x32xf32> to vector<8x32xbf16>
    %177 = vector.extract_strided_slice %174 {offsets = [0, 128], sizes = [8, 32], strides = [1, 1]} : vector<8x384xf32> to vector<8x32xf32>
    %178 = arith.truncf %177 : vector<8x32xf32> to vector<8x32xbf16>
    %179 = vector.extract_strided_slice %174 {offsets = [0, 256], sizes = [8, 32], strides = [1, 1]} : vector<8x384xf32> to vector<8x32xf32>
    %180 = arith.truncf %179 : vector<8x32xf32> to vector<8x32xbf16>
    "tpu.trace_start"() <{level = 10 : i32, message = "qd,kd->qk"}> : () -> ()
    %cst_74 = arith.constant dense<0.000000e+00> : vector<8x8xf32>
    %181 = tpu.matmul %176, %178, %cst_74 {dimension_numbers = #tpu.dot_dimension_numbers<[1], [1], [0], [0], [0, 0, 1, 0], [], []>} : vector<8x32xbf16>, vector<8x32xbf16>, vector<8x8xf32> -> vector<8x8xf32>
    "tpu.trace_stop"() : () -> ()
    %cst_75 = arith.constant dense<0xFF800000> : vector<8xf32>
    %182 = vector.multi_reduction <maximumf>, %181, %cst_75 [1] : vector<8x8xf32> to vector<8xf32>
    %183 = vector.shape_cast %182 : vector<8xf32> to vector<8x1xf32>
    %184 = vector.broadcast %183 : vector<8x1xf32> to vector<8x8xf32>
    %185 = arith.subf %181, %184 : vector<8x8xf32>
    %186 = math.exp %185 : vector<8x8xf32>
    %cst_76 = arith.constant dense<0.000000e+00> : vector<8xf32>
    %187 = vector.multi_reduction <add>, %186, %cst_76 [1] : vector<8x8xf32> to vector<8xf32>
    %188 = vector.shape_cast %187 : vector<8xf32> to vector<8x1xf32>
    %189 = tpu.reciprocal %188 {approx = true} : vector<8x1xf32> -> vector<8x1xf32>
    %190 = vector.broadcast %189 : vector<8x1xf32> to vector<8x8xf32>
    %191 = arith.mulf %186, %190 : vector<8x8xf32>
    %192 = arith.truncf %191 : vector<8x8xf32> to vector<8x8xbf16>
    %cst_77 = arith.constant dense<0.000000e+00> : vector<8x32xf32>
    %193 = tpu.matmul %192, %180, %cst_77 {dimension_numbers = #tpu.dot_dimension_numbers<[1], [0], [0], [1], [0, 0, 1, 1], [], []>} : vector<8x8xbf16>, vector<8x32xbf16>, vector<8x32xf32> -> vector<8x32xf32>
    %194 = vector.extract_strided_slice %174 {offsets = [0, 32], sizes = [8, 32], strides = [1, 1]} : vector<8x384xf32> to vector<8x32xf32>
    %195 = arith.truncf %194 : vector<8x32xf32> to vector<8x32xbf16>
    %196 = vector.extract_strided_slice %174 {offsets = [0, 160], sizes = [8, 32], strides = [1, 1]} : vector<8x384xf32> to vector<8x32xf32>
    %197 = arith.truncf %196 : vector<8x32xf32> to vector<8x32xbf16>
    %198 = vector.extract_strided_slice %174 {offsets = [0, 288], sizes = [8, 32], strides = [1, 1]} : vector<8x384xf32> to vector<8x32xf32>
    %199 = arith.truncf %198 : vector<8x32xf32> to vector<8x32xbf16>
    "tpu.trace_start"() <{level = 10 : i32, message = "qd,kd->qk"}> : () -> ()
    %cst_78 = arith.constant dense<0.000000e+00> : vector<8x8xf32>
    %200 = tpu.matmul %195, %197, %cst_78 {dimension_numbers = #tpu.dot_dimension_numbers<[1], [1], [0], [0], [0, 0, 1, 0], [], []>} : vector<8x32xbf16>, vector<8x32xbf16>, vector<8x8xf32> -> vector<8x8xf32>
    "tpu.trace_stop"() : () -> ()
    %cst_79 = arith.constant dense<0xFF800000> : vector<8xf32>
    %201 = vector.multi_reduction <maximumf>, %200, %cst_79 [1] : vector<8x8xf32> to vector<8xf32>
    %202 = vector.shape_cast %201 : vector<8xf32> to vector<8x1xf32>
    %203 = vector.broadcast %202 : vector<8x1xf32> to vector<8x8xf32>
    %204 = arith.subf %200, %203 : vector<8x8xf32>
    %205 = math.exp %204 : vector<8x8xf32>
    %cst_80 = arith.constant dense<0.000000e+00> : vector<8xf32>
    %206 = vector.multi_reduction <add>, %205, %cst_80 [1] : vector<8x8xf32> to vector<8xf32>
    %207 = vector.shape_cast %206 : vector<8xf32> to vector<8x1xf32>
    %208 = tpu.reciprocal %207 {approx = true} : vector<8x1xf32> -> vector<8x1xf32>
    %209 = vector.broadcast %208 : vector<8x1xf32> to vector<8x8xf32>
    %210 = arith.mulf %205, %209 : vector<8x8xf32>
    %211 = arith.truncf %210 : vector<8x8xf32> to vector<8x8xbf16>
    %cst_81 = arith.constant dense<0.000000e+00> : vector<8x32xf32>
    %212 = tpu.matmul %211, %199, %cst_81 {dimension_numbers = #tpu.dot_dimension_numbers<[1], [0], [0], [1], [0, 0, 1, 1], [], []>} : vector<8x8xbf16>, vector<8x32xbf16>, vector<8x32xf32> -> vector<8x32xf32>
    %213 = vector.extract_strided_slice %174 {offsets = [0, 64], sizes = [8, 32], strides = [1, 1]} : vector<8x384xf32> to vector<8x32xf32>
    %214 = arith.truncf %213 : vector<8x32xf32> to vector<8x32xbf16>
    %215 = vector.extract_strided_slice %174 {offsets = [0, 192], sizes = [8, 32], strides = [1, 1]} : vector<8x384xf32> to vector<8x32xf32>
    %216 = arith.truncf %215 : vector<8x32xf32> to vector<8x32xbf16>
    %217 = vector.extract_strided_slice %174 {offsets = [0, 320], sizes = [8, 32], strides = [1, 1]} : vector<8x384xf32> to vector<8x32xf32>
    %218 = arith.truncf %217 : vector<8x32xf32> to vector<8x32xbf16>
    "tpu.trace_start"() <{level = 10 : i32, message = "qd,kd->qk"}> : () -> ()
    %cst_82 = arith.constant dense<0.000000e+00> : vector<8x8xf32>
    %219 = tpu.matmul %214, %216, %cst_82 {dimension_numbers = #tpu.dot_dimension_numbers<[1], [1], [0], [0], [0, 0, 1, 0], [], []>} : vector<8x32xbf16>, vector<8x32xbf16>, vector<8x8xf32> -> vector<8x8xf32>
    "tpu.trace_stop"() : () -> ()
    %cst_83 = arith.constant dense<0xFF800000> : vector<8xf32>
    %220 = vector.multi_reduction <maximumf>, %219, %cst_83 [1] : vector<8x8xf32> to vector<8xf32>
    %221 = vector.shape_cast %220 : vector<8xf32> to vector<8x1xf32>
    %222 = vector.broadcast %221 : vector<8x1xf32> to vector<8x8xf32>
    %223 = arith.subf %219, %222 : vector<8x8xf32>
    %224 = math.exp %223 : vector<8x8xf32>
    %cst_84 = arith.constant dense<0.000000e+00> : vector<8xf32>
    %225 = vector.multi_reduction <add>, %224, %cst_84 [1] : vector<8x8xf32> to vector<8xf32>
    %226 = vector.shape_cast %225 : vector<8xf32> to vector<8x1xf32>
    %227 = tpu.reciprocal %226 {approx = true} : vector<8x1xf32> -> vector<8x1xf32>
    %228 = vector.broadcast %227 : vector<8x1xf32> to vector<8x8xf32>
    %229 = arith.mulf %224, %228 : vector<8x8xf32>
    %230 = arith.truncf %229 : vector<8x8xf32> to vector<8x8xbf16>
    %cst_85 = arith.constant dense<0.000000e+00> : vector<8x32xf32>
    %231 = tpu.matmul %230, %218, %cst_85 {dimension_numbers = #tpu.dot_dimension_numbers<[1], [0], [0], [1], [0, 0, 1, 1], [], []>} : vector<8x8xbf16>, vector<8x32xbf16>, vector<8x32xf32> -> vector<8x32xf32>
    %232 = vector.extract_strided_slice %174 {offsets = [0, 96], sizes = [8, 32], strides = [1, 1]} : vector<8x384xf32> to vector<8x32xf32>
    %233 = arith.truncf %232 : vector<8x32xf32> to vector<8x32xbf16>
    %234 = vector.extract_strided_slice %174 {offsets = [0, 224], sizes = [8, 32], strides = [1, 1]} : vector<8x384xf32> to vector<8x32xf32>
    %235 = arith.truncf %234 : vector<8x32xf32> to vector<8x32xbf16>
    %236 = vector.extract_strided_slice %174 {offsets = [0, 352], sizes = [8, 32], strides = [1, 1]} : vector<8x384xf32> to vector<8x32xf32>
    %237 = arith.truncf %236 : vector<8x32xf32> to vector<8x32xbf16>
    "tpu.trace_start"() <{level = 10 : i32, message = "qd,kd->qk"}> : () -> ()
    %cst_86 = arith.constant dense<0.000000e+00> : vector<8x8xf32>
    %238 = tpu.matmul %233, %235, %cst_86 {dimension_numbers = #tpu.dot_dimension_numbers<[1], [1], [0], [0], [0, 0, 1, 0], [], []>} : vector<8x32xbf16>, vector<8x32xbf16>, vector<8x8xf32> -> vector<8x8xf32>
    "tpu.trace_stop"() : () -> ()
    %cst_87 = arith.constant dense<0xFF800000> : vector<8xf32>
    %239 = vector.multi_reduction <maximumf>, %238, %cst_87 [1] : vector<8x8xf32> to vector<8xf32>
    %240 = vector.shape_cast %239 : vector<8xf32> to vector<8x1xf32>
    %241 = vector.broadcast %240 : vector<8x1xf32> to vector<8x8xf32>
    %242 = arith.subf %238, %241 : vector<8x8xf32>
    %243 = math.exp %242 : vector<8x8xf32>
    %cst_88 = arith.constant dense<0.000000e+00> : vector<8xf32>
    %244 = vector.multi_reduction <add>, %243, %cst_88 [1] : vector<8x8xf32> to vector<8xf32>
    %245 = vector.shape_cast %244 : vector<8xf32> to vector<8x1xf32>
    %246 = tpu.reciprocal %245 {approx = true} : vector<8x1xf32> -> vector<8x1xf32>
    %247 = vector.broadcast %246 : vector<8x1xf32> to vector<8x8xf32>
    %248 = arith.mulf %243, %247 : vector<8x8xf32>
    %249 = arith.truncf %248 : vector<8x8xf32> to vector<8x8xbf16>
    %cst_89 = arith.constant dense<0.000000e+00> : vector<8x32xf32>
    %250 = tpu.matmul %249, %237, %cst_89 {dimension_numbers = #tpu.dot_dimension_numbers<[1], [0], [0], [1], [0, 0, 1, 1], [], []>} : vector<8x8xbf16>, vector<8x32xbf16>, vector<8x32xf32> -> vector<8x32xf32>
    %251 = tpu.concatenate %193, %212, %231, %250 in 1 : vector<8x32xf32>, vector<8x32xf32>, vector<8x32xf32>, vector<8x32xf32> -> vector<8x128xf32>
    %252 = arith.truncf %251 : vector<8x128xf32> to vector<8x128xbf16>
    %c1_90 = arith.constant 1 : index
    %c0_91 = arith.constant 0 : index
    %c0_92 = arith.constant 0 : index
    %253 = vector.load %arg4[%c1_90, %c0_91, %c0_92] : memref<2x128x128xbf16, #tpu.memory_space<vmem>>, vector<1x128x128xbf16>
    %254 = vector.shape_cast %253 : vector<1x128x128xbf16> to vector<128x128xbf16>
    %cst_93 = arith.constant dense<0.000000e+00> : vector<8x128xf32>
    %255 = tpu.matmul %252, %254, %cst_93 {dimension_numbers = #tpu.dot_dimension_numbers<[1], [0], [0], [1], [0, 0, 1, 1], [], []>} : vector<8x128xbf16>, vector<128x128xbf16>, vector<8x128xf32> -> vector<8x128xf32>
    %c1_94 = arith.constant 1 : index
    %c0_95 = arith.constant 0 : index
    %c0_96 = arith.constant 0 : index
    %256 = vector.load %arg5[%c1_94, %c0_95, %c0_96] : memref<2x1x128xf32, #tpu.memory_space<vmem>>, vector<1x1x128xf32>
    %257 = vector.shape_cast %256 : vector<1x1x128xf32> to vector<1x128xf32>
    %258 = vector.broadcast %257 : vector<1x128xf32> to vector<8x128xf32>
    %259 = arith.addf %255, %258 : vector<8x128xf32>
    %260 = arith.addf %166, %259 : vector<8x128xf32>
    %c1_97 = arith.constant 1 : index
    %c0_98 = arith.constant 0 : index
    %c0_99 = arith.constant 0 : index
    %261 = vector.load %arg6[%c1_97, %c0_98, %c0_99] : memref<2x1x128xf32, #tpu.memory_space<vmem>>, vector<1x1x128xf32>
    %262 = vector.shape_cast %261 : vector<1x1x128xf32> to vector<1x128xf32>
    %c1_100 = arith.constant 1 : index
    %c0_101 = arith.constant 0 : index
    %c0_102 = arith.constant 0 : index
    %263 = vector.load %arg7[%c1_100, %c0_101, %c0_102] : memref<2x1x128xf32, #tpu.memory_space<vmem>>, vector<1x1x128xf32>
    %264 = vector.shape_cast %263 : vector<1x1x128xf32> to vector<1x128xf32>
    %cst_103 = arith.constant dense<0.000000e+00> : vector<8xf32>
    %265 = vector.multi_reduction <add>, %260, %cst_103 [1] : vector<8x128xf32> to vector<8xf32>
    %266 = vector.shape_cast %265 : vector<8xf32> to vector<8x1xf32>
    %cst_104 = arith.constant 1.280000e+02 : f32
    %267 = vector.broadcast %cst_104 : f32 to vector<8x1xf32>
    %268 = arith.divf %266, %267 : vector<8x1xf32>
    %269 = vector.broadcast %268 : vector<8x1xf32> to vector<8x128xf32>
    %270 = arith.subf %260, %269 : vector<8x128xf32>
    %271 = arith.mulf %270, %270 : vector<8x128xf32>
    %cst_105 = arith.constant dense<0.000000e+00> : vector<8xf32>
    %272 = vector.multi_reduction <add>, %271, %cst_105 [1] : vector<8x128xf32> to vector<8xf32>
    %273 = vector.shape_cast %272 : vector<8xf32> to vector<8x1xf32>
    %cst_106 = arith.constant 1.280000e+02 : f32
    %274 = vector.broadcast %cst_106 : f32 to vector<8x1xf32>
    %275 = arith.divf %273, %274 : vector<8x1xf32>
    %276 = vector.broadcast %268 : vector<8x1xf32> to vector<8x128xf32>
    %277 = arith.subf %260, %276 : vector<8x128xf32>
    %cst_107 = arith.constant 9.99999974E-6 : f32
    %278 = vector.broadcast %cst_107 : f32 to vector<8x1xf32>
    %279 = arith.addf %275, %278 : vector<8x1xf32>
    %280 = math.rsqrt %279 : vector<8x1xf32>
    %281 = vector.broadcast %280 : vector<8x1xf32> to vector<8x128xf32>
    %282 = arith.mulf %277, %281 : vector<8x128xf32>
    %283 = vector.broadcast %262 : vector<1x128xf32> to vector<8x128xf32>
    %284 = arith.mulf %282, %283 : vector<8x128xf32>
    %285 = vector.broadcast %264 : vector<1x128xf32> to vector<8x128xf32>
    %286 = arith.addf %284, %285 : vector<8x128xf32>
    %287 = arith.truncf %286 : vector<8x128xf32> to vector<8x128xbf16>
    %c1_108 = arith.constant 1 : index
    %c0_109 = arith.constant 0 : index
    %c0_110 = arith.constant 0 : index
    %288 = vector.load %arg8[%c1_108, %c0_109, %c0_110] : memref<2x128x2048xbf16, #tpu.memory_space<vmem>>, vector<1x128x2048xbf16>
    %289 = vector.shape_cast %288 : vector<1x128x2048xbf16> to vector<128x2048xbf16>
    %cst_111 = arith.constant dense<0.000000e+00> : vector<8x2048xf32>
    %290 = tpu.matmul %287, %289, %cst_111 {dimension_numbers = #tpu.dot_dimension_numbers<[1], [0], [0], [1], [0, 0, 1, 1], [], []>} : vector<8x128xbf16>, vector<128x2048xbf16>, vector<8x2048xf32> -> vector<8x2048xf32>
    %c1_112 = arith.constant 1 : index
    %c0_113 = arith.constant 0 : index
    %c0_114 = arith.constant 0 : index
    %291 = vector.load %arg9[%c1_112, %c0_113, %c0_114] : memref<2x1x2048xf32, #tpu.memory_space<vmem>>, vector<1x1x2048xf32>
    %292 = vector.shape_cast %291 : vector<1x1x2048xf32> to vector<1x2048xf32>
    %293 = vector.broadcast %292 : vector<1x2048xf32> to vector<8x2048xf32>
    %294 = arith.addf %290, %293 : vector<8x2048xf32>
    %cst_115 = arith.constant 0.000000e+00 : f32
    %295 = vector.broadcast %cst_115 : f32 to vector<8x2048xf32>
    %296 = arith.maximumf %294, %295 : vector<8x2048xf32>
    %297 = arith.truncf %296 : vector<8x2048xf32> to vector<8x2048xbf16>
    %c1_116 = arith.constant 1 : index
    %c0_117 = arith.constant 0 : index
    %c0_118 = arith.constant 0 : index
    %298 = vector.load %arg10[%c1_116, %c0_117, %c0_118] : memref<2x2048x128xbf16, #tpu.memory_space<vmem>>, vector<1x2048x128xbf16>
    %299 = vector.shape_cast %298 : vector<1x2048x128xbf16> to vector<2048x128xbf16>
    %cst_119 = arith.constant dense<0.000000e+00> : vector<8x128xf32>
    %300 = tpu.matmul %297, %299, %cst_119 {dimension_numbers = #tpu.dot_dimension_numbers<[1], [0], [0], [1], [0, 0, 1, 1], [], []>} : vector<8x2048xbf16>, vector<2048x128xbf16>, vector<8x128xf32> -> vector<8x128xf32>
    %c1_120 = arith.constant 1 : index
    %c0_121 = arith.constant 0 : index
    %c0_122 = arith.constant 0 : index
    %301 = vector.load %arg11[%c1_120, %c0_121, %c0_122] : memref<2x1x128xf32, #tpu.memory_space<vmem>>, vector<1x1x128xf32>
    %302 = vector.shape_cast %301 : vector<1x1x128xf32> to vector<1x128xf32>
    %303 = vector.broadcast %302 : vector<1x128xf32> to vector<8x128xf32>
    %304 = arith.addf %300, %303 : vector<8x128xf32>
    %305 = arith.addf %286, %304 : vector<8x128xf32>
    %c1_123 = arith.constant 1 : index
    %c0_124 = arith.constant 0 : index
    %c0_125 = arith.constant 0 : index
    %306 = vector.load %arg12[%c1_123, %c0_124, %c0_125] : memref<2x1x128xf32, #tpu.memory_space<vmem>>, vector<1x1x128xf32>
    %307 = vector.shape_cast %306 : vector<1x1x128xf32> to vector<1x128xf32>
    %c1_126 = arith.constant 1 : index
    %c0_127 = arith.constant 0 : index
    %c0_128 = arith.constant 0 : index
    %308 = vector.load %arg13[%c1_126, %c0_127, %c0_128] : memref<2x1x128xf32, #tpu.memory_space<vmem>>, vector<1x1x128xf32>
    %309 = vector.shape_cast %308 : vector<1x1x128xf32> to vector<1x128xf32>
    %cst_129 = arith.constant dense<0.000000e+00> : vector<8xf32>
    %310 = vector.multi_reduction <add>, %305, %cst_129 [1] : vector<8x128xf32> to vector<8xf32>
    %311 = vector.shape_cast %310 : vector<8xf32> to vector<8x1xf32>
    %cst_130 = arith.constant 1.280000e+02 : f32
    %312 = vector.broadcast %cst_130 : f32 to vector<8x1xf32>
    %313 = arith.divf %311, %312 : vector<8x1xf32>
    %314 = vector.broadcast %313 : vector<8x1xf32> to vector<8x128xf32>
    %315 = arith.subf %305, %314 : vector<8x128xf32>
    %316 = arith.mulf %315, %315 : vector<8x128xf32>
    %cst_131 = arith.constant dense<0.000000e+00> : vector<8xf32>
    %317 = vector.multi_reduction <add>, %316, %cst_131 [1] : vector<8x128xf32> to vector<8xf32>
    %318 = vector.shape_cast %317 : vector<8xf32> to vector<8x1xf32>
    %cst_132 = arith.constant 1.280000e+02 : f32
    %319 = vector.broadcast %cst_132 : f32 to vector<8x1xf32>
    %320 = arith.divf %318, %319 : vector<8x1xf32>
    %321 = vector.broadcast %313 : vector<8x1xf32> to vector<8x128xf32>
    %322 = arith.subf %305, %321 : vector<8x128xf32>
    %cst_133 = arith.constant 9.99999974E-6 : f32
    %323 = vector.broadcast %cst_133 : f32 to vector<8x1xf32>
    %324 = arith.addf %320, %323 : vector<8x1xf32>
    %325 = math.rsqrt %324 : vector<8x1xf32>
    %326 = vector.broadcast %325 : vector<8x1xf32> to vector<8x128xf32>
    %327 = arith.mulf %322, %326 : vector<8x128xf32>
    %328 = vector.broadcast %307 : vector<1x128xf32> to vector<8x128xf32>
    %329 = arith.mulf %327, %328 : vector<8x128xf32>
    %330 = vector.broadcast %309 : vector<1x128xf32> to vector<8x128xf32>
    %331 = arith.addf %329, %330 : vector<8x128xf32>
    %332 = arith.truncf %331 : vector<8x128xf32> to vector<8x128xbf16>
    %c0_134 = arith.constant 0 : index
    %c0_135 = arith.constant 0 : index
    %333 = vector.load %arg14[%c0_134, %c0_135] : memref<128x128xbf16, #tpu.memory_space<vmem>>, vector<128x128xbf16>
    %cst_136 = arith.constant dense<0.000000e+00> : vector<8x128xf32>
    %334 = tpu.matmul %332, %333, %cst_136 {dimension_numbers = #tpu.dot_dimension_numbers<[1], [0], [0], [1], [0, 0, 1, 1], [], []>} : vector<8x128xbf16>, vector<128x128xbf16>, vector<8x128xf32> -> vector<8x128xf32>
    %c0_137 = arith.constant 0 : index
    %c0_138 = arith.constant 0 : index
    %335 = vector.load %arg15[%c0_137, %c0_138] : memref<1x128xf32, #tpu.memory_space<vmem>>, vector<1x128xf32>
    %336 = vector.broadcast %335 : vector<1x128xf32> to vector<8x128xf32>
    %337 = arith.addf %334, %336 : vector<8x128xf32>
    %c0_139 = arith.constant 0 : index
    %c0_140 = arith.constant 0 : index
    %c0_141 = arith.constant 0 : index
    %338 = vector.load %arg16[%c0_139, %c0_140, %c0_141] : memref<1x8x128xf32, #tpu.memory_space<vmem>>, vector<1x8x128xf32>
    %339 = vector.shape_cast %338 : vector<1x8x128xf32> to vector<8x128xf32>
    %340 = vector.shape_cast %337 : vector<8x128xf32> to vector<1x8x128xf32>
    tpu.vector_store %arg16[%c0_139, %c0_140, %c0_141], %340 {strides = array<i32>} : memref<1x8x128xf32, #tpu.memory_space<vmem>>, vector<1x8x128xf32>,
    return
  }
  func.func @transform_0(%arg0: i32) -> (i32, i32, i32) {
    %c0_i32 = arith.constant 0 : i32
    %c0_i32_0 = arith.constant 0 : i32
    %c0_i32_1 = arith.constant 0 : i32
    return %arg0, %c0_i32, %c0_i32_0 : i32, i32, i32
  }
  func.func @transform_1(%arg0: i32) -> (i32, i32, i32) {
    %c0_i32 = arith.constant 0 : i32
    %c0_i32_0 = arith.constant 0 : i32
    %c0_i32_1 = arith.constant 0 : i32
    %c0_i32_2 = arith.constant 0 : i32
    return %c0_i32, %c0_i32_0, %c0_i32_1 : i32, i32, i32
  }
  func.func @transform_2(%arg0: i32) -> (i32, i32, i32) {
    %c0_i32 = arith.constant 0 : i32
    %c0_i32_0 = arith.constant 0 : i32
    %c0_i32_1 = arith.constant 0 : i32
    %c0_i32_2 = arith.constant 0 : i32
    return %c0_i32, %c0_i32_0, %c0_i32_1 : i32, i32, i32
  }
  func.func @transform_3(%arg0: i32) -> (i32, i32, i32) {
    %c0_i32 = arith.constant 0 : i32
    %c0_i32_0 = arith.constant 0 : i32
    %c0_i32_1 = arith.constant 0 : i32
    %c0_i32_2 = arith.constant 0 : i32
    return %c0_i32, %c0_i32_0, %c0_i32_1 : i32, i32, i32
  }
  func.func @transform_4(%arg0: i32) -> (i32, i32, i32) {
    %c0_i32 = arith.constant 0 : i32
    %c0_i32_0 = arith.constant 0 : i32
    %c0_i32_1 = arith.constant 0 : i32
    %c0_i32_2 = arith.constant 0 : i32
    return %c0_i32, %c0_i32_0, %c0_i32_1 : i32, i32, i32
  }
  func.func @transform_5(%arg0: i32) -> (i32, i32, i32) {
    %c0_i32 = arith.constant 0 : i32
    %c0_i32_0 = arith.constant 0 : i32
    %c0_i32_1 = arith.constant 0 : i32
    %c0_i32_2 = arith.constant 0 : i32
    return %c0_i32, %c0_i32_0, %c0_i32_1 : i32, i32, i32
  }
  func.func @transform_6(%arg0: i32) -> (i32, i32, i32) {
    %c0_i32 = arith.constant 0 : i32
    %c0_i32_0 = arith.constant 0 : i32
    %c0_i32_1 = arith.constant 0 : i32
    %c0_i32_2 = arith.constant 0 : i32
    return %c0_i32, %c0_i32_0, %c0_i32_1 : i32, i32, i32
  }
  func.func @transform_7(%arg0: i32) -> (i32, i32, i32) {
    %c0_i32 = arith.constant 0 : i32
    %c0_i32_0 = arith.constant 0 : i32
    %c0_i32_1 = arith.constant 0 : i32
    %c0_i32_2 = arith.constant 0 : i32
    return %c0_i32, %c0_i32_0, %c0_i32_1 : i32, i32, i32
  }
  func.func @transform_8(%arg0: i32) -> (i32, i32, i32) {
    %c0_i32 = arith.constant 0 : i32
    %c0_i32_0 = arith.constant 0 : i32
    %c0_i32_1 = arith.constant 0 : i32
    %c0_i32_2 = arith.constant 0 : i32
    return %c0_i32, %c0_i32_0, %c0_i32_1 : i32, i32, i32
  }
  func.func @transform_9(%arg0: i32) -> (i32, i32, i32) {
    %c0_i32 = arith.constant 0 : i32
    %c0_i32_0 = arith.constant 0 : i32
    %c0_i32_1 = arith.constant 0 : i32
    %c0_i32_2 = arith.constant 0 : i32
    return %c0_i32, %c0_i32_0, %c0_i32_1 : i32, i32, i32
  }
  func.func @transform_10(%arg0: i32) -> (i32, i32, i32) {
    %c0_i32 = arith.constant 0 : i32
    %c0_i32_0 = arith.constant 0 : i32
    %c0_i32_1 = arith.constant 0 : i32
    %c0_i32_2 = arith.constant 0 : i32
    return %c0_i32, %c0_i32_0, %c0_i32_1 : i32, i32, i32
  }
  func.func @transform_11(%arg0: i32) -> (i32, i32, i32) {
    %c0_i32 = arith.constant 0 : i32
    %c0_i32_0 = arith.constant 0 : i32
    %c0_i32_1 = arith.constant 0 : i32
    %c0_i32_2 = arith.constant 0 : i32
    return %c0_i32, %c0_i32_0, %c0_i32_1 : i32, i32, i32
  }
  func.func @transform_12(%arg0: i32) -> (i32, i32, i32) {
    %c0_i32 = arith.constant 0 : i32
    %c0_i32_0 = arith.constant 0 : i32
    %c0_i32_1 = arith.constant 0 : i32
    %c0_i32_2 = arith.constant 0 : i32
    return %c0_i32, %c0_i32_0, %c0_i32_1 : i32, i32, i32
  }
  func.func @transform_13(%arg0: i32) -> (i32, i32) {
    %c0_i32 = arith.constant 0 : i32
    %c0_i32_0 = arith.constant 0 : i32
    %c0_i32_1 = arith.constant 0 : i32
    return %c0_i32, %c0_i32_0 : i32, i32
  }
  func.func @transform_14(%arg0: i32) -> (i32, i32) {
    %c0_i32 = arith.constant 0 : i32
    %c0_i32_0 = arith.constant 0 : i32
    %c0_i32_1 = arith.constant 0 : i32
    return %c0_i32, %c0_i32_0 : i32, i32
  }
  func.func @transform_15(%arg0: i32) -> (i32, i32, i32) {
    %c0_i32 = arith.constant 0 : i32
    %c0_i32_0 = arith.constant 0 : i32
    %c0_i32_1 = arith.constant 0 : i32
    return %arg0, %c0_i32, %c0_i32_0 : i32, i32, i32
  }
}

</mosaic_0001>

<bundles_post_ra>
// kernel: _forward_padded.1
= control target key start
LH: loop header
LB: loop body
LE: loop exit
PB: predicated region body
PF: predicated region fallthrough
CT: control target
= control target key end

     0   :  { %s10595_s0 = inlined_call_operand.vmem [shape: f32[2,8,128], index: 0, kind: input, shape index: {}]   ;;  %s10596_s1 = inlined_call_operand.hbm [shape: bf16[2,128,384], index: 1, kind: input, shape index: {}]   ;;  %s10597_s2 = inlined_call_operand.hbm [shape: f32[2,1,384], index: 2, kind: input, shape index: {}]   ;;  %s10598_s3 = inlined_call_operand.vmem [shape: bf16[2,128,128], index: 3, kind: input, shape index: {}]   ;;  %s10599_s4 = inlined_call_operand.vmem [shape: f32[2,1,128], index: 4, kind: input, shape index: {}]   ;;  %s10600_s5 = inlined_call_operand.hbm [shape: f32[2,1,128], index: 5, kind: input, shape index: {}]   ;;  %s10601_s6 = inlined_call_operand.hbm [shape: f32[2,1,128], index: 6, kind: input, shape index: {}]   ;;  %s10602_s7 = inlined_call_operand.hbm [shape: bf16[2,128,2048], index: 7, kind: input, shape index: {}]   ;;  %s10603_s8 = inlined_call_operand.vmem [shape: f32[2,1,2048], index: 8, kind: input, shape index: {}]   ;;  %s10604_s9 = inlined_call_operand.hbm [shape: bf16[2,2048,128], index: 9, kind: input, shape index: {}]   ;;  %s10605_s10 = inlined_call_operand.vmem [shape: f32[2,1,128], index: 10, kind: input, shape index: {}]   ;;  %s10606_s11 = inlined_call_operand.vmem [shape: f32[2,1,128], index: 11, kind: input, shape index: {}]   ;;  %s10607_s12 = inlined_call_operand.vmem [shape: f32[2,1,128], index: 12, kind: input, shape index: {}]   ;;  %s10608_s13 = inlined_call_operand.vmem [shape: bf16[128,128], index: 13, kind: input, shape index: {}]   ;;  %s10609_s14 = inlined_call_operand.vmem [shape: f32[1,128], index: 14, kind: input, shape index: {}]   ;;  %s10610_s15 = inlined_call_operand.hbm [shape: f32[2,8,128], index: 15, kind: output, shape index: {}]  }
   0x1   :  { %10628 = sst [smem:[#allocation27_spill]] %s10597_s2 }
   0x2   :  { %10629 = sst [smem:[#allocation28_spill]] %s10607_s12 }
   0x3   :  { %10630 = sst [smem:[#allocation29_spill]] %s10608_s13 }
   0x4   :  { %10631 = sst [smem:[#allocation30_spill]] %s10609_s14 }
   0x5   :  { %10632 = sst [smem:[#allocation31_spill]] %s10610_s15 }
   0x6   :  { %20 = vsyncpa [#allocation3], 0 }
   0x7   :  { %21 = vsyncpa [#allocation6], 0 }
   0x8   :  { %22 = vsyncpa [#allocation9], 0 }
   0x9   :  { %23 = vsyncpa [#allocation12], 0 }
   0xa   :  { %24 = vsyncpa [#allocation4], 0 }
   0xb   :  { %26 = vsyncpa [#allocation4 + $0x1], 0  ;;  %s9868_s18 = smov 0   ;;  %s9870_s19 = smov 0  }
   0xc   :  { %s9872_s20 = smov 0   ;;  %s9874_s21 = smov 0  }
   0xd LB: > { %10633 = sst [smem:[#allocation19_spill]] %s9752_s18  ;;  %s9889_s22 = sadd.s32 4294967295, %s9764_s21   ;;  %s9764_s21 = sphi %s9874_s21, %s10669_s21   ;;  %s9760_s20 = sphi %s9872_s20, %s10672_s20   ;;  %s9756_s19 = sphi %s9870_s19, %s10671_s19   ;;  %s9752_s18 = sphi %s9868_s18, %s10670_s18  }
   0xe   : > { %10634 = sst [smem:[#allocation20_spill]] %s9756_s19  ;;  %s7736_s23 = sadd.s32 4294967294, %s9764_s21  }
   0xf   : > { %10635 = sst [smem:[#allocation21_spill]] %s9760_s20  ;;  %s9893_s24 = sadd.s32 1, %s9764_s21  }
  0x10   : > { %10636 = sst [smem:[#allocation22_spill]] %s9764_s21  ;;  %s359_s25 = sadd.s32 1, %s9760_s20 }
  0x11   : > { %10637 = sst [smem:[#allocation23_spill]] %s9893_s24  ;;  %s356_s26 = ssub.s32 %s9764_s21, %s9893_s24 }
  0x12   : > { %p369_p0 = scmp.ne.s32.totalorder %s9760_s20, %s9756_s19  ;;  %p357_p1 = scmp.eq.s32.totalorder %s356_s26, 0 }
  0x13   : > { %p370_p2 = scmp.eq.s32.totalorder %s9889_s22, 1  ;;  %p375_p3 = scmp.ne.s32.totalorder %s9756_s19, %s9752_s18 }
  0x14   : > { %p376_p4 = scmp.eq.s32.totalorder %s7736_s23, 1  ;;  %p7737_p7 = scmp.ge.s32.totalorder %s9764_s21, 1 }
  0x15   : > { %s9904_s27 = scalar_select %p357_p1, %s9760_s20, %s359_s25  }
  0x16   : > { %p9906_p5 = por %p370_p2, %p369_p0  ;;  %p9910_p6 = por %p376_p4, %p375_p3 }
  0x17   : > { %10638 = sst [smem:[#allocation24_spill]] %s9904_s27  ;;  %p383_p8 = scmp.lt.s32.totalorder %s9764_s21, 3 }
  0x18   : > { %s10639_s28 = scalar_select %p9906_p5, 1, 0 }
  0x19   : > { %s10641_s29 = scalar_select %p9910_p6, 1, 0 }
  0x1a   : > { %10640 = sst [smem:[#allocation25_spill]] %s10639_s28  ;;  %p10618_p9 = scmp.eq.s32.totalorder %s9889_s22, 0 }
  0x1b   : > { %10642 = sst [smem:[#allocation26_spill]] %s10641_s29  ;;  %p9917_p10 = pnand %p7737_p7, %p383_p8 }
  0x1c   : > { %s9766_s16 = smov [#allocation5]   ;;  %s9767_s25 = smov [#allocation8]  }
  0x1d   : > { %s10643_s30 = scalar_select %p9917_p10, 1, 0 }
  0x1e   : > { %s408_s17 = sshll.u32 %s9766_s16, 4  ;;  %p9044_p11 = pneg %p9917_p10  ;;  %s409_s17 = int_to_ptr.vmem [resolvable:$true] %s408_s17 }
  0x1f   : > { %s440_s26 = sshll.u32 %s9767_s25, 4  ;;  %s10645_s2 = sld [smem:[#allocation27_spill]]  ;;  %s441_s26 = int_to_ptr.vmem [resolvable:$true] %s440_s26 }
  0x20   : > { %p9925_p12 = pnand %p10618_p9, %p9044_p11 }
  0x22   : > { %p9937_p0 = pneg %p9925_p12 }
  0x25   : > { %s9518_s24 = scalar_lea.hbm %s10645_s2, 96 }
  0x26   : > { %p9519_p13 = scmp.ne.s32.totalorder %s10645_s2, %s9518_s24  ;;  %p9525_p3 = scmp.lt.u32.totalorder %s9518_s24, %s10645_s2 }
  0x28   : > { %p9521_p1 = pnand %p9937_p0, %p9519_p13 }
  0x2a   : > { %p9522_p2 = pneg %p9521_p1 }
  0x2c   : > { %p9527_p4 = pnand %p9525_p3, %p9522_p2 }
  0x2e   : > { %9530 = shalt.err (!%p9527_p4)
}
  0x2f   : > { %s9531_s20 = scalar_lea.vmem %s409_s17, 96  ;;  %p9539_p9 = scmp.lt.s32.totalorder %s409_s17, %s409_s17 }
  0x30   : > { %p9532_p7 = scmp.ne.s32.totalorder %s409_s17, %s9531_s20  ;;  %p9540_p6 = scmp.lt.s32.totalorder %s9531_s20, %s9531_s20 }
  0x32   : > { %p9534_p8 = pnand %p9532_p7, %p9937_p0  ;;  %p9541_p5 = por %p9540_p6, %p9539_p9 }
  0x34   : > { %p9535_p11 = pneg %p9534_p8 }
  0x36   : > { %p9542_p10 = pnand %p9541_p5, %p9535_p11 }
  0x38   : > { %9545 = shalt.err (!%p9542_p10)
}
  0x39   : > { %s9768_s18 = smov 48   ;;  %s9769_s27 = smov 3  }
  0x3a   : > { %9050 = dma.hbm_to_vmem [thread:$0]  (!%p9925_p12), %s10645_s2, 96, %s409_s17, [#allocation6], %s9768_s18, %s9768_s18, %s9769_s27  }
  0x3b   : > { %s9770_s24 = smov [#allocation2]   ;;  %s9546_s14 = scalar_lea.hbm %s10601_s6, 32 }
  0x3c   : > { %s395_s29 = sshll.u32 %s9770_s24, 4  ;;  %p9547_p5 = scmp.ne.s32.totalorder %s10601_s6, %s9546_s14  ;;  %s396_s29 = int_to_ptr.vmem [resolvable:$true] %s395_s29 }
  0x3d   : > { %p9553_p10 = scmp.lt.u32.totalorder %s9546_s14, %s10601_s6 }
  0x3e   : > { %p9549_p6 = pnand %p9547_p5, %p9937_p0 }
  0x40   : > { %p9550_p9 = pneg %p9549_p6 }
  0x42   : > { %p9555_p13 = pnand %p9553_p10, %p9550_p9 }
  0x44   : > { %9558 = shalt.err (!%p9555_p13)
}
  0x45   : > { %s9559_s17 = scalar_lea.vmem %s441_s26, 32  ;;  %p9567_p4 = scmp.lt.s32.totalorder %s441_s26, %s441_s26 }
  0x46   : > { %p9560_p1 = scmp.ne.s32.totalorder %s441_s26, %s9559_s17  ;;  %p9568_p7 = scmp.lt.s32.totalorder %s9559_s17, %s9559_s17 }
  0x48   : > { %p9562_p2 = pnand %p9560_p1, %p9937_p0  ;;  %p9569_p8 = por %p9568_p7, %p9567_p4 }
  0x4a   : > { %p9563_p3 = pneg %p9562_p2 }
  0x4c   : > { %p9570_p11 = pnand %p9569_p8, %p9563_p3 }
  0x4e   : > { %9573 = shalt.err (!%p9570_p11)
}
  0x4f   : > { %s10626_s19 = smov 16   ;;  %s10627_s28 = smov 1  }
  0x50   : > { %9056 = dma.hbm_to_vmem [thread:$0]  (!%p9925_p12), %s10601_s6, 32, %s441_s26, [#allocation9], %s10626_s19, %s10626_s19, %s10627_s28  }
  0x51   : > { %s9574_s27 = scalar_lea.hbm %s10596_s1, 6144 }
  0x52   : > { %p9575_p5 = scmp.ne.s32.totalorder %s10596_s1, %s9574_s27  ;;  %p9581_p10 = scmp.lt.u32.totalorder %s9574_s27, %s10596_s1 }
  0x54   : > { %p9577_p6 = pnand %p9575_p5, %p9937_p0 }
  0x56   : > { %p9578_p9 = pneg %p9577_p6 }
  0x58   : > { %p9583_p13 = pnand %p9581_p10, %p9578_p9 }
  0x5a   : > { %9586 = shalt.err (!%p9583_p13)
}
  0x5b   : > { %s9587_s20 = scalar_lea.vmem %s396_s29, 6144  ;;  %p9595_p4 = scmp.lt.s32.totalorder %s396_s29, %s396_s29 }
  0x5c   : > { %p9588_p1 = scmp.ne.s32.totalorder %s396_s29, %s9587_s20  ;;  %p9596_p7 = scmp.lt.s32.totalorder %s9587_s20, %s9587_s20 }
  0x5e   : > { %p9590_p2 = pnand %p9588_p1, %p9937_p0  ;;  %p9597_p8 = por %p9596_p7, %p9595_p4 }
  0x60   : > { %p9591_p3 = pneg %p9590_p2 }
  0x62   : > { %p9598_p11 = pnand %p9597_p8, %p9591_p3 }
  0x64   : > { %9601 = shalt.err (!%p9598_p11)
}
  0x65   : > { %s9773_s26 = smov 192   ;;  %s9774_s17 = smov 12  }
  0x66   : > { %9047 = dma.hbm_to_vmem [thread:$0]  (!%p9925_p12), %s10596_s1, 6144, %s396_s29, [#allocation3], %s9773_s26, %s9773_s26, %s9774_s17  }
  0x67   : > { %s9775_s14 = smov [#allocation7]   ;;  %s9776_s27 = smov [#allocation10]  }
  0x68   : > { %s427_s18 = sshll.u32 %s9775_s14, 4  ;;  %s453_s15 = sshll.u32 %s9776_s27, 4  ;;  %s428_s18 = int_to_ptr.vmem [resolvable:$true] %s427_s18  ;;  %s454_s15 = int_to_ptr.vmem [resolvable:$true] %s453_s15 }
  0x69   : > { %s9602_s25 = scalar_lea.hbm %s10600_s5, 32 }
  0x6a   : > { %p9603_p5 = scmp.ne.s32.totalorder %s10600_s5, %s9602_s25  ;;  %p9609_p10 = scmp.lt.u32.totalorder %s9602_s25, %s10600_s5 }
  0x6c   : > { %p9605_p6 = pnand %p9603_p5, %p9937_p0 }
  0x6e   : > { %p9606_p9 = pneg %p9605_p6 }
  0x70   : > { %p9611_p13 = pnand %p9609_p10, %p9606_p9 }
  0x72   : > { %9614 = shalt.err (!%p9611_p13)
}
  0x73   : > { %s9615_s29 = scalar_lea.vmem %s428_s18, 32  ;;  %p9623_p4 = scmp.lt.s32.totalorder %s428_s18, %s428_s18 }
  0x74   : > { %p9616_p1 = scmp.ne.s32.totalorder %s428_s18, %s9615_s29  ;;  %p9624_p7 = scmp.lt.s32.totalorder %s9615_s29, %s9615_s29 }
  0x76   : > { %p9618_p2 = pnand %p9616_p1, %p9937_p0  ;;  %p9625_p8 = por %p9624_p7, %p9623_p4 }
  0x78   : > { %p9619_p3 = pneg %p9618_p2 }
  0x7a   : > { %p9626_p11 = pnand %p9625_p8, %p9619_p3 }
  0x7c   : > { %9629 = shalt.err (!%p9626_p11)
}
  0x7d   : > { %s10647_s19 = smov 1   ;;  %s10648_s26 = smov 16  }
  0x7e   : > { %9053 = dma.hbm_to_vmem [thread:$0]  (!%p9925_p12), %s10600_s5, 32, %s428_s18, [#allocation6], %s10648_s26, %s10648_s26, %s10647_s19  }
  0x7f   : > { %s9630_s13 = scalar_lea.hbm %s10602_s7, 32768 }
  0x80   : > { %p9631_p5 = scmp.ne.s32.totalorder %s10602_s7, %s9630_s13  ;;  %p9637_p10 = scmp.lt.u32.totalorder %s9630_s13, %s10602_s7 }
  0x82   : > { %p9633_p6 = pnand %p9631_p5, %p9937_p0 }
  0x84   : > { %p9634_p9 = pneg %p9633_p6 }
  0x86   : > { %p9639_p13 = pnand %p9637_p10, %p9634_p9 }
  0x88   : > { %9642 = shalt.err (!%p9639_p13)
}
  0x89   : > { %s9643_s25 = scalar_lea.vmem %s454_s15, 32768  ;;  %p9651_p4 = scmp.lt.s32.totalorder %s454_s15, %s454_s15 }
  0x8a   : > { %p9644_p1 = scmp.ne.s32.totalorder %s454_s15, %s9643_s25  ;;  %p9652_p7 = scmp.lt.s32.totalorder %s9643_s25, %s9643_s25 }
  0x8c   : > { %p9646_p2 = pnand %p9644_p1, %p9937_p0  ;;  %p9653_p8 = por %p9652_p7, %p9651_p4 }
  0x8e   : > { %p9647_p3 = pneg %p9646_p2 }
  0x90   : > { %p9654_p11 = pnand %p9653_p8, %p9647_p3 }
  0x92   : > { %9657 = shalt.err (!%p9654_p11)
}
  0x93   : > { %s9777_s18 = smov 1024   ;;  %s9778_s20 = smov 64  }
  0x94   : > { %9059 = dma.hbm_to_vmem [thread:$0]  (!%p9925_p12), %s10602_s7, 32768, %s454_s15, [#allocation9], %s9777_s18, %s9777_s18, %s9778_s20  }
  0x95   : > { %s9779_s26 = smov [#allocation11]   ;;  %s9658_s12 = scalar_lea.hbm %s10604_s9, 32768 }
  0x96   : > { %s469_s2 = sshll.u32 %s9779_s26, 4  ;;  %p9659_p5 = scmp.ne.s32.totalorder %s10604_s9, %s9658_s12  ;;  %s470_s2 = int_to_ptr.vmem [resolvable:$true] %s469_s2 }
  0x97   : > { %p9665_p10 = scmp.lt.u32.totalorder %s9658_s12, %s10604_s9 }
  0x98   : > { %p9661_p6 = pnand %p9659_p5, %p9937_p0 }
  0x9a   : > { %p9662_p9 = pneg %p9661_p6 }
  0x9c   : > { %p9667_p13 = pnand %p9665_p10, %p9662_p9 }
  0x9e   : > { %9670 = shalt.err (!%p9667_p13)
}
  0x9f   : > { %s9671_s15 = scalar_lea.vmem %s470_s2, 32768  ;;  %p9679_p4 = scmp.lt.s32.totalorder %s470_s2, %s470_s2 }
  0xa0   : > { %p9672_p1 = scmp.ne.s32.totalorder %s470_s2, %s9671_s15  ;;  %p9680_p7 = scmp.lt.s32.totalorder %s9671_s15, %s9671_s15 }
  0xa2   : > { %p9674_p2 = pnand %p9672_p1, %p9937_p0  ;;  %p9681_p8 = por %p9680_p7, %p9679_p4 }
  0xa4   : > { %p9675_p3 = pneg %p9674_p2 }
  0xa6   : > { %p9682_p11 = pnand %p9681_p8, %p9675_p3 }
  0xa8   : > { %9685 = shalt.err (!%p9682_p11)
}
  0xa9   : > { %s9780_s24 = smov 4   ;;  %p10649_p5 = scmp.ne.s32.totalorder %s10643_s30, 0 }
  0xaa   : > { %9062 = dma.hbm_to_vmem [thread:$0]  (!%p9925_p12), %s10604_s9, 32768, %s470_s2, [#allocation12], %s9778_s20, %s9778_s20, %s9780_s24  }
  0xab   : > { %507 = sbr.rel (%p10649_p5) target bundleno = 6058 (0x17aa), region = 80  ;;  %p10650_p6 = scmp.eq.s32.totalorder (!%p10649_p5), %s9889_s22, 0 }
  0xb2   : > { %9731 = dma.done.wait (%p10650_p6), [#allocation3], 6144   ;;  %p10651_p0 = pmov %p10650_p6 }
  0xb4   : > { %9733 = vsyncadd (%p10651_p0), [#allocation3], 4294961152  ;;  %p10652_p9 = pmov %p10651_p0 }
  0xb5   : > { %p10653_p10 = pmov %p10651_p0 }
  0xb6   : > { %9735 = dma.done.wait (%p10652_p9), [#allocation6], 128  }
  0xb7   : > { %9737 = vsyncadd (%p10653_p10), [#allocation6], 4294967168  ;;  %p10654_p13 = pmov %p10651_p0 }
  0xb8   : > { %p10655_p12 = pmov %p10651_p0 }
  0xb9   : > { %9739 = dma.done.wait (%p10654_p13), [#allocation9], 32800  }
  0xba   : > { %9741 = vsyncadd (%p10655_p12), [#allocation9], 4294934496  ;;  %p10656_p1 = pmov %p10651_p0 }
  0xbb   : > { %p10657_p2 = pmov %p10651_p0 }
  0xbc   : > { %9743 = dma.done.wait (%p10656_p1), [#allocation12], 32768  }
  0xbd   : > { %9745 = vsyncadd (%p10657_p2), [#allocation12], 4294934528  ;;  %v9781_v0 = vmov 0   ;;  %v9133_v1 = vld [vmem:[#allocation2 + $0x4] ss:$12 sps:$4 sm:$0xff]   ;;  %p574_p3 = scmp.lt.s32.totalorder %s9889_s22, 1  ;;  %v615_v20 = vlaneseq }
  0xbe   : > { %790 = vmatprep.mubr.bf16.mxu0 %v9781_v0  ;;  %v9135_v2 = vld [vmem:[#allocation2] ss:$12 sps:$4 sm:$0xff]   ;;  %758 = vmatprep.subr.bf16.mxu0 %v9133_v1  ;;  %v9136_v3 = vld [vmem:[#allocation2 + $0x1c] ss:$12 sps:$4 sm:$0xff]   ;;  %v9138_v4 = vld [vmem:[#allocation2 + $0x18] ss:$12 sps:$4 sm:$0xff]  }
  0xbf   : > { %759 = vmatpush1.bf16.msra.mxu0 %v9135_v2  ;;  %v9139_v5 = vld [vmem:[#allocation2 + $0x34] ss:$12 sps:$4 sm:$0xff]   ;;  %s575_s30 = scalar_select %p574_p3, %s9889_s22, 1  ;;  %v9141_v6 = vld [vmem:[#allocation2 + $0x30] ss:$12 sps:$4 sm:$0xff]   ;;  %v9782_v19 = vmov 0.0  }
  0xc0   : > { %760 = vmatprep.subr.bf16.mxu0 %v9136_v3  ;;  %v9142_v7 = vld [vmem:[#allocation2 + $0x4c] ss:$12 sps:$4 sm:$0xff]   ;;  %v9144_v8 = vld [vmem:[#allocation2 + $0x48] ss:$12 sps:$4 sm:$0xff]   ;;  %v9145_v9 = vld [vmem:[#allocation2 + $0x64] ss:$12 sps:$4 sm:$0xff]   ;;  %8822 = vmatprep.subr.bf16.mxu1 %v9782_v19 }
  0xc1   : > { %s7753_s23 = sshll.u32 %s575_s30, 3  ;;  %v9147_v10 = vld [vmem:[#allocation2 + $0x60] ss:$12 sps:$4 sm:$0xff]   ;;  %v9148_v11 = vld [vmem:[#allocation2 + $0x7c] ss:$12 sps:$4 sm:$0xff]   ;;  %vm9783_vm0 = vmmov 0  }
  0xc2   : > { %v9150_v12 = vld [vmem:[#allocation2 + $0x78] ss:$12 sps:$4 sm:$0xff]   ;;  %v9151_v13 = vld [vmem:[#allocation2 + $0x94] ss:$12 sps:$4 sm:$0xff]   ;;  %v9153_v14 = vld [vmem:[#allocation2 + $0x90] ss:$12 sps:$4 sm:$0xff]   ;;  %s10073_s29 = scalar_lea.vmem %s10595_s0, %s7753_s23  ;;  %8838 = vmatprep.mubr.msk.bf16.mxu1 %vm9783_vm0, %v9782_v19 }
  0xc3   : > { %761 = vmatpush1.bf16.msra.mxu0 %v9138_v4  ;;  %v9154_v15 = vld [vmem:[#allocation2 + $0xac] ss:$12 sps:$4 sm:$0xff]   ;;  %v9156_v16 = vld [vmem:[#allocation2 + $0xa8] ss:$12 sps:$4 sm:$0xff]   ;;  %v579_v17 = vld [vmem:[%s10073_s29] sm:$0xff]  ;;  %v10085_v21 = vshrl.u32 %v615_v20, 7 }
  0xc4   : > { %762 = vmatprep.subr.bf16.mxu0 %v9139_v5  ;;  %v10076_v18 = vpack.c.bf16 %v579_v17, %v579_v17  ;;  %v10090_v23 = vld [vmem:[#allocation5] sm:$0x7]  ;;  %vm842_vm1 = vcmask 261120   ;;  %s9784_s19 = smov 64   ;;  %s9785_s26 = smov 96   ;;  %vm889_vm2 = vcmask 64512  }
  0xc5   : > { %v10088_v22 = vsub.s32 1, %v10085_v21  ;;  %v10093_v24 = vsub.s32 0, %v10085_v21  ;;  %s9786_s2 = smov 32   ;;  %v9157_v36 = vld [vmem:[#allocation2 + $0x8] ss:$12 sps:$4 sm:$0xff]   ;;  %v10138_v58 = vsub.s32 2, %v10085_v21 }
  0xc6   : > { %8823 = vmatpush3.bf16.msra.mxu1 %v9157_v36  ;;  %v9158_v37 = vld [vmem:[#allocation2 + $0x20] ss:$12 sps:$4 sm:$0xff]   ;;  %v9159_v38 = vld [vmem:[#allocation2 + $0x38] ss:$12 sps:$4 sm:$0xff]   ;;  %v9160_v39 = vld [vmem:[#allocation2 + $0x50] ss:$12 sps:$4 sm:$0xff]  }
  0xc7   : > { %763 = vmatpush1.bf16.msra.mxu0 %v9141_v6  ;;  %v622_v25 = vrot.slane %v10090_v23, %v10088_v22  ;;  %v618_v26 = vrot.slane %v10090_v23, %v10093_v24  ;;  %8824 = vmatprep.subr.bf16.mxu1 %v9782_v19  ;;  %v9161_v40 = vld [vmem:[#allocation2 + $0x68] ss:$12 sps:$4 sm:$0xff]   ;;  %v9162_v41 = vld [vmem:[#allocation2 + $0x80] ss:$12 sps:$4 sm:$0xff]   ;;  %v9163_v42 = vld [vmem:[#allocation2 + $0x98] ss:$12 sps:$4 sm:$0xff]   ;;  %v626_v59 = vrot.slane %v10090_v23, %v10138_v58 }
  0xc8   : > { %764 = vmatprep.subr.bf16.mxu0 %v9142_v7  ;;  %v9164_v44 = vld [vmem:[#allocation2 + $0xb0] ss:$12 sps:$4 sm:$0xff]   ;;  %vm905_vm3 = vcmask 1043456   ;;  %vm1295_vm4 = vcmask 523264   ;;  %vm1297_vm5 = vcmask 785408   ;;  %s10658_s23 = sld [smem:[#allocation28_spill]] }
  0xc9   : > { %s10659_s27 = sld [smem:[#allocation29_spill]]  ;;  %s10661_s16 = sld [smem:[#allocation30_spill]] }
  0xca   : > { %8825 = vmatpush3.bf16.msra.mxu1 %v9158_v37  ;;  %s10663_s12 = sld [smem:[#allocation31_spill]]  ;;  %s9787_s14 = smov [#allocation13]  }
  0xcb   : > { %765 = vmatpush1.bf16.msra.mxu0 %v9144_v8  ;;  %8826 = vmatprep.subr.bf16.mxu1 %v9782_v19  ;;  %s9690_s21 = sshll.u32 %s9787_s14, 4  ;;  %s9691_s21 = int_to_ptr.vmem [resolvable:$false] %s9690_s21 }
  0xcc   : > { %766 = vmatprep.subr.bf16.mxu0 %v9145_v9  ;;  %s9692_s15 = scalar_lea.vmem %s9691_s21, 256 }
  0xce   : > { %8827 = vmatpush3.bf16.msra.mxu1 %v9159_v38 }
  0xcf   : > { %767 = vmatpush1.bf16.msra.mxu0 %v9147_v10  ;;  %8828 = vmatprep.subr.bf16.mxu1 %v9782_v19 }
  0xd0   : > { %768 = vmatprep.subr.bf16.mxu0 %v9148_v11 }
  0xd2   : > { %8829 = vmatpush3.bf16.msra.mxu1 %v9160_v39 }
  0xd3   : > { %769 = vmatpush1.bf16.msra.mxu0 %v9150_v12  ;;  %8830 = vmatprep.subr.bf16.mxu1 %v9782_v19 }
  0xd4   : > { %770 = vmatprep.subr.bf16.mxu0 %v9151_v13 }
  0xd6   : > { %8831 = vmatpush3.bf16.msra.mxu1 %v9161_v40 }
  0xd7   : > { %771 = vmatpush1.bf16.msra.mxu0 %v9153_v14  ;;  %8832 = vmatprep.subr.bf16.mxu1 %v9782_v19 }
  0xd8   : > { %772 = vmatprep.subr.bf16.mxu0 %v9154_v15 }
  0xda   : > { %8833 = vmatpush3.bf16.msra.mxu1 %v9162_v41 }
  0xdb   : > { %773 = vmatpush1.bf16.msra.mxu0 %v9156_v16  ;;  %8834 = vmatprep.subr.bf16.mxu1 %v9782_v19 }
  0xdc   : > { %8842 = vmatprep.subr.bf16.mxu0 %v9782_v19 }
  0xde   : > { %791 = vmatmul.mubr.bf16.vlgmr.msra.gmra.mrb[0].mxu0 %v10076_v18  ;;  %8835 = vmatpush3.bf16.msra.mxu1 %v9163_v42 }
  0xdf   : > { %8844 = vmatprep.mubr.msk.bf16.mxu0 %vm9783_vm0, %v9782_v19  ;;  %8836 = vmatprep.subr.bf16.mxu1 %v9782_v19 }
  0xe2   : > { %8837 = vmatpush3.bf16.msra.mxu1 %v9164_v44 }
  0xe3   : > { %8848 = vmatprep.subr.bf16.mxu1 %v9782_v19 }
  0xe5   : > { %8839 = vmatmul.mubr.bf16.vlgmr.msra.gmra.mrb[0].mxu1 %v10076_v18 }
  0xe6   : > { %8850 = vmatprep.mubr.msk.bf16.mxu1 %vm9783_vm0, %v9782_v19 }
 0x1b1   : > { %v792_v27 = vpop.f32.mrb[0].mxu0 }
 0x1b2   : > { %v794_v28 = vpop.f32.mrb[1].mxu0  ;;  %v793_v32 = vadd.f32 %v792_v27, %v618_v26 }
 0x1b3   : > { %v795_v29 = vadd.f32 %v794_v28, %v622_v25  ;;  %v796_v30 = vpop.f32.mrb[2].mxu0 }
 0x1b4   : > { %v797_v31 = vpop.f32.mrb[3].mxu0  ;;  %v839_v35 = vpack.c.bf16 %v793_v32, %v793_v32 }
 0x1b5   : > { %v840_v33 = vpack.c.bf16 %v795_v29, %v795_v29 }
 0x1b7   : > { %1064 = vrot.lane.b32.xlu1 %v840_v33, %s9784_s19  ;;  %953 = vrot.lane.b32.xlu0 %v840_v33, %s9785_s26  ;;  %v847_v34 = vsel %vm842_vm1, %v840_v33, 0 }
 0x1b8   : > { %8843 = vmatpush3.bf16.xpose.msra.mxu0 %v847_v34  ;;  %v833_v60 = vpop.f32.mrb[0].mxu1 }
 0x1b9   : > { %8854 = vmatprep.subr.bf16.mxu0 %v9782_v19  ;;  %v834_v61 = vadd.f32 %v833_v60, %v626_v59  ;;  %v8840_v62 = vpop.f32.mrb[1].mxu1 }
 0x1ba   : > { %v836_v1 = vpop.f32.mrb[2].mxu1 }
 0x1bb   : > { %1062 = vrot.lane.b32.xlu1 %v839_v35, %s9784_s19  ;;  %950 = vrot.lane.b32.xlu0 %v839_v35, %s9785_s26  ;;  %v841_v4 = vpack.c.bf16 %v834_v61, %v834_v61  ;;  %v8841_v5 = vpop.f32.mrb[3].mxu1 }
 0x1bd   : > { %v907_v8 = vsel %vm905_vm3, %v841_v4, 0 }
 0x1be   : > { %8849 = vmatpush3.bf16.msra.mxu1 %v907_v8  ;;  %v9166_v8 = vld [vmem:[%s10598_s3 + $0x8] sm:$0xff]  }
 0x1bf   : > { %1172 = vrot.lane.b32.xlu1 %v839_v35, %s9786_s2  ;;  %1174 = vrot.lane.b32.xlu0 %v840_v33, %s9786_s2 }
 0x1c0   : > { %8845 = vmatmul.mubr.msk.bf16.vlgmr.msra.gmra.mrb[4].mxu0 %vm842_vm1, %v839_v35  ;;  %8860 = vmatprep.subr.bf16.mxu1 %v9782_v19 }
 0x1c1   : > { %8856 = vmatprep.mubr.msk.bf16.mxu0 %vm9783_vm0, %v9782_v19 }
 0x229   : > { %v954_v43 = vpop.permute.xlu0 %953  ;;  %v1065_v46 = vpop.permute.xlu1 %1064 }
 0x22a   : > { %v959_v45 = vsel %vm842_vm1, %v954_v43, 0  ;;  %v1070_v48 = vsel %vm842_vm1, %v1065_v46, 0 }
 0x22b   : > { %8855 = vmatpush3.bf16.xpose.msra.mxu0 %v959_v45 }
 0x22c   : > { %8866 = vmatprep.subr.bf16.mxu0 %v9782_v19 }
 0x22d   : > { %v951_v47 = vpop.permute.xlu0 %950  ;;  %v1063_v50 = vpop.permute.xlu1 %1062 }
 0x231   : > { %v1175_v49 = vpop.permute.xlu0 %1174  ;;  %v1173_v52 = vpop.permute.xlu1 %1172 }
 0x232   : > { %8857 = vmatmul.mubr.msk.bf16.vlgmr.msra.gmra.mrb[8].mxu0 %vm842_vm1, %v951_v47  ;;  %v1180_v51 = vsel %vm842_vm1, %v1175_v49, 0 }
 0x233   : > { %8867 = vmatpush3.bf16.xpose.msra.mxu0 %v1070_v48  ;;  %8868 = vmatprep.mubr.msk.bf16.mxu0 %vm9783_vm0, %v9782_v19 }
 0x234   : > { %8878 = vmatprep.subr.bf16.mxu0 %v9782_v19 }
 0x23a   : > { %8869 = vmatmul.mubr.msk.bf16.vlgmr.msra.gmra.mrb[12].mxu0 %vm842_vm1, %v1063_v50 }
 0x23b   : > { %8879 = vmatpush3.bf16.xpose.msra.mxu0 %v1180_v51  ;;  %8880 = vmatprep.mubr.msk.bf16.mxu0 %vm9783_vm0, %v9782_v19 }
 0x23c   : > { %8890 = vmatprep.subr.bf16.mxu0 %v9782_v19 }
 0x242   : > { %8881 = vmatmul.mubr.msk.bf16.vlgmr.msra.gmra.mrb[16].mxu0 %vm842_vm1, %v1173_v52 }
 0x243   : > { %8906 = vmatprep.mubr.msk.bf16.mxu0 %vm9783_vm0, %v9782_v19 }
 0x293   : > { %v883_v53 = vpop.f32.mrb[4].mxu0 }
 0x294   : > { %v8846_v54 = vpop.f32.mrb[5].mxu0  ;;  %v890_v55 = vsel %vm889_vm2, %v883_v53, -inf }
 0x295   : > { %891 = vmax.xlane.f32.xlu0 %v890_v55  ;;  %v886_v56 = vpop.f32.mrb[6].mxu0 }
 0x296   : > { %v8847_v57 = vpop.f32.mrb[7].mxu0 }
 0x305   : > { %v995_v63 = vpop.f32.mrb[8].mxu0 }
 0x306   : > { %v8858_v2 = vpop.f32.mrb[9].mxu0  ;;  %v1001_v3 = vsel %vm889_vm2, %v995_v63, -inf }
 0x307   : > { %1002 = vmax.xlane.f32.xlu1 %v1001_v3  ;;  %v998_v6 = vpop.f32.mrb[10].mxu0 }
 0x308   : > { %v8859_v7 = vpop.f32.mrb[11].mxu0 }
 0x309   : > { %v9165_v7 = vld [vmem:[%s10598_s3] sm:$0xff]  }
 0x30a   : > { %8891 = vmatpush3.bf16.msra.mxu0 %v9165_v7 }
 0x30b   : > { %8892 = vmatprep.subr.bf16.mxu0 %v9782_v19 }
 0x30d   : > { %v1106_v9 = vpop.f32.mrb[12].mxu0 }
 0x30e   : > { %v8870_v10 = vpop.f32.mrb[13].mxu0  ;;  %v1112_v11 = vsel %vm889_vm2, %v1106_v9, -inf  ;;  %8893 = vmatpush3.bf16.msra.mxu0 %v9166_v8 }
 0x30f   : > { %1113 = vmax.xlane.f32.xlu0 %v1112_v11  ;;  %v1109_v12 = vpop.f32.mrb[14].mxu0  ;;  %8894 = vmatprep.subr.bf16.mxu0 %v9782_v19  ;;  %v9168_v10 = vld [vmem:[%s10598_s3 + $0x18] sm:$0xff]   ;;  %v9169_v11 = vld [vmem:[%s10598_s3 + $0x20] sm:$0xff]  }
 0x310   : > { %v8871_v13 = vpop.f32.mrb[15].mxu0  ;;  %v9170_v12 = vld [vmem:[%s10598_s3 + $0x28] sm:$0xff]  }
 0x311   : > { %v9171_v13 = vld [vmem:[%s10598_s3 + $0x30] sm:$0xff]  }
 0x315   : > { %v1216_v14 = vpop.f32.mrb[16].mxu0 }
 0x316   : > { %v8882_v15 = vpop.f32.mrb[17].mxu0  ;;  %v1222_v16 = vsel %vm889_vm2, %v1216_v14, -inf }
 0x317   : > { %1223 = vmax.xlane.f32.xlu0 %v1222_v16  ;;  %v1219_v17 = vpop.f32.mrb[18].mxu0 }
 0x318   : > { %v8883_v18 = vpop.f32.mrb[19].mxu0 }
 0x319   : > { %v9172_v18 = vld [vmem:[%s10598_s3 + $0x38] sm:$0xff]  }
 0x322   : > { %v892_v20 = vpop.xlane.xlu0 %891 }
 0x323   : > { %v893_v23 = vsub.f32 %v883_v53, %v892_v20 }
 0x325   : > { %v894_v25 = vmul.f32 1.442695, %v893_v23 }
 0x327   : > { %9477 = vpow2.f32 %v894_v25 }
 0x331   : > { %v9478_v26 = vpop.eup %9477 }
 0x332   : > { %v896_v27 = vsel %vm889_vm2, %v9478_v26, 0.0 }
 0x333   : > { %897 = vadd.xlane.f32.xlu1 %v896_v27 }
 0x344   : > { %1014 = vrot.lane.b32.xlu1 %v841_v4, %s9785_s26 }
 0x394   : > { %v1003_v28 = vpop.xlane.xlu1 %1002 }
 0x395   : > { %v1004_v29 = vsub.f32 %v995_v63, %v1003_v28 }
 0x397   : > { %v1005_v30 = vmul.f32 1.442695, %v1004_v29 }
 0x399   : > { %9479 = vpow2.f32 %v1005_v30 }
 0x39c   : > { %v1114_v31 = vpop.xlane.xlu0 %1113 }
 0x39d   : > { %v1115_v32 = vsub.f32 %v1106_v9, %v1114_v31  ;;  %v9167_v9 = vld [vmem:[%s10598_s3 + $0x10] sm:$0xff]  }
 0x39e   : > { %8895 = vmatpush3.bf16.msra.mxu0 %v9167_v9 }
 0x39f   : > { %v1116_v33 = vmul.f32 1.442695, %v1115_v32  ;;  %8896 = vmatprep.subr.bf16.mxu0 %v9782_v19 }
 0x3a1   : > { %9481 = vpow2.f32 %v1116_v33 }
 0x3a2   : > { %8897 = vmatpush3.bf16.msra.mxu0 %v9168_v10 }
 0x3a3   : > { %v9480_v34 = vpop.eup %9479  ;;  %8898 = vmatprep.subr.bf16.mxu0 %v9782_v19 }
 0x3a4   : > { %v1224_v35 = vpop.xlane.xlu0 %1223  ;;  %v1007_v36 = vsel %vm889_vm2, %v9480_v34, 0.0 }
 0x3a5   : > { %v1225_v37 = vsub.f32 %v1216_v14, %v1224_v35  ;;  %1008 = vadd.xlane.f32.xlu0 %v1007_v36 }
 0x3a6   : > { %8899 = vmatpush3.bf16.msra.mxu0 %v9169_v11 }
 0x3a7   : > { %v1226_v38 = vmul.f32 1.442695, %v1225_v37  ;;  %8900 = vmatprep.subr.bf16.mxu0 %v9782_v19 }
 0x3a9   : > { %9483 = vpow2.f32 %v1226_v38  ;;  %v7786_v38 = vld [vmem:[%s10599_s4] ss:$0 sm:$0xff] }
 0x3aa   : > { %8901 = vmatpush3.bf16.msra.mxu0 %v9170_v12  ;;  %v1489_v12 = vld [vmem:[#allocation10 + $0x180] sm:$0xff] }
 0x3ab   : > { %v9482_v39 = vpop.eup %9481  ;;  %8902 = vmatprep.subr.bf16.mxu0 %v9782_v19 }
 0x3ac   : > { %v1118_v40 = vsel %vm889_vm2, %v9482_v39, 0.0 }
 0x3ad   : > { %1119 = vadd.xlane.f32.xlu1 %v1118_v40 }
 0x3ae   : > { %8903 = vmatpush3.bf16.msra.mxu0 %v9171_v13  ;;  %v1497_v13 = vld [vmem:[#allocation10 + $0x1c0] sm:$0xff] }
 0x3af   : > { %8904 = vmatprep.subr.bf16.mxu0 %v9782_v19 }
 0x3b2   : > { %8905 = vmatpush3.bf16.msra.mxu0 %v9172_v18 }
 0x3b3   : > { %v9484_v41 = vpop.eup %9483 }
 0x3b4   : > { %v1228_v42 = vsel %vm889_vm2, %v9484_v41, 0.0 }
 0x3b5   : > { %1229 = vadd.xlane.f32.xlu0 %v1228_v42 }
 0x3be   : > { %1234 = vrot.lane.b32.xlu1 %v841_v4, %s9786_s2 }
 0x3c0   : > { %v898_v43 = vpop.xlane.xlu1 %897 }
 0x3c1   : > { %9485 = vrcp.f32 %v898_v43 }
 0x3c4   : > { %v1015_v45 = vpop.permute.xlu1 %1014 }
 0x3c5   : > { %v1020_v48 = vsel %vm905_vm3, %v1015_v45, 0 }
 0x3cb   : > { %v9486_v44 = vpop.eup %9485  ;;  %1124 = vrot.lane.b32.xlu0 %v841_v4, %s9784_s19 }
 0x3cc   : > { %v900_v46 = vmul.f32 %v9486_v44, %v9478_v26  ;;  %v9517_v44 = vld [vmem:[%s10073_s29] sm:$0xff]  ;;  %s10660_s29 = sld [smem:[#allocation20_spill]] }
 0x3ce   : > { %v901_v47 = vpack.c.bf16 %v900_v46, %v900_v46  ;;  %v1441_v46 = vld [vmem:[#allocation10] sm:$0xff] }
 0x3d0   : > { %8851 = vmatmul.mubr.msk.bf16.vlgmr.msra.gmra.mrb[4].mxu1 %vm889_vm2, %v901_v47  ;;  %v1449_v47 = vld [vmem:[#allocation10 + $0x40] sm:$0xff] }
 0x3d1   : > { %8861 = vmatpush3.bf16.msra.mxu1 %v1020_v48  ;;  %8862 = vmatprep.mubr.msk.bf16.mxu1 %vm9783_vm0, %v9782_v19  ;;  %v1442_v48 = vld [vmem:[#allocation10 + $0x8] sm:$0xff] }
 0x3d2   : > { %8872 = vmatprep.subr.bf16.mxu1 %v9782_v19  ;;  %s571_s24 = sand.u32 1, %s10660_s29  }
 0x3d3   : > { %s7752_s25 = sshll.u32 %s571_s24, 3  ;;  %s7604_s29 = scalar_lea.sflag [#allocation4], %s571_s24 }
 0x432   : > { %v1009_v49 = vpop.xlane.xlu0 %1008 }
 0x433   : > { %9487 = vrcp.f32 %v1009_v49  ;;  %v7797_v49 = vcombine.low %v1441_v46, %v1449_v47 }
 0x43a   : > { %v1120_v50 = vpop.xlane.xlu1 %1119 }
 0x43b   : > { %9489 = vrcp.f32 %v1120_v50  ;;  %v7798_v50 = vcombine.high %v1441_v46, %v1449_v47 }
 0x43d   : > { %v9488_v51 = vpop.eup %9487 }
 0x43e   : > { %v1011_v52 = vmul.f32 %v9488_v51, %v9480_v34  ;;  %v1235_v60 = vpop.permute.xlu1 %1234  ;;  %v1450_v51 = vld [vmem:[#allocation10 + $0x48] sm:$0xff] }
 0x43f   : > { %v1240_v62 = vsel %vm905_vm3, %v1235_v60, 0  ;;  %v1473_v60 = vld [vmem:[#allocation10 + $0x100] sm:$0xff] }
 0x440   : > { %v1012_v53 = vpack.c.bf16 %v1011_v52, %v1011_v52  ;;  %v1457_v52 = vld [vmem:[#allocation10 + $0x80] sm:$0xff] }
 0x442   : > { %8863 = vmatmul.mubr.msk.bf16.vlgmr.msra.gmra.mrb[8].mxu1 %vm889_vm2, %v1012_v53  ;;  %v1230_v54 = vpop.xlane.xlu0 %1229  ;;  %v1465_v53 = vld [vmem:[#allocation10 + $0xc0] sm:$0xff] }
 0x443   : > { %9491 = vrcp.f32 %v1230_v54  ;;  %8874 = vmatprep.mubr.msk.bf16.mxu1 %vm9783_vm0, %v9782_v19  ;;  %v7799_v54 = vcombine.low %v1442_v48, %v1450_v51 }
 0x445   : > { %v9490_v55 = vpop.eup %9489 }
 0x446   : > { %v1122_v56 = vmul.f32 %v9490_v55, %v9482_v39  ;;  %v1125_v57 = vpop.permute.xlu0 %1124  ;;  %v7800_v55 = vcombine.high %v1442_v48, %v1450_v51  ;;  %v1553_v48 = vld [vmem:[#allocation10 + $0x380] sm:$0xff] }
 0x447   : > { %v1130_v59 = vsel %vm905_vm3, %v1125_v57, 0  ;;  %v1458_v57 = vld [vmem:[#allocation10 + $0x88] sm:$0xff] }
 0x448   : > { %8873 = vmatpush3.bf16.msra.mxu1 %v1130_v59  ;;  %v1123_v61 = vpack.c.bf16 %v1122_v56, %v1122_v56  ;;  %v7814_v56 = vcombine.high %v1457_v52, %v1465_v53  ;;  %v1466_v59 = vld [vmem:[#allocation10 + $0xc8] sm:$0xff]  ;;  %2334 = vmatprep.subr.bf16.mxu0 %v7800_v55 }
 0x449   : > { %8884 = vmatprep.subr.bf16.mxu1 %v9782_v19 }
 0x44b   : > { %8875 = vmatmul.mubr.msk.bf16.vlgmr.msra.gmra.mrb[12].mxu1 %vm889_vm2, %v1123_v61  ;;  %v7816_v61 = vcombine.high %v1458_v57, %v1466_v59 }
 0x44c   : > { %8885 = vmatpush3.bf16.msra.mxu1 %v1240_v62  ;;  %8886 = vmatprep.mubr.msk.bf16.mxu1 %vm9783_vm0, %v9782_v19  ;;  %v1481_v62 = vld [vmem:[#allocation10 + $0x140] sm:$0xff] }
 0x44d   : > { %v9492_v63 = vpop.eup %9491  ;;  %2293 = vmatprep.subr.bf16.mxu1 %v7798_v50  ;;  %v1554_v50 = vld [vmem:[#allocation10 + $0x388] sm:$0xff] }
 0x44e   : > { %v1232_v1 = vmul.f32 %v9492_v63, %v9484_v41  ;;  %v1474_v63 = vld [vmem:[#allocation10 + $0x108] sm:$0xff] }
 0x450   : > { %v1233_v2 = vpack.c.bf16 %v1232_v1, %v1232_v1  ;;  %v1482_v1 = vld [vmem:[#allocation10 + $0x148] sm:$0xff] }
 0x451   : > { %v7831_v7 = vcombine.low %v1474_v63, %v1482_v1 }
 0x453   : > { %8887 = vmatmul.mubr.msk.bf16.vlgmr.msra.gmra.mrb[16].mxu1 %vm889_vm2, %v1233_v2  ;;  %v7813_v2 = vcombine.low %v1457_v52, %v1465_v53  ;;  %v1562_v52 = vld [vmem:[#allocation10 + $0x3c8] sm:$0xff] }
 0x454   : > { %2325 = vmatprep.mubr.bf16.mxu1 %v9781_v0  ;;  %2294 = vmatpush1.bf16.msra.mxu1 %v7797_v49  ;;  %v1561_v49 = vld [vmem:[#allocation10 + $0x3c0] sm:$0xff]  ;;  %v7912_v55 = vcombine.high %v1554_v50, %v1562_v52 }
 0x455   : > { %2295 = vmatprep.subr.bf16.mxu1 %v7814_v56  ;;  %v7910_v51 = vcombine.high %v1553_v48, %v1561_v49  ;;  %v7909_v53 = vcombine.low %v1553_v48, %v1561_v49  ;;  %v1443_v56 = vld [vmem:[#allocation10 + $0x10] sm:$0xff]  ;;  %v1524_v48 = vld [vmem:[#allocation10 + $0x298] sm:$0xff] }
 0x456   : > { %v1532_v49 = vld [vmem:[#allocation10 + $0x2d8] sm:$0xff] }
 0x458   : > { %2296 = vmatpush1.bf16.msra.mxu1 %v7813_v2 }
 0x4a3   : > { %v943_v3 = vpop.f32.mrb[4].mxu1 }
 0x4a4   : > { %v8852_v4 = vpop.f32.mrb[5].mxu1 }
 0x4a5   : > { %v946_v5 = vpop.f32.mrb[6].mxu1  ;;  %v7830_v4 = vcombine.high %v1473_v60, %v1481_v62 }
 0x4a6   : > { %v8853_v6 = vpop.f32.mrb[7].mxu1  ;;  %v7832_v5 = vcombine.high %v1474_v63, %v1482_v1 }
 0x4a7   : > { %v7829_v6 = vcombine.low %v1473_v60, %v1481_v62  ;;  %2297 = vmatprep.subr.bf16.mxu1 %v7830_v4  ;;  %v1452_v62 = vld [vmem:[#allocation10 + $0x58] sm:$0xff] }
 0x4a9   : > { %2298 = vmatpush1.bf16.msra.mxu1 %v7829_v6  ;;  %v7795_v6 = vld [vmem:[#allocation7] ss:$0 sm:$0xff] }
 0x515   : > { %v1056_v14 = vpop.f32.mrb[8].mxu1 }
 0x516   : > { %1283 = vrot.lane.b32.xlu1 %v1056_v14, %s9786_s2  ;;  %v8864_v15 = vpop.f32.mrb[9].mxu1  ;;  %v1490_v14 = vld [vmem:[#allocation10 + $0x188] sm:$0xff] }
 0x517   : > { %v1059_v16 = vpop.f32.mrb[10].mxu1  ;;  %v7846_v15 = vcombine.high %v1489_v12, %v1497_v13 }
 0x518   : > { %v8865_v17 = vpop.f32.mrb[11].mxu1  ;;  %v1498_v16 = vld [vmem:[#allocation10 + $0x1c8] sm:$0xff] }
 0x519   : > { %v7845_v17 = vcombine.low %v1489_v12, %v1497_v13  ;;  %v7847_v18 = vcombine.low %v1490_v14, %v1498_v16  ;;  %2299 = vmatprep.subr.bf16.mxu1 %v7846_v15  ;;  %v1467_v12 = vld [vmem:[#allocation10 + $0xd0] sm:$0xff]  ;;  %v1460_v13 = vld [vmem:[#allocation10 + $0x98] sm:$0xff] }
 0x51b   : > { %2300 = vmatpush1.bf16.msra.mxu1 %v7845_v17 }
 0x51e   : > { %v1166_v20 = vpop.f32.mrb[12].mxu1 }
 0x51f   : > { %1287 = vrot.lane.b32.xlu0 %v1166_v20, %s9784_s19  ;;  %v8876_v23 = vpop.f32.mrb[13].mxu1  ;;  %v7848_v20 = vcombine.high %v1490_v14, %v1498_v16  ;;  %v1468_v14 = vld [vmem:[#allocation10 + $0xd8] sm:$0xff] }
 0x520   : > { %v1169_v25 = vpop.f32.mrb[14].mxu1  ;;  %v1505_v23 = vld [vmem:[#allocation10 + $0x200] sm:$0xff] }
 0x521   : > { %v8877_v26 = vpop.f32.mrb[15].mxu1  ;;  %v1513_v25 = vld [vmem:[#allocation10 + $0x240] sm:$0xff] }
 0x522   : > { %v1506_v26 = vld [vmem:[#allocation10 + $0x208] sm:$0xff] }
 0x526   : > { %v1276_v27 = vpop.f32.mrb[16].mxu1 }
 0x527   : > { %1291 = vrot.lane.b32.xlu1 %v1276_v27, %s9785_s26  ;;  %v8888_v28 = vpop.f32.mrb[17].mxu1  ;;  %v7862_v27 = vcombine.high %v1505_v23, %v1513_v25 }
 0x528   : > { %v1279_v29 = vpop.f32.mrb[18].mxu1  ;;  %v1514_v28 = vld [vmem:[#allocation10 + $0x248] sm:$0xff] }
 0x529   : > { %v8889_v30 = vpop.f32.mrb[19].mxu1  ;;  %v7861_v29 = vcombine.low %v1505_v23, %v1513_v25  ;;  %2301 = vmatprep.subr.bf16.mxu1 %v7862_v27  ;;  %v1483_v23 = vld [vmem:[#allocation10 + $0x150] sm:$0xff]  ;;  %v1476_v25 = vld [vmem:[#allocation10 + $0x118] sm:$0xff]  ;;  %v7819_v27 = vcombine.low %v1460_v13, %v1468_v14 }
 0x52a   : > { %v7863_v30 = vcombine.low %v1506_v26, %v1514_v28 }
 0x52b   : > { %2302 = vmatpush1.bf16.msra.mxu1 %v7861_v29 }
 0x588   : > { %v1284_v31 = vpop.permute.xlu1 %1283 }
 0x589   : > { %v1294_v33 = vsel %vm842_vm1, %v943_v3, %v1284_v31  ;;  %v7815_v3 = vcombine.low %v1458_v57, %v1466_v59  ;;  %v7864_v31 = vcombine.high %v1506_v26, %v1514_v28  ;;  %v1451_v57 = vld [vmem:[#allocation10 + $0x50] sm:$0xff]  ;;  %v1444_v59 = vld [vmem:[#allocation10 + $0x18] sm:$0xff] }
 0x58a   : > { %v7801_v60 = vcombine.low %v1443_v56, %v1451_v57  ;;  %v7803_v63 = vcombine.low %v1444_v59, %v1452_v62  ;;  %v7804_v1 = vcombine.high %v1444_v59, %v1452_v62  ;;  %v1484_v26 = vld [vmem:[#allocation10 + $0x158] sm:$0xff] }
 0x58b   : > { %v7836_v29 = vcombine.high %v1476_v25, %v1484_v26 }
 0x591   : > { %v1288_v32 = vpop.permute.xlu0 %1287 }
 0x592   : > { %v1296_v34 = vsel %vm1295_vm4, %v1294_v33, %v1288_v32  ;;  %v1521_v32 = vld [vmem:[#allocation10 + $0x280] sm:$0xff] }
 0x593   : > { %v1529_v33 = vld [vmem:[#allocation10 + $0x2c0] sm:$0xff] }
 0x599   : > { %v1292_v35 = vpop.permute.xlu1 %1291 }
 0x59a   : > { %v1298_v36 = vsel %vm1297_vm5, %v1296_v34, %v1292_v35  ;;  %v1522_v34 = vld [vmem:[#allocation10 + $0x288] sm:$0xff]  ;;  %v7878_v35 = vcombine.high %v1521_v32, %v1529_v33 }
 0x59b   : > { %v1299_v37 = vpack.c.bf16 %v1298_v36, %v1298_v36  ;;  %v1530_v36 = vld [vmem:[#allocation10 + $0x2c8] sm:$0xff] }
 0x59c   : > { %2303 = vmatprep.subr.bf16.mxu1 %v7878_v35  ;;  %v7835_v35 = vcombine.low %v1476_v25, %v1484_v26  ;;  %v1462_v25 = vld [vmem:[#allocation10 + $0xa8] sm:$0xff] }
 0x59d   : > { %8907 = vmatmul.mubr.bf16.vlgmr.msra.gmra.mrb[20].mxu0 %v1299_v37  ;;  %v7877_v37 = vcombine.low %v1521_v32, %v1529_v33  ;;  %v1492_v32 = vld [vmem:[#allocation10 + $0x198] sm:$0xff]  ;;  %v1470_v26 = vld [vmem:[#allocation10 + $0xe8] sm:$0xff] }
 0x59e   : > { %2366 = vmatprep.mubr.bf16.mxu0 %v9781_v0  ;;  %2335 = vmatpush1.bf16.msra.mxu0 %v7799_v54  ;;  %v7911_v54 = vcombine.low %v1554_v50, %v1562_v52  ;;  %v1500_v33 = vld [vmem:[#allocation10 + $0x1d8] sm:$0xff] }
 0x59f   : > { %2336 = vmatprep.subr.bf16.mxu0 %v7816_v61  ;;  %2304 = vmatpush1.bf16.msra.mxu1 %v7877_v37  ;;  %v7802_v61 = vcombine.high %v1443_v56, %v1451_v57  ;;  %v7852_v37 = vcombine.high %v1492_v32, %v1500_v33  ;;  %v1540_v56 = vld [vmem:[#allocation10 + $0x318] sm:$0xff] }
 0x5a0   : > { %v1548_v57 = vld [vmem:[#allocation10 + $0x358] sm:$0xff] }
 0x5a1   : > { %v7900_v62 = vcombine.high %v1540_v56, %v1548_v57 }
 0x5a2   : > { %2337 = vmatpush1.bf16.msra.mxu0 %v7815_v3 }
 0x5a3   : > { %2338 = vmatprep.subr.bf16.mxu0 %v7832_v5 }
 0x5a6   : > { %2339 = vmatpush1.bf16.msra.mxu0 %v7831_v7 }
 0x5a7   : > { %2340 = vmatprep.subr.bf16.mxu0 %v7848_v20  ;;  %v1475_v20 = vld [vmem:[#allocation10 + $0x110] sm:$0xff] }
 0x5a8   : > { %v7834_v28 = vcombine.high %v1475_v20, %v1483_v23 }
 0x5aa   : > { %2341 = vmatpush1.bf16.msra.mxu0 %v7847_v18  ;;  %v7820_v18 = vcombine.high %v1460_v13, %v1468_v14 }
 0x5ab   : > { %2342 = vmatprep.subr.bf16.mxu0 %v7864_v31  ;;  %v1499_v31 = vld [vmem:[#allocation10 + $0x1d0] sm:$0xff] }
 0x5ae   : > { %2343 = vmatpush1.bf16.msra.mxu0 %v7863_v30  ;;  %v1491_v30 = vld [vmem:[#allocation10 + $0x190] sm:$0xff] }
 0x670   : > { %v1405_v39 = vpop.f32.mrb[20].mxu0 }
 0x671   : > { %v1406_v40 = vadd.f32 %v7786_v38, %v1405_v39  ;;  %v8908_v41 = vpop.f32.mrb[21].mxu0  ;;  %v7879_v38 = vcombine.low %v1522_v34, %v1530_v36  ;;  %v7880_v39 = vcombine.high %v1522_v34, %v1530_v36  ;;  %v7833_v34 = vcombine.low %v1475_v20, %v1483_v23  ;;  %v1461_v20 = vld [vmem:[#allocation10 + $0xa0] sm:$0xff] }
 0x672   : > { %v1408_v42 = vpop.f32.mrb[22].mxu0  ;;  %v1545_v41 = vld [vmem:[#allocation10 + $0x340] sm:$0xff]  ;;  %v7850_v36 = vcombine.high %v1491_v30, %v1499_v31 }
 0x673   : > { %v8909_v43 = vpop.f32.mrb[23].mxu0  ;;  %v1411_v45 = vadd.f32 %v9517_v44, %v1406_v40  ;;  %2344 = vmatprep.subr.bf16.mxu0 %v7880_v39  ;;  %v1537_v40 = vld [vmem:[#allocation10 + $0x300] sm:$0xff]  ;;  %v1538_v42 = vld [vmem:[#allocation10 + $0x308] sm:$0xff]  ;;  %v1515_v39 = vld [vmem:[#allocation10 + $0x250] sm:$0xff] }
 0x674   : > { %2345 = vmatpush1.bf16.msra.mxu0 %v7879_v38  ;;  %v7894_v43 = vcombine.high %v1537_v40, %v1545_v41  ;;  %v1546_v44 = vld [vmem:[#allocation10 + $0x348] sm:$0xff]  ;;  %v1507_v38 = vld [vmem:[#allocation10 + $0x210] sm:$0xff]  ;;  %v1469_v23 = vld [vmem:[#allocation10 + $0xe0] sm:$0xff] }
 0x675   : > { %1414 = vadd.xlane.f32.xlu0 %v1411_v45  ;;  %v7895_v46 = vcombine.low %v1538_v42, %v1546_v44  ;;  %v7896_v47 = vcombine.high %v1538_v42, %v1546_v44  ;;  %v7849_v42 = vcombine.low %v1491_v30, %v1499_v31  ;;  %v7866_v44 = vcombine.high %v1507_v38, %v1515_v39  ;;  %v1477_v30 = vld [vmem:[#allocation10 + $0x120] sm:$0xff] }
 0x676   : > { %2305 = vmatprep.subr.bf16.mxu1 %v7894_v43  ;;  %v7851_v43 = vcombine.low %v1492_v32, %v1500_v33  ;;  %v7865_v50 = vcombine.low %v1507_v38, %v1515_v39  ;;  %v1485_v31 = vld [vmem:[#allocation10 + $0x160] sm:$0xff]  ;;  %v1478_v32 = vld [vmem:[#allocation10 + $0x128] sm:$0xff] }
 0x677   : > { %2346 = vmatprep.subr.bf16.mxu0 %v7896_v47  ;;  %v1531_v47 = vld [vmem:[#allocation10 + $0x2d0] sm:$0xff]  ;;  %v1486_v33 = vld [vmem:[#allocation10 + $0x168] sm:$0xff]  ;;  %v1493_v38 = vld [vmem:[#allocation10 + $0x1a0] sm:$0xff] }
 0x678   : > { %2347 = vmatpush1.bf16.msra.mxu0 %v7895_v46  ;;  %v1523_v46 = vld [vmem:[#allocation10 + $0x290] sm:$0xff]  ;;  %v1501_v39 = vld [vmem:[#allocation10 + $0x1e0] sm:$0xff] }
 0x679   : > { %2348 = vmatprep.subr.bf16.mxu0 %v7912_v55  ;;  %v7882_v52 = vcombine.high %v1523_v46, %v1531_v47  ;;  %v1547_v55 = vld [vmem:[#allocation10 + $0x350] sm:$0xff]  ;;  %v7881_v59 = vcombine.low %v1523_v46, %v1531_v47  ;;  %v1509_v46 = vld [vmem:[#allocation10 + $0x220] sm:$0xff] }
 0x67a   : > { %v1517_v47 = vld [vmem:[#allocation10 + $0x260] sm:$0xff] }
 0x67c   : > { %2349 = vmatpush1.bf16.msra.mxu0 %v7911_v54  ;;  %v1539_v54 = vld [vmem:[#allocation10 + $0x310] sm:$0xff] }
 0x67d   : > { %2416 = vmatprep.subr.bf16.mxu0 %v7804_v1  ;;  %v1563_v1 = vld [vmem:[#allocation10 + $0x3d0] sm:$0xff] }
 0x702   : > { %v1415_v8 = vpop.xlane.xlu0 %1414 }
 0x703   : > { %v1417_v9 = vmul.f32 0.0078125, %v1415_v8  ;;  %v7796_v8 = vld [vmem:[#allocation8] ss:$0 sm:$0xff] }
 0x705   : > { %v10212_v10 = vsub.f32 %v1411_v45, %v1417_v9  ;;  %v7893_v45 = vcombine.low %v1537_v40, %v1545_v41  ;;  %v1508_v40 = vld [vmem:[#allocation10 + $0x218] sm:$0xff] }
 0x706   : > { %v1516_v41 = vld [vmem:[#allocation10 + $0x258] sm:$0xff] }
 0x707   : > { %v1419_v11 = vmul.f32 %v10212_v10, %v10212_v10  ;;  %2306 = vmatpush1.bf16.msra.mxu1 %v7893_v45  ;;  %v7868_v45 = vcombine.high %v1508_v40, %v1516_v41 }
 0x708   : > { %2307 = vmatprep.subr.bf16.mxu1 %v7910_v51  ;;  %v7867_v51 = vcombine.low %v1508_v40, %v1516_v41  ;;  %v1494_v40 = vld [vmem:[#allocation10 + $0x1a8] sm:$0xff] }
 0x709   : > { %1420 = vadd.xlane.f32.xlu1 %v1419_v11  ;;  %v1459_v11 = vld [vmem:[#allocation10 + $0x90] sm:$0xff]  ;;  %v1502_v41 = vld [vmem:[#allocation10 + $0x1e8] sm:$0xff] }
 0x70a   : > { %v7818_v17 = vcombine.high %v1459_v11, %v1467_v12 }
 0x70b   : > { %2308 = vmatpush1.bf16.msra.mxu1 %v7909_v53  ;;  %v7884_v53 = vcombine.high %v1524_v48, %v1532_v49 }
 0x70c   : > { %2375 = vmatprep.subr.bf16.mxu1 %v7802_v61  ;;  %v7898_v61 = vcombine.high %v1539_v54, %v1547_v55 }
 0x796   : > { %v1421_v2 = vpop.xlane.xlu1 %1420 }
 0x797   : > { %v1422_v3 = vmul.f32 0.0078125, %v1421_v2  ;;  %v1556_v2 = vld [vmem:[#allocation10 + $0x398] sm:$0xff] }
 0x799   : > { %v1423_v4 = vadd.f32 1e-05, %v1422_v3  ;;  %v1564_v3 = vld [vmem:[#allocation10 + $0x3d8] sm:$0xff] }
 0x79a   : > { %v7915_v14 = vcombine.low %v1556_v2, %v1564_v3 }
 0x79b   : > { %9493 = vrsqrt.f32 %v1423_v4  ;;  %v7897_v4 = vcombine.low %v1539_v54, %v1547_v55  ;;  %v1525_v54 = vld [vmem:[#allocation10 + $0x2a0] sm:$0xff] }
 0x79c   : > { %v1533_v55 = vld [vmem:[#allocation10 + $0x2e0] sm:$0xff] }
 0x7a5   : > { %v9494_v5 = vpop.eup %9493 }
 0x7a6   : > { %v1425_v7 = vmul.f32 %v9494_v5, %v10212_v10  ;;  %v7817_v10 = vcombine.low %v1459_v11, %v1467_v12  ;;  %v7899_v5 = vcombine.low %v1540_v56, %v1548_v57  ;;  %v1446_v11 = vld [vmem:[#allocation10 + $0x28] sm:$0xff] }
 0x7a7   : > { %v1454_v12 = vld [vmem:[#allocation10 + $0x68] sm:$0xff] }
 0x7a8   : > { %v1432_v9 = vmul.f32 %v7795_v6, %v1425_v7  ;;  %v7916_v7 = vcombine.high %v1556_v2, %v1564_v3  ;;  %v1526_v56 = vld [vmem:[#allocation10 + $0x2a8] sm:$0xff] }
 0x7a9   : > { %v1534_v57 = vld [vmem:[#allocation10 + $0x2e8] sm:$0xff] }
 0x7aa   : > { %v10217_v15 = vadd.f32 %v7796_v8, %v1432_v9  ;;  %v1445_v8 = vld [vmem:[#allocation10 + $0x20] sm:$0xff]  ;;  %v1542_v2 = vld [vmem:[#allocation10 + $0x328] sm:$0xff] }
 0x7ab   : > { %v1453_v9 = vld [vmem:[#allocation10 + $0x60] sm:$0xff]  ;;  %v1550_v3 = vld [vmem:[#allocation10 + $0x368] sm:$0xff] }
 0x7ac   : > { %v10221_v16 = vpack.c.bf16 %v10217_v15, %v10217_v15 }
 0x7ae   : > { %2326 = vmatmul.mubr.bf16.vlgmr.msra.gmra.mrb[20].mxu1 %v10221_v16  ;;  %2367 = vmatmul.mubr.bf16.vlgmr.msra.gmra.mrb[24].mxu0 %v10221_v16 }
 0x7af   : > { %2376 = vmatpush1.bf16.msra.mxu1 %v7801_v60  ;;  %2417 = vmatpush1.bf16.msra.mxu0 %v7803_v63  ;;  %v7883_v60 = vcombine.low %v1524_v48, %v1532_v49  ;;  %v1555_v63 = vld [vmem:[#allocation10 + $0x390] sm:$0xff]  ;;  %v1510_v48 = vld [vmem:[#allocation10 + $0x228] sm:$0xff] }
 0x7b0   : > { %2377 = vmatprep.subr.bf16.mxu1 %v7818_v17  ;;  %2418 = vmatprep.subr.bf16.mxu0 %v7820_v18  ;;  %v7914_v6 = vcombine.high %v1555_v63, %v1563_v1  ;;  %v7913_v13 = vcombine.low %v1555_v63, %v1563_v1  ;;  %v7806_v17 = vcombine.high %v1445_v8, %v1453_v9  ;;  %v1518_v49 = vld [vmem:[#allocation10 + $0x268] sm:$0xff]  ;;  %v1541_v63 = vld [vmem:[#allocation10 + $0x320] sm:$0xff] }
 0x7b1   : > { %2407 = vmatprep.mubr.bf16.mxu1 %v9781_v0  ;;  %2448 = vmatprep.mubr.bf16.mxu0 %v9781_v0  ;;  %v7808_v18 = vcombine.high %v1446_v11, %v1454_v12  ;;  %v1549_v1 = vld [vmem:[#allocation10 + $0x360] sm:$0xff] }
 0x7b3   : > { %2378 = vmatpush1.bf16.msra.mxu1 %v7817_v10  ;;  %2419 = vmatpush1.bf16.msra.mxu0 %v7819_v27  ;;  %v7805_v10 = vcombine.low %v1445_v8, %v1453_v9  ;;  %v7807_v27 = vcombine.low %v1446_v11, %v1454_v12  ;;  %v1557_v8 = vld [vmem:[#allocation10 + $0x3a0] sm:$0xff]  ;;  %v1558_v11 = vld [vmem:[#allocation10 + $0x3a8] sm:$0xff] }
 0x7b4   : > { %2379 = vmatprep.subr.bf16.mxu1 %v7834_v28  ;;  %2420 = vmatprep.subr.bf16.mxu0 %v7836_v29  ;;  %v7822_v28 = vcombine.high %v1461_v20, %v1469_v23  ;;  %v7824_v29 = vcombine.high %v1462_v25, %v1470_v26  ;;  %v1565_v9 = vld [vmem:[#allocation10 + $0x3e0] sm:$0xff]  ;;  %v1566_v12 = vld [vmem:[#allocation10 + $0x3e8] sm:$0xff] }
 0x7b7   : > { %2380 = vmatpush1.bf16.msra.mxu1 %v7833_v34  ;;  %2421 = vmatpush1.bf16.msra.mxu0 %v7835_v35  ;;  %v7821_v34 = vcombine.low %v1461_v20, %v1469_v23  ;;  %v7823_v35 = vcombine.low %v1462_v25, %v1470_v26  ;;  %v1447_v20 = vld [vmem:[#allocation10 + $0x30] sm:$0xff]  ;;  %v1448_v25 = vld [vmem:[#allocation10 + $0x38] sm:$0xff] }
 0x7b8   : > { %2381 = vmatprep.subr.bf16.mxu1 %v7850_v36  ;;  %2422 = vmatprep.subr.bf16.mxu0 %v7852_v37  ;;  %v7838_v36 = vcombine.high %v1477_v30, %v1485_v31  ;;  %v7840_v37 = vcombine.high %v1478_v32, %v1486_v33  ;;  %v1455_v23 = vld [vmem:[#allocation10 + $0x70] sm:$0xff]  ;;  %v1456_v26 = vld [vmem:[#allocation10 + $0x78] sm:$0xff] }
 0x7bb   : > { %2382 = vmatpush1.bf16.msra.mxu1 %v7849_v42  ;;  %2423 = vmatpush1.bf16.msra.mxu0 %v7851_v43  ;;  %v7837_v42 = vcombine.low %v1477_v30, %v1485_v31  ;;  %v7839_v43 = vcombine.low %v1478_v32, %v1486_v33  ;;  %v1463_v30 = vld [vmem:[#allocation10 + $0xb0] sm:$0xff]  ;;  %v1464_v32 = vld [vmem:[#allocation10 + $0xb8] sm:$0xff] }
 0x7bc   : > { %2383 = vmatprep.subr.bf16.mxu1 %v7866_v44  ;;  %2424 = vmatprep.subr.bf16.mxu0 %v7868_v45  ;;  %v7854_v44 = vcombine.high %v1493_v38, %v1501_v39  ;;  %v7856_v45 = vcombine.high %v1494_v40, %v1502_v41  ;;  %v1471_v31 = vld [vmem:[#allocation10 + $0xf0] sm:$0xff]  ;;  %v1472_v33 = vld [vmem:[#allocation10 + $0xf8] sm:$0xff] }
 0x7bf   : > { %2384 = vmatpush1.bf16.msra.mxu1 %v7865_v50  ;;  %2425 = vmatpush1.bf16.msra.mxu0 %v7867_v51  ;;  %v7853_v50 = vcombine.low %v1493_v38, %v1501_v39  ;;  %v7855_v51 = vcombine.low %v1494_v40, %v1502_v41  ;;  %v1479_v38 = vld [vmem:[#allocation10 + $0x130] sm:$0xff]  ;;  %v1480_v40 = vld [vmem:[#allocation10 + $0x138] sm:$0xff] }
 0x7c0   : > { %2385 = vmatprep.subr.bf16.mxu1 %v7882_v52  ;;  %2426 = vmatprep.subr.bf16.mxu0 %v7884_v53  ;;  %v7870_v52 = vcombine.high %v1509_v46, %v1517_v47  ;;  %v7872_v53 = vcombine.high %v1510_v48, %v1518_v49  ;;  %v1487_v39 = vld [vmem:[#allocation10 + $0x170] sm:$0xff]  ;;  %v1488_v41 = vld [vmem:[#allocation10 + $0x178] sm:$0xff] }
 0x7c3   : > { %2386 = vmatpush1.bf16.msra.mxu1 %v7881_v59  ;;  %2427 = vmatpush1.bf16.msra.mxu0 %v7883_v60  ;;  %v7869_v59 = vcombine.low %v1509_v46, %v1517_v47  ;;  %v7871_v60 = vcombine.low %v1510_v48, %v1518_v49  ;;  %v1495_v46 = vld [vmem:[#allocation10 + $0x1b0] sm:$0xff]  ;;  %v1496_v48 = vld [vmem:[#allocation10 + $0x1b8] sm:$0xff] }
 0x7c4   : > { %2387 = vmatprep.subr.bf16.mxu1 %v7898_v61  ;;  %2428 = vmatprep.subr.bf16.mxu0 %v7900_v62  ;;  %v7886_v61 = vcombine.high %v1525_v54, %v1533_v55  ;;  %v7888_v62 = vcombine.high %v1526_v56, %v1534_v57  ;;  %v1503_v47 = vld [vmem:[#allocation10 + $0x1f0] sm:$0xff]  ;;  %v1504_v49 = vld [vmem:[#allocation10 + $0x1f8] sm:$0xff] }
 0x7c7   : > { %2388 = vmatpush1.bf16.msra.mxu1 %v7897_v4  ;;  %2429 = vmatpush1.bf16.msra.mxu0 %v7899_v5  ;;  %v7885_v4 = vcombine.low %v1525_v54, %v1533_v55  ;;  %v7887_v5 = vcombine.low %v1526_v56, %v1534_v57  ;;  %v1511_v54 = vld [vmem:[#allocation10 + $0x230] sm:$0xff]  ;;  %v1512_v56 = vld [vmem:[#allocation10 + $0x238] sm:$0xff] }
 0x7c8   : > { %2389 = vmatprep.subr.bf16.mxu1 %v7914_v6  ;;  %2430 = vmatprep.subr.bf16.mxu0 %v7916_v7  ;;  %v7902_v6 = vcombine.high %v1541_v63, %v1549_v1  ;;  %v7904_v7 = vcombine.high %v1542_v2, %v1550_v3  ;;  %v1519_v55 = vld [vmem:[#allocation10 + $0x270] sm:$0xff]  ;;  %v1520_v57 = vld [vmem:[#allocation10 + $0x278] sm:$0xff] }
 0x7cb   : > { %2390 = vmatpush1.bf16.msra.mxu1 %v7913_v13  ;;  %2431 = vmatpush1.bf16.msra.mxu0 %v7915_v14  ;;  %v7901_v13 = vcombine.low %v1541_v63, %v1549_v1  ;;  %v7903_v14 = vcombine.low %v1542_v2, %v1550_v3  ;;  %v1527_v63 = vld [vmem:[#allocation10 + $0x2b0] sm:$0xff]  ;;  %v1528_v2 = vld [vmem:[#allocation10 + $0x2b8] sm:$0xff] }
 0x7cc   : > { %2457 = vmatprep.subr.bf16.mxu1 %v7806_v17  ;;  %2498 = vmatprep.subr.bf16.mxu0 %v7808_v18  ;;  %v7918_v17 = vcombine.high %v1557_v8, %v1565_v9  ;;  %v7920_v18 = vcombine.high %v1558_v11, %v1566_v12  ;;  %v1535_v1 = vld [vmem:[#allocation10 + $0x2f0] sm:$0xff]  ;;  %v1536_v3 = vld [vmem:[#allocation10 + $0x2f8] sm:$0xff] }
 0x7ce   : > { %2408 = vmatmul.mubr.bf16.vlgmr.msra.gmra.mrb[24].mxu1 %v10221_v16  ;;  %2449 = vmatmul.mubr.bf16.vlgmr.msra.gmra.mrb[28].mxu0 %v10221_v16 }
 0x7cf   : > { %2458 = vmatpush1.bf16.msra.mxu1 %v7805_v10  ;;  %2499 = vmatpush1.bf16.msra.mxu0 %v7807_v27  ;;  %v7917_v10 = vcombine.low %v1557_v8, %v1565_v9  ;;  %v7919_v27 = vcombine.low %v1558_v11, %v1566_v12  ;;  %v1543_v8 = vld [vmem:[#allocation10 + $0x330] sm:$0xff]  ;;  %v1544_v11 = vld [vmem:[#allocation10 + $0x338] sm:$0xff] }
 0x7d0   : > { %2459 = vmatprep.subr.bf16.mxu1 %v7822_v28  ;;  %2500 = vmatprep.subr.bf16.mxu0 %v7824_v29  ;;  %v7810_v28 = vcombine.high %v1447_v20, %v1455_v23  ;;  %v7812_v29 = vcombine.high %v1448_v25, %v1456_v26  ;;  %v1551_v9 = vld [vmem:[#allocation10 + $0x370] sm:$0xff]  ;;  %v1552_v12 = vld [vmem:[#allocation10 + $0x378] sm:$0xff] }
 0x7d1   : > { %2489 = vmatprep.mubr.bf16.mxu1 %v9781_v0  ;;  %2530 = vmatprep.mubr.bf16.mxu0 %v9781_v0 }
 0x7d3   : > { %2460 = vmatpush1.bf16.msra.mxu1 %v7821_v34  ;;  %2501 = vmatpush1.bf16.msra.mxu0 %v7823_v35  ;;  %v7809_v34 = vcombine.low %v1447_v20, %v1455_v23  ;;  %v7811_v35 = vcombine.low %v1448_v25, %v1456_v26  ;;  %v1559_v20 = vld [vmem:[#allocation10 + $0x3b0] sm:$0xff]  ;;  %v1560_v25 = vld [vmem:[#allocation10 + $0x3b8] sm:$0xff] }
 0x7d4   : > { %2461 = vmatprep.subr.bf16.mxu1 %v7838_v36  ;;  %2502 = vmatprep.subr.bf16.mxu0 %v7840_v37  ;;  %v7826_v36 = vcombine.high %v1463_v30, %v1471_v31  ;;  %v7828_v37 = vcombine.high %v1464_v32, %v1472_v33  ;;  %v1567_v23 = vld [vmem:[#allocation10 + $0x3f0] sm:$0xff]  ;;  %v1568_v26 = vld [vmem:[#allocation10 + $0x3f8] sm:$0xff] }
 0x7d7   : > { %2462 = vmatpush1.bf16.msra.mxu1 %v7837_v42  ;;  %2503 = vmatpush1.bf16.msra.mxu0 %v7839_v43  ;;  %v7825_v42 = vcombine.low %v1463_v30, %v1471_v31  ;;  %v7827_v43 = vcombine.low %v1464_v32, %v1472_v33  ;;  %v7921_v30 = vcombine.low %v1559_v20, %v1567_v23  ;;  %v9173_v32 = vld [vmem:[#allocation11 + $0x40] sm:$0xff]  }
 0x7d8   : > { %2463 = vmatprep.subr.bf16.mxu1 %v7854_v44  ;;  %2504 = vmatprep.subr.bf16.mxu0 %v7856_v45  ;;  %v7842_v44 = vcombine.high %v1479_v38, %v1487_v39  ;;  %v7844_v45 = vcombine.high %v1480_v40, %v1488_v41  ;;  %v7923_v31 = vcombine.low %v1560_v25, %v1568_v26  ;;  %v9174_v33 = vld [vmem:[#allocation11 + $0xc0] sm:$0xff]  }
 0x7db   : > { %2464 = vmatpush1.bf16.msra.mxu1 %v7853_v50  ;;  %2505 = vmatpush1.bf16.msra.mxu0 %v7855_v51  ;;  %v7841_v50 = vcombine.low %v1479_v38, %v1487_v39  ;;  %v7843_v51 = vcombine.low %v1480_v40, %v1488_v41  ;;  %v9179_v38 = vld [vmem:[#allocation11 + $0x8] sm:$0xff]   ;;  %v9181_v40 = vld [vmem:[#allocation11 + $0x50] sm:$0xff]  }
 0x7dc   : > { %2465 = vmatprep.subr.bf16.mxu1 %v7870_v52  ;;  %2506 = vmatprep.subr.bf16.mxu0 %v7872_v53  ;;  %v7858_v52 = vcombine.high %v1495_v46, %v1503_v47  ;;  %v7860_v53 = vcombine.high %v1496_v48, %v1504_v49  ;;  %v9180_v39 = vld [vmem:[#allocation11 + $0x88] sm:$0xff]   ;;  %v9182_v41 = vld [vmem:[#allocation11 + $0xd0] sm:$0xff]  }
 0x7df   : > { %2466 = vmatpush1.bf16.msra.mxu1 %v7869_v59  ;;  %2507 = vmatpush1.bf16.msra.mxu0 %v7871_v60  ;;  %v7857_v59 = vcombine.low %v1495_v46, %v1503_v47  ;;  %v7859_v60 = vcombine.low %v1496_v48, %v1504_v49  ;;  %v9187_v46 = vld [vmem:[#allocation11 + $0x18] sm:$0xff]   ;;  %v9189_v47 = vld [vmem:[#allocation11 + $0x60] sm:$0xff]  }
 0x7e0   : > { %2467 = vmatprep.subr.bf16.mxu1 %v7886_v61  ;;  %2508 = vmatprep.subr.bf16.mxu0 %v7888_v62  ;;  %v7874_v61 = vcombine.high %v1511_v54, %v1519_v55  ;;  %v7876_v62 = vcombine.high %v1512_v56, %v1520_v57  ;;  %v9190_v48 = vld [vmem:[#allocation11 + $0xe0] sm:$0xff]  }
 0x7e1   : > { %v9191_v49 = vld [vmem:[#allocation11 + $0x20] sm:$0xff]  }
 0x7e3   : > { %2468 = vmatpush1.bf16.msra.mxu1 %v7885_v4  ;;  %2509 = vmatpush1.bf16.msra.mxu0 %v7887_v5  ;;  %v7873_v4 = vcombine.low %v1511_v54, %v1519_v55  ;;  %v7875_v5 = vcombine.low %v1512_v56, %v1520_v57  ;;  %v9196_v54 = vld [vmem:[#allocation11 + $0xa8] sm:$0xff]   ;;  %v9197_v55 = vld [vmem:[#allocation11 + $0x70] sm:$0xff]  }
 0x7e4   : > { %2469 = vmatprep.subr.bf16.mxu1 %v7902_v6  ;;  %2510 = vmatprep.subr.bf16.mxu0 %v7904_v7  ;;  %v7890_v6 = vcombine.high %v1527_v63, %v1535_v1  ;;  %v7892_v7 = vcombine.high %v1528_v2, %v1536_v3  ;;  %v9198_v56 = vld [vmem:[#allocation11 + $0xf0] sm:$0xff]  }
 0x7e5   : > { %v9199_v57 = vld [vmem:[#allocation11 + $0x30] sm:$0xff]  }
 0x7e7   : > { %2470 = vmatpush1.bf16.msra.mxu1 %v7901_v13  ;;  %2511 = vmatpush1.bf16.msra.mxu0 %v7903_v14  ;;  %v7889_v13 = vcombine.low %v1527_v63, %v1535_v1  ;;  %v7891_v14 = vcombine.low %v1528_v2, %v1536_v3  ;;  %v9204_v63 = vld [vmem:[#allocation11 + $0xb8] sm:$0xff]   ;;  %v9205_v1 = vld [vmem:[#allocation11 + $0x140] sm:$0xff]  }
 0x7e8   : > { %2471 = vmatprep.subr.bf16.mxu1 %v7918_v17  ;;  %2512 = vmatprep.subr.bf16.mxu0 %v7920_v18  ;;  %v7906_v17 = vcombine.high %v1543_v8, %v1551_v9  ;;  %v7908_v18 = vcombine.high %v1544_v11, %v1552_v12  ;;  %v9206_v2 = vld [vmem:[#allocation11 + $0x1c0] sm:$0xff]   ;;  %v10240_v3 = vld [vmem:[%s10603_s8] sm:$0xff] }
 0x7eb   : > { %2472 = vmatpush1.bf16.msra.mxu1 %v7917_v10  ;;  %2513 = vmatpush1.bf16.msra.mxu0 %v7919_v27  ;;  %v7905_v10 = vcombine.low %v1543_v8, %v1551_v9  ;;  %v7907_v27 = vcombine.low %v1544_v11, %v1552_v12 }
 0x7ec   : > { %2539 = vmatprep.subr.bf16.mxu1 %v7810_v28  ;;  %2580 = vmatprep.subr.bf16.mxu0 %v7812_v29  ;;  %v7922_v28 = vcombine.high %v1559_v20, %v1567_v23  ;;  %v7924_v29 = vcombine.high %v1560_v25, %v1568_v26 }
 0x7ee   : > { %2490 = vmatmul.mubr.bf16.vlgmr.msra.gmra.mrb[28].mxu1 %v10221_v16  ;;  %2531 = vmatmul.mubr.bf16.vlgmr.msra.gmra.mrb[32].mxu0 %v10221_v16 }
 0x7ef   : > { %2540 = vmatpush1.bf16.msra.mxu1 %v7809_v34  ;;  %2581 = vmatpush1.bf16.msra.mxu0 %v7811_v35  ;;  %v9175_v34 = vld [vmem:[#allocation11] sm:$0xff]  }
 0x7f0   : > { %2541 = vmatprep.subr.bf16.mxu1 %v7826_v36  ;;  %2582 = vmatprep.subr.bf16.mxu0 %v7828_v37  ;;  %v9176_v35 = vld [vmem:[#allocation11 + $0x80] sm:$0xff]   ;;  %v9177_v36 = vld [vmem:[#allocation11 + $0x48] sm:$0xff]  }
 0x7f1   : > { %2571 = vmatprep.mubr.bf16.mxu1 %v9781_v0  ;;  %2612 = vmatprep.mubr.bf16.mxu0 %v9781_v0  ;;  %v9178_v37 = vld [vmem:[#allocation11 + $0xc8] sm:$0xff]  }
 0x7f3   : > { %2542 = vmatpush1.bf16.msra.mxu1 %v7825_v42  ;;  %2583 = vmatpush1.bf16.msra.mxu0 %v7827_v43  ;;  %v9183_v42 = vld [vmem:[#allocation11 + $0x10] sm:$0xff]  }
 0x7f4   : > { %2543 = vmatprep.subr.bf16.mxu1 %v7842_v44  ;;  %2584 = vmatprep.subr.bf16.mxu0 %v7844_v45  ;;  %v9184_v43 = vld [vmem:[#allocation11 + $0x90] sm:$0xff]   ;;  %v9185_v44 = vld [vmem:[#allocation11 + $0x58] sm:$0xff]  }
 0x7f5   : > { %v9186_v45 = vld [vmem:[#allocation11 + $0xd8] sm:$0xff]  }
 0x7f7   : > { %2544 = vmatpush1.bf16.msra.mxu1 %v7841_v50  ;;  %2585 = vmatpush1.bf16.msra.mxu0 %v7843_v51  ;;  %v9192_v50 = vld [vmem:[#allocation11 + $0xa0] sm:$0xff]   ;;  %v9193_v51 = vld [vmem:[#allocation11 + $0x68] sm:$0xff]  }
 0x7f8   : > { %2545 = vmatprep.subr.bf16.mxu1 %v7858_v52  ;;  %2586 = vmatprep.subr.bf16.mxu0 %v7860_v53  ;;  %v9194_v52 = vld [vmem:[#allocation11 + $0xe8] sm:$0xff]  }
 0x7f9   : > { %v9195_v53 = vld [vmem:[#allocation11 + $0x28] sm:$0xff]  }
 0x7fb   : > { %2546 = vmatpush1.bf16.msra.mxu1 %v7857_v59  ;;  %2587 = vmatpush1.bf16.msra.mxu0 %v7859_v60  ;;  %v9200_v59 = vld [vmem:[#allocation11 + $0xb0] sm:$0xff]   ;;  %v9201_v60 = vld [vmem:[#allocation11 + $0x78] sm:$0xff]  }
 0x7fc   : > { %2547 = vmatprep.subr.bf16.mxu1 %v7874_v61  ;;  %2588 = vmatprep.subr.bf16.mxu0 %v7876_v62  ;;  %v9202_v61 = vld [vmem:[#allocation11 + $0xf8] sm:$0xff]  }
 0x7fd   : > { %v9203_v62 = vld [vmem:[#allocation11 + $0x38] sm:$0xff]  }
 0x7ff   : > { %2548 = vmatpush1.bf16.msra.mxu1 %v7873_v4  ;;  %2589 = vmatpush1.bf16.msra.mxu0 %v7875_v5  ;;  %v10243_v4 = vsub.s32 3, %v10085_v21  ;;  %v1576_v5 = vrot.slane %v10240_v3, %v10093_v24 }
 0x800   : > { %2549 = vmatprep.subr.bf16.mxu1 %v7890_v6  ;;  %2590 = vmatprep.subr.bf16.mxu0 %v7892_v7  ;;  %v1584_v6 = vrot.slane %v10240_v3, %v10138_v58  ;;  %v1580_v7 = vrot.slane %v10240_v3, %v10088_v22 }
 0x801   : > { %v1588_v8 = vrot.slane %v10240_v3, %v10243_v4 }
 0x803   : > { %2550 = vmatpush1.bf16.msra.mxu1 %v7889_v13  ;;  %2591 = vmatpush1.bf16.msra.mxu0 %v7891_v14 }
 0x804   : > { %2551 = vmatprep.subr.bf16.mxu1 %v7906_v17  ;;  %2592 = vmatprep.subr.bf16.mxu0 %v7908_v18 }
 0x807   : > { %2552 = vmatpush1.bf16.msra.mxu1 %v7905_v10  ;;  %2593 = vmatpush1.bf16.msra.mxu0 %v7907_v27 }
 0x808   : > { %2553 = vmatprep.subr.bf16.mxu1 %v7922_v28  ;;  %2594 = vmatprep.subr.bf16.mxu0 %v7924_v29 }
 0x80b   : > { %2554 = vmatpush1.bf16.msra.mxu1 %v7921_v30  ;;  %2595 = vmatpush1.bf16.msra.mxu0 %v7923_v31 }
 0x80c   : > { %8427 = vmatprep.subr.bf16.mxu1 %v9173_v32  ;;  %8449 = vmatprep.subr.bf16.mxu0 %v9174_v33  ;;  %v9207_v33 = vld [vmem:[#allocation11 + $0x100] sm:$0xff]  }
 0x80e   : > { %2572 = vmatmul.mubr.bf16.vlgmr.msra.gmra.mrb[32].mxu1 %v10221_v16  ;;  %2613 = vmatmul.mubr.bf16.vlgmr.msra.gmra.mrb[36].mxu0 %v10221_v16  ;;  %v9188_v16 = vld [vmem:[#allocation11 + $0x98] sm:$0xff]  }
 0x80f   : > { %8428 = vmatpush3.bf16.msra.mxu1 %v9175_v34  ;;  %8450 = vmatpush3.bf16.msra.mxu0 %v9176_v35  ;;  %v9208_v34 = vld [vmem:[#allocation11 + $0x180] sm:$0xff]  }
 0x810   : > { %8429 = vmatprep.subr.bf16.mxu1 %v9177_v36  ;;  %8451 = vmatprep.subr.bf16.mxu0 %v9178_v37  ;;  %v9209_v37 = vld [vmem:[#allocation11 + $0x148] sm:$0xff]  }
 0x813   : > { %8430 = vmatpush3.bf16.msra.mxu1 %v9179_v38  ;;  %8452 = vmatpush3.bf16.msra.mxu0 %v9180_v39  ;;  %v9210_v38 = vld [vmem:[#allocation11 + $0x1c8] sm:$0xff]  }
 0x814   : > { %8431 = vmatprep.subr.bf16.mxu1 %v9181_v40  ;;  %8453 = vmatprep.subr.bf16.mxu0 %v9182_v41  ;;  %v9211_v39 = vld [vmem:[#allocation11 + $0x108] sm:$0xff]   ;;  %v9213_v41 = vld [vmem:[#allocation11 + $0x150] sm:$0xff]  }
 0x815   : > { %v9212_v40 = vld [vmem:[#allocation11 + $0x188] sm:$0xff]  }
 0x817   : > { %8432 = vmatpush3.bf16.msra.mxu1 %v9183_v42  ;;  %8454 = vmatpush3.bf16.msra.mxu0 %v9184_v43  ;;  %v9214_v42 = vld [vmem:[#allocation11 + $0x1d0] sm:$0xff]  }
 0x818   : > { %8433 = vmatprep.subr.bf16.mxu1 %v9185_v44  ;;  %8455 = vmatprep.subr.bf16.mxu0 %v9186_v45  ;;  %v9215_v43 = vld [vmem:[#allocation11 + $0x110] sm:$0xff]   ;;  %v9217_v45 = vld [vmem:[#allocation11 + $0x158] sm:$0xff]  }
 0x819   : > { %v9216_v44 = vld [vmem:[#allocation11 + $0x190] sm:$0xff]  }
 0x81b   : > { %8434 = vmatpush3.bf16.msra.mxu1 %v9187_v46  ;;  %8456 = vmatpush3.bf16.msra.mxu0 %v9188_v16  ;;  %v9218_v46 = vld [vmem:[#allocation11 + $0x1d8] sm:$0xff]  }
 0x81c   : > { %8435 = vmatprep.subr.bf16.mxu1 %v9189_v47  ;;  %8457 = vmatprep.subr.bf16.mxu0 %v9190_v48  ;;  %v9219_v16 = vld [vmem:[#allocation11 + $0x118] sm:$0xff]   ;;  %v9221_v48 = vld [vmem:[#allocation11 + $0x160] sm:$0xff]  }
 0x81d   : > { %v9220_v47 = vld [vmem:[#allocation11 + $0x198] sm:$0xff]  }
 0x81f   : > { %8436 = vmatpush3.bf16.msra.mxu1 %v9191_v49  ;;  %8458 = vmatpush3.bf16.msra.mxu0 %v9192_v50  ;;  %v9222_v49 = vld [vmem:[#allocation11 + $0x1e0] sm:$0xff]  }
 0x820   : > { %8437 = vmatprep.subr.bf16.mxu1 %v9193_v51  ;;  %8459 = vmatprep.subr.bf16.mxu0 %v9194_v52  ;;  %v9223_v50 = vld [vmem:[#allocation11 + $0x120] sm:$0xff]   ;;  %v9225_v52 = vld [vmem:[#allocation11 + $0x168] sm:$0xff]  }
 0x821   : > { %v9224_v51 = vld [vmem:[#allocation11 + $0x1a0] sm:$0xff]  }
 0x823   : > { %8438 = vmatpush3.bf16.msra.mxu1 %v9195_v53  ;;  %8460 = vmatpush3.bf16.msra.mxu0 %v9196_v54  ;;  %v9226_v53 = vld [vmem:[#allocation11 + $0x1e8] sm:$0xff]   ;;  %v10254_v54 = vsub.s32 4, %v10085_v21 }
 0x824   : > { %8439 = vmatprep.subr.bf16.mxu1 %v9197_v55  ;;  %8461 = vmatprep.subr.bf16.mxu0 %v9198_v56  ;;  %v10257_v55 = vsub.s32 6, %v10085_v21  ;;  %v9227_v56 = vld [vmem:[#allocation11 + $0x128] sm:$0xff]  }
 0x827   : > { %8440 = vmatpush3.bf16.msra.mxu1 %v9199_v57  ;;  %8462 = vmatpush3.bf16.msra.mxu0 %v9200_v59  ;;  %v9228_v57 = vld [vmem:[#allocation11 + $0x1a8] sm:$0xff]   ;;  %v10260_v59 = vsub.s32 5, %v10085_v21 }
 0x828   : > { %8441 = vmatprep.subr.bf16.mxu1 %v9201_v60  ;;  %8463 = vmatprep.subr.bf16.mxu0 %v9202_v61  ;;  %v10263_v60 = vsub.s32 7, %v10085_v21  ;;  %v9229_v61 = vld [vmem:[#allocation11 + $0x170] sm:$0xff]  }
 0x829   : > { %v9231_v21 = vld [vmem:[#allocation11 + $0x130] sm:$0xff]  }
 0x82b   : > { %8442 = vmatpush3.bf16.msra.mxu1 %v9203_v62  ;;  %8464 = vmatpush3.bf16.msra.mxu0 %v9204_v63  ;;  %v9230_v62 = vld [vmem:[#allocation11 + $0x1f0] sm:$0xff]   ;;  %v1592_v63 = vrot.slane %v10240_v3, %v10254_v54 }
 0x82c   : > { %8471 = vmatprep.subr.bf16.mxu1 %v9205_v1  ;;  %8493 = vmatprep.subr.bf16.mxu0 %v9206_v2  ;;  %v1600_v1 = vrot.slane %v10240_v3, %v10257_v55  ;;  %v1596_v2 = vrot.slane %v10240_v3, %v10260_v59 }
 0x881   : > { %v2327_v9 = vpop.f32.mrb[20].mxu1  ;;  %v2368_v11 = vpop.f32.mrb[24].mxu0 }
 0x882   : > { %v2328_v12 = vadd.f32 %v2327_v9, %v1576_v5  ;;  %v2369_v13 = vadd.f32 %v2368_v11, %v1584_v6  ;;  %v2329_v14 = vpop.f32.mrb[21].mxu1  ;;  %v2370_v17 = vpop.f32.mrb[25].mxu0  ;;  %v1604_v5 = vrot.slane %v10240_v3, %v10263_v60  ;;  %v9232_v6 = vld [vmem:[#allocation11 + $0x1b0] sm:$0xff]   ;;  %v9236_v3 = vld [vmem:[#allocation11 + $0x1b8] sm:$0xff]  }
 0x883   : > { %v2330_v18 = vadd.f32 %v2329_v14, %v1580_v7  ;;  %v2371_v20 = vadd.f32 %v2370_v17, %v1588_v8  ;;  %v2331_v23 = vpop.f32.mrb[22].mxu1  ;;  %v2372_v25 = vpop.f32.mrb[26].mxu0  ;;  %v9233_v7 = vld [vmem:[#allocation11 + $0x178] sm:$0xff]  }
 0x884   : > { %v2621_v26 = vmax.f32 %v2328_v12, 0.0  ;;  %v2623_v10 = vmax.f32 %v2369_v13, 0.0  ;;  %v2332_v27 = vpop.f32.mrb[23].mxu1  ;;  %v2373_v28 = vpop.f32.mrb[27].mxu0  ;;  %v9234_v8 = vld [vmem:[#allocation11 + $0x1f8] sm:$0xff]  }
 0x885   : > { %v2622_v29 = vmax.f32 %v2330_v18, 0.0  ;;  %v2624_v30 = vmax.f32 %v2371_v20, 0.0 }
 0x886   : > { %v2637_v35 = vpack.c.bf16 %v2621_v26, %v2621_v26  ;;  %v2639_v36 = vpack.c.bf16 %v2623_v10, %v2623_v10  ;;  %v9235_v26 = vld [vmem:[#allocation11 + $0x138] sm:$0xff]  }
 0x887   : > { %v2638_v31 = vpack.c.bf16 %v2622_v29, %v2622_v29  ;;  %v2640_v32 = vpack.c.bf16 %v2624_v30, %v2624_v30  ;;  %v9237_v30 = vld [vmem:[#allocation11 + $0x240] sm:$0xff]  }
 0x889   : > { %3716 = vmatprep.mubr.bf16.mxu1 %v2638_v31  ;;  %3756 = vmatprep.mubr.bf16.mxu0 %v2640_v32  ;;  %v9238_v31 = vld [vmem:[#allocation11 + $0x2c0] sm:$0xff]  }
 0x88a   : > { %3717 = vmatmul.mubr.bf16.vlgmr.msra.gmra.mrb[36].mxu1 %v2637_v35  ;;  %3757 = vmatmul.mubr.bf16.vlgmr.msra.gmra.mrb[40].mxu0 %v2639_v36  ;;  %v9239_v36 = vld [vmem:[#allocation11 + $0x200] sm:$0xff]  }
 0x88b   : > { %8472 = vmatpush3.bf16.msra.mxu1 %v9207_v33  ;;  %8494 = vmatpush3.bf16.msra.mxu0 %v9208_v34 }
 0x88c   : > { %8473 = vmatprep.subr.bf16.mxu1 %v9209_v37  ;;  %8495 = vmatprep.subr.bf16.mxu0 %v9210_v38  ;;  %v9240_v37 = vld [vmem:[#allocation11 + $0x280] sm:$0xff]  }
 0x88f   : > { %8474 = vmatpush3.bf16.msra.mxu1 %v9211_v39  ;;  %8496 = vmatpush3.bf16.msra.mxu0 %v9212_v40  ;;  %v9241_v40 = vld [vmem:[#allocation11 + $0x248] sm:$0xff]  }
 0x890   : > { %8475 = vmatprep.subr.bf16.mxu1 %v9213_v41  ;;  %8497 = vmatprep.subr.bf16.mxu0 %v9214_v42  ;;  %v9242_v41 = vld [vmem:[#allocation11 + $0x2c8] sm:$0xff]  }
 0x891   : > { %v9243_v42 = vld [vmem:[#allocation11 + $0x208] sm:$0xff]  }
 0x893   : > { %8476 = vmatpush3.bf16.msra.mxu1 %v9215_v43  ;;  %8498 = vmatpush3.bf16.msra.mxu0 %v9216_v44  ;;  %v9244_v43 = vld [vmem:[#allocation11 + $0x288] sm:$0xff]   ;;  %v9245_v44 = vld [vmem:[#allocation11 + $0x250] sm:$0xff]  }
 0x894   : > { %8477 = vmatprep.subr.bf16.mxu1 %v9217_v45  ;;  %8499 = vmatprep.subr.bf16.mxu0 %v9218_v46  ;;  %v9246_v45 = vld [vmem:[#allocation11 + $0x2d0] sm:$0xff]  }
 0x895   : > { %v9247_v46 = vld [vmem:[#allocation11 + $0x210] sm:$0xff]  }
 0x897   : > { %8478 = vmatpush3.bf16.msra.mxu1 %v9219_v16  ;;  %8500 = vmatpush3.bf16.msra.mxu0 %v9220_v47  ;;  %v9248_v16 = vld [vmem:[#allocation11 + $0x290] sm:$0xff]   ;;  %v9249_v47 = vld [vmem:[#allocation11 + $0x258] sm:$0xff]  }
 0x898   : > { %8479 = vmatprep.subr.bf16.mxu1 %v9221_v48  ;;  %8501 = vmatprep.subr.bf16.mxu0 %v9222_v49  ;;  %v9250_v48 = vld [vmem:[#allocation11 + $0x2d8] sm:$0xff]  }
 0x899   : > { %v9251_v49 = vld [vmem:[#allocation11 + $0x218] sm:$0xff]  }
 0x89b   : > { %8480 = vmatpush3.bf16.msra.mxu1 %v9223_v50  ;;  %8502 = vmatpush3.bf16.msra.mxu0 %v9224_v51  ;;  %v9252_v50 = vld [vmem:[#allocation11 + $0x298] sm:$0xff]   ;;  %v9253_v51 = vld [vmem:[#allocation11 + $0x260] sm:$0xff]  }
 0x89c   : > { %8481 = vmatprep.subr.bf16.mxu1 %v9225_v52  ;;  %8503 = vmatprep.subr.bf16.mxu0 %v9226_v53  ;;  %v9254_v52 = vld [vmem:[#allocation11 + $0x2e0] sm:$0xff]  }
 0x89d   : > { %v9255_v53 = vld [vmem:[#allocation11 + $0x220] sm:$0xff]  }
 0x89f   : > { %8482 = vmatpush3.bf16.msra.mxu1 %v9227_v56  ;;  %8504 = vmatpush3.bf16.msra.mxu0 %v9228_v57  ;;  %v9256_v56 = vld [vmem:[#allocation11 + $0x2a0] sm:$0xff]   ;;  %v9257_v57 = vld [vmem:[#allocation11 + $0x268] sm:$0xff]  }
 0x8a0   : > { %8483 = vmatprep.subr.bf16.mxu1 %v9229_v61  ;;  %8505 = vmatprep.subr.bf16.mxu0 %v9230_v62  ;;  %v9258_v61 = vld [vmem:[#allocation11 + $0x2e8] sm:$0xff]  }
 0x8a1   : > { %v2409_v9 = vpop.f32.mrb[24].mxu1  ;;  %v2450_v11 = vpop.f32.mrb[28].mxu0  ;;  %v9259_v62 = vld [vmem:[#allocation11 + $0x228] sm:$0xff]  }
 0x8a2   : > { %v2410_v12 = vadd.f32 %v2409_v9, %v1592_v63  ;;  %v2451_v13 = vadd.f32 %v2450_v11, %v1600_v1  ;;  %v2411_v14 = vpop.f32.mrb[25].mxu1  ;;  %v2452_v17 = vpop.f32.mrb[29].mxu0  ;;  %v9260_v63 = vld [vmem:[#allocation11 + $0x2a8] sm:$0xff]   ;;  %v10276_v1 = vld [vmem:[%s10603_s8 + $0x8] sm:$0xff]  ;;  %v9263_v9 = vld [vmem:[#allocation11 + $0x230] sm:$0xff]  }
 0x8a3   : > { %v2412_v18 = vadd.f32 %v2411_v14, %v1596_v2  ;;  %v2453_v20 = vadd.f32 %v2452_v17, %v1604_v5  ;;  %v2413_v23 = vpop.f32.mrb[26].mxu1  ;;  %v2454_v25 = vpop.f32.mrb[30].mxu0  ;;  %8484 = vmatpush3.bf16.msra.mxu1 %v9231_v21  ;;  %8506 = vmatpush3.bf16.msra.mxu0 %v9232_v6  ;;  %v9261_v2 = vld [vmem:[#allocation11 + $0x270] sm:$0xff]   ;;  %v1608_v21 = vrot.slane %v10276_v1, %v10093_v24 }
 0x8a4   : > { %v2625_v10 = vmax.f32 %v2410_v12, 0.0  ;;  %v2627_v27 = vmax.f32 %v2451_v13, 0.0  ;;  %v2414_v28 = vpop.f32.mrb[27].mxu1  ;;  %v2455_v29 = vpop.f32.mrb[31].mxu0  ;;  %8485 = vmatprep.subr.bf16.mxu1 %v9233_v7  ;;  %8507 = vmatprep.subr.bf16.mxu0 %v9234_v8  ;;  %v9262_v5 = vld [vmem:[#allocation11 + $0x2f0] sm:$0xff]   ;;  %v1616_v6 = vrot.slane %v10276_v1, %v10138_v58  ;;  %v1612_v7 = vrot.slane %v10276_v1, %v10088_v22  ;;  %v9265_v12 = vld [vmem:[#allocation11 + $0x278] sm:$0xff]  }
 0x8a5   : > { %v2626_v32 = vmax.f32 %v2412_v18, 0.0  ;;  %v2628_v33 = vmax.f32 %v2453_v20, 0.0  ;;  %v1620_v8 = vrot.slane %v10276_v1, %v10243_v4  ;;  %v9264_v11 = vld [vmem:[#allocation11 + $0x2b0] sm:$0xff]   ;;  %v9266_v13 = vld [vmem:[#allocation11 + $0x2f8] sm:$0xff]  }
 0x8a6   : > { %v2641_v38 = vpack.c.bf16 %v2625_v10, %v2625_v10  ;;  %v2643_v39 = vpack.c.bf16 %v2627_v27, %v2627_v27  ;;  %v9267_v28 = vld [vmem:[#allocation11 + $0x238] sm:$0xff]  }
 0x8a7   : > { %v2642_v34 = vpack.c.bf16 %v2626_v32, %v2626_v32  ;;  %v2644_v35 = vpack.c.bf16 %v2628_v33, %v2628_v33  ;;  %8486 = vmatpush3.bf16.msra.mxu1 %v9235_v26  ;;  %8508 = vmatpush3.bf16.msra.mxu0 %v9236_v3  ;;  %v9268_v29 = vld [vmem:[#allocation11 + $0x2b8] sm:$0xff]  }
 0x8a8   : > { %8515 = vmatprep.subr.bf16.mxu1 %v9237_v30  ;;  %8537 = vmatprep.subr.bf16.mxu0 %v9238_v31 }
 0x8a9   : > { %3796 = vmatprep.mubr.bf16.mxu1 %v2642_v34  ;;  %3836 = vmatprep.mubr.bf16.mxu0 %v2644_v35  ;;  %v9269_v34 = vld [vmem:[#allocation11 + $0x340] sm:$0xff]  }
 0x8aa   : > { %3797 = vmatmul.mubr.bf16.vlgmr.msra.gmra.mrb[40].mxu1 %v2641_v38  ;;  %3837 = vmatmul.mubr.bf16.vlgmr.msra.gmra.mrb[44].mxu0 %v2643_v39  ;;  %v9270_v35 = vld [vmem:[#allocation11 + $0x3c0] sm:$0xff]  }
 0x8ab   : > { %8516 = vmatpush3.bf16.msra.mxu1 %v9239_v36  ;;  %8538 = vmatpush3.bf16.msra.mxu0 %v9240_v37 }
 0x8ac   : > { %8517 = vmatprep.subr.bf16.mxu1 %v9241_v40  ;;  %8539 = vmatprep.subr.bf16.mxu0 %v9242_v41  ;;  %v9271_v40 = vld [vmem:[#allocation11 + $0x300] sm:$0xff]  }
 0x8ad   : > { %v9272_v41 = vld [vmem:[#allocation11 + $0x380] sm:$0xff]  }
 0x8af   : > { %8518 = vmatpush3.bf16.msra.mxu1 %v9243_v42  ;;  %8540 = vmatpush3.bf16.msra.mxu0 %v9244_v43 }
 0x8b0   : > { %8519 = vmatprep.subr.bf16.mxu1 %v9245_v44  ;;  %8541 = vmatprep.subr.bf16.mxu0 %v9246_v45  ;;  %v9273_v44 = vld [vmem:[#allocation11 + $0x348] sm:$0xff]  }
 0x8b1   : > { %v9274_v45 = vld [vmem:[#allocation11 + $0x3c8] sm:$0xff]  }
 0x8b3   : > { %8520 = vmatpush3.bf16.msra.mxu1 %v9247_v46  ;;  %8542 = vmatpush3.bf16.msra.mxu0 %v9248_v16  ;;  %v9275_v46 = vld [vmem:[#allocation11 + $0x308] sm:$0xff]  }
 0x8b4   : > { %8521 = vmatprep.subr.bf16.mxu1 %v9249_v47  ;;  %8543 = vmatprep.subr.bf16.mxu0 %v9250_v48  ;;  %v9276_v16 = vld [vmem:[#allocation11 + $0x388] sm:$0xff]   ;;  %v9277_v47 = vld [vmem:[#allocation11 + $0x350] sm:$0xff]  }
 0x8b5   : > { %v9278_v48 = vld [vmem:[#allocation11 + $0x3d0] sm:$0xff]  }
 0x8b7   : > { %8522 = vmatpush3.bf16.msra.mxu1 %v9251_v49  ;;  %8544 = vmatpush3.bf16.msra.mxu0 %v9252_v50  ;;  %v9279_v49 = vld [vmem:[#allocation11 + $0x310] sm:$0xff]  }
 0x8b8   : > { %8523 = vmatprep.subr.bf16.mxu1 %v9253_v51  ;;  %8545 = vmatprep.subr.bf16.mxu0 %v9254_v52  ;;  %v9280_v50 = vld [vmem:[#allocation11 + $0x390] sm:$0xff]   ;;  %v9281_v51 = vld [vmem:[#allocation11 + $0x358] sm:$0xff]  }
 0x8b9   : > { %v9282_v52 = vld [vmem:[#allocation11 + $0x3d8] sm:$0xff]  }
 0x8bb   : > { %8524 = vmatpush3.bf16.msra.mxu1 %v9255_v53  ;;  %8546 = vmatpush3.bf16.msra.mxu0 %v9256_v56  ;;  %v9283_v53 = vld [vmem:[#allocation11 + $0x318] sm:$0xff]  }
 0x8bc   : > { %8525 = vmatprep.subr.bf16.mxu1 %v9257_v57  ;;  %8547 = vmatprep.subr.bf16.mxu0 %v9258_v61  ;;  %v9284_v56 = vld [vmem:[#allocation11 + $0x398] sm:$0xff]   ;;  %v9285_v57 = vld [vmem:[#allocation11 + $0x360] sm:$0xff]  }
 0x8bd   : > { %v9286_v61 = vld [vmem:[#allocation11 + $0x3e0] sm:$0xff]  }
 0x8bf   : > { %8526 = vmatpush3.bf16.msra.mxu1 %v9259_v62  ;;  %8548 = vmatpush3.bf16.msra.mxu0 %v9260_v63  ;;  %v9287_v62 = vld [vmem:[#allocation11 + $0x320] sm:$0xff]  }
 0x8c0   : > { %8527 = vmatprep.subr.bf16.mxu1 %v9261_v2  ;;  %8549 = vmatprep.subr.bf16.mxu0 %v9262_v5  ;;  %v9288_v63 = vld [vmem:[#allocation11 + $0x3a0] sm:$0xff]   ;;  %v9289_v2 = vld [vmem:[#allocation11 + $0x368] sm:$0xff]  }
 0x8c1   : > { %v2491_v14 = vpop.f32.mrb[28].mxu1  ;;  %v2532_v17 = vpop.f32.mrb[32].mxu0  ;;  %v9290_v5 = vld [vmem:[#allocation11 + $0x3e8] sm:$0xff]  }
 0x8c2   : > { %v2492_v18 = vadd.f32 %v2491_v14, %v1608_v21  ;;  %v2533_v20 = vadd.f32 %v2532_v17, %v1616_v6  ;;  %v2493_v23 = vpop.f32.mrb[29].mxu1  ;;  %v2534_v25 = vpop.f32.mrb[33].mxu0  ;;  %v9291_v21 = vld [vmem:[#allocation11 + $0x328] sm:$0xff]   ;;  %v9295_v14 = vld [vmem:[#allocation11 + $0x330] sm:$0xff]  }
 0x8c3   : > { %v2494_v26 = vadd.f32 %v2493_v23, %v1612_v7  ;;  %v2535_v3 = vadd.f32 %v2534_v25, %v1620_v8  ;;  %v2495_v10 = vpop.f32.mrb[30].mxu1  ;;  %v2536_v27 = vpop.f32.mrb[34].mxu0  ;;  %8528 = vmatpush3.bf16.msra.mxu1 %v9263_v9  ;;  %8550 = vmatpush3.bf16.msra.mxu0 %v9264_v11  ;;  %v9292_v6 = vld [vmem:[#allocation11 + $0x3a8] sm:$0xff]   ;;  %v9293_v7 = vld [vmem:[#allocation11 + $0x370] sm:$0xff]   ;;  %v1624_v9 = vrot.slane %v10276_v1, %v10254_v54 }
 0x8c4   : > { %v2629_v30 = vmax.f32 %v2492_v18, 0.0  ;;  %v2631_v31 = vmax.f32 %v2533_v20, 0.0  ;;  %v2496_v32 = vpop.f32.mrb[31].mxu1  ;;  %v2537_v33 = vpop.f32.mrb[35].mxu0  ;;  %8529 = vmatprep.subr.bf16.mxu1 %v9265_v12  ;;  %8551 = vmatprep.subr.bf16.mxu0 %v9266_v13  ;;  %v9294_v8 = vld [vmem:[#allocation11 + $0x3f0] sm:$0xff]   ;;  %v1632_v11 = vrot.slane %v10276_v1, %v10257_v55  ;;  %v1628_v12 = vrot.slane %v10276_v1, %v10260_v59  ;;  %v9297_v18 = vld [vmem:[#allocation11 + $0x378] sm:$0xff]  }
 0x8c5   : > { %v2630_v36 = vmax.f32 %v2494_v26, 0.0  ;;  %v2632_v37 = vmax.f32 %v2535_v3, 0.0  ;;  %v1636_v13 = vrot.slane %v10276_v1, %v10263_v60  ;;  %v9296_v17 = vld [vmem:[#allocation11 + $0x3b0] sm:$0xff]   ;;  %v9298_v20 = vld [vmem:[#allocation11 + $0x3f8] sm:$0xff]  }
 0x8c6   : > { %v2645_v42 = vpack.c.bf16 %v2629_v30, %v2629_v30  ;;  %v2647_v43 = vpack.c.bf16 %v2631_v31, %v2631_v31  ;;  %v9299_v32 = vld [vmem:[#allocation11 + $0x338] sm:$0xff]  }
 0x8c7   : > { %v2646_v38 = vpack.c.bf16 %v2630_v36, %v2630_v36  ;;  %v2648_v39 = vpack.c.bf16 %v2632_v37, %v2632_v37  ;;  %8530 = vmatpush3.bf16.msra.mxu1 %v9267_v28  ;;  %8552 = vmatpush3.bf16.msra.mxu0 %v9268_v29  ;;  %v9300_v1 = vld [vmem:[#allocation11 + $0x3b8] sm:$0xff]  }
 0x8c8   : > { %8559 = vmatprep.subr.bf16.mxu1 %v9269_v34  ;;  %8581 = vmatprep.subr.bf16.mxu0 %v9270_v35 }
 0x8c9   : > { %3876 = vmatprep.mubr.bf16.mxu1 %v2646_v38  ;;  %3916 = vmatprep.mubr.bf16.mxu0 %v2648_v39 }
 0x8ca   : > { %3877 = vmatmul.mubr.bf16.vlgmr.msra.gmra.mrb[44].mxu1 %v2645_v42  ;;  %3917 = vmatmul.mubr.bf16.vlgmr.msra.gmra.mrb[48].mxu0 %v2647_v43 }
 0x8cb   : > { %8560 = vmatpush3.bf16.msra.mxu1 %v9271_v40  ;;  %8582 = vmatpush3.bf16.msra.mxu0 %v9272_v41 }
 0x8cc   : > { %8561 = vmatprep.subr.bf16.mxu1 %v9273_v44  ;;  %8583 = vmatprep.subr.bf16.mxu0 %v9274_v45  ;;  %v7925_v45 = vld [vmem:[%s10605_s10] ss:$0 sm:$0xff] }
 0x8cf   : > { %8562 = vmatpush3.bf16.msra.mxu1 %v9275_v46  ;;  %8584 = vmatpush3.bf16.msra.mxu0 %v9276_v16 }
 0x8d0   : > { %8563 = vmatprep.subr.bf16.mxu1 %v9277_v47  ;;  %8585 = vmatprep.subr.bf16.mxu0 %v9278_v48 }
 0x8d3   : > { %8564 = vmatpush3.bf16.msra.mxu1 %v9279_v49  ;;  %8586 = vmatpush3.bf16.msra.mxu0 %v9280_v50 }
 0x8d4   : > { %8565 = vmatprep.subr.bf16.mxu1 %v9281_v51  ;;  %8587 = vmatprep.subr.bf16.mxu0 %v9282_v52 }
 0x8d7   : > { %8566 = vmatpush3.bf16.msra.mxu1 %v9283_v53  ;;  %8588 = vmatpush3.bf16.msra.mxu0 %v9284_v56 }
 0x8d8   : > { %8567 = vmatprep.subr.bf16.mxu1 %v9285_v57  ;;  %8589 = vmatprep.subr.bf16.mxu0 %v9286_v61 }
 0x8db   : > { %8568 = vmatpush3.bf16.msra.mxu1 %v9287_v62  ;;  %8590 = vmatpush3.bf16.msra.mxu0 %v9288_v63 }
 0x8dc   : > { %8569 = vmatprep.subr.bf16.mxu1 %v9289_v2  ;;  %8591 = vmatprep.subr.bf16.mxu0 %v9290_v5 }
 0x8df   : > { %8570 = vmatpush3.bf16.msra.mxu1 %v9291_v21  ;;  %8592 = vmatpush3.bf16.msra.mxu0 %v9292_v6 }
 0x8e0   : > { %8571 = vmatprep.subr.bf16.mxu1 %v9293_v7  ;;  %8593 = vmatprep.subr.bf16.mxu0 %v9294_v8 }
 0x8e1   : > { %v2573_v23 = vpop.f32.mrb[32].mxu1  ;;  %v2614_v25 = vpop.f32.mrb[36].mxu0 }
 0x8e2   : > { %v2574_v26 = vadd.f32 %v2573_v23, %v1624_v9  ;;  %v2615_v3 = vadd.f32 %v2614_v25, %v1632_v11  ;;  %v2575_v10 = vpop.f32.mrb[33].mxu1  ;;  %v2616_v27 = vpop.f32.mrb[37].mxu0 }
 0x8e3   : > { %v2576_v28 = vadd.f32 %v2575_v10, %v1628_v12  ;;  %v2617_v29 = vadd.f32 %v2616_v27, %v1636_v13  ;;  %v2577_v30 = vpop.f32.mrb[34].mxu1  ;;  %v2618_v31 = vpop.f32.mrb[38].mxu0  ;;  %8572 = vmatpush3.bf16.msra.mxu1 %v9295_v14  ;;  %8594 = vmatpush3.bf16.msra.mxu0 %v9296_v17 }
 0x8e4   : > { %v2633_v33 = vmax.f32 %v2574_v26, 0.0  ;;  %v2635_v34 = vmax.f32 %v2615_v3, 0.0  ;;  %v2578_v35 = vpop.f32.mrb[35].mxu1  ;;  %v2619_v36 = vpop.f32.mrb[39].mxu0  ;;  %8573 = vmatprep.subr.bf16.mxu1 %v9297_v18  ;;  %8595 = vmatprep.subr.bf16.mxu0 %v9298_v20 }
 0x8e5   : > { %v2634_v37 = vmax.f32 %v2576_v28, 0.0  ;;  %v2636_v38 = vmax.f32 %v2617_v29, 0.0 }
 0x8e6   : > { %v2649_v41 = vpack.c.bf16 %v2633_v33, %v2633_v33  ;;  %v2651_v42 = vpack.c.bf16 %v2635_v34, %v2635_v34 }
 0x8e7   : > { %v2650_v39 = vpack.c.bf16 %v2634_v37, %v2634_v37  ;;  %v2652_v40 = vpack.c.bf16 %v2636_v38, %v2636_v38  ;;  %8574 = vmatpush3.bf16.msra.mxu1 %v9299_v32  ;;  %8596 = vmatpush3.bf16.msra.mxu0 %v9300_v1 }
 0x8e8   : > { %8910 = vmatprep.subr.bf16.mxu0 %v9782_v19 }
 0x8e9   : > { %3956 = vmatprep.mubr.bf16.mxu1 %v2650_v39  ;;  %3996 = vmatprep.mubr.bf16.mxu0 %v2652_v40  ;;  %v9301_v40 = vld [vmem:[#allocation2 + $0xc0] ss:$12 sps:$4 sm:$0xff]  }
 0x8ea   : > { %3957 = vmatmul.mubr.bf16.vlgmr.msra.gmra.mrb[48].mxu1 %v2649_v41  ;;  %3997 = vmatmul.mubr.bf16.vlgmr.msra.gmra.mrb[52].mxu0 %v2651_v42  ;;  %v9303_v41 = vld [vmem:[#allocation2 + $0xc4] ss:$12 sps:$4 sm:$0xff]   ;;  %v9304_v42 = vld [vmem:[#allocation2 + $0xc8] ss:$12 sps:$4 sm:$0xff]  }
 0x8eb   : > { %4244 = vmatprep.mubr.bf16.mxu1 %v9781_v0  ;;  %8926 = vmatprep.mubr.msk.bf16.mxu0 %vm9783_vm0, %v9782_v19 }
 0x8ec   : > { %4212 = vmatprep.subr.bf16.mxu1 %v9303_v41  ;;  %8911 = vmatpush3.bf16.msra.mxu0 %v9304_v42 }
 0x8ed   : > { %4213 = vmatpush1.bf16.msra.mxu1 %v9301_v40  ;;  %8912 = vmatprep.subr.bf16.mxu0 %v9782_v19 }
 0x95d   : > { %v8443_v43 = vpop.f32.mrb[36].mxu1  ;;  %v8465_v44 = vpop.f32.mrb[40].mxu0 }
 0x95e   : > { %v8444_v46 = vpop.f32.mrb[37].mxu1  ;;  %v8466_v16 = vpop.f32.mrb[41].mxu0 }
 0x95f   : > { %v8445_v47 = vadd.f32 %v8444_v46, %v8443_v43  ;;  %v8467_v48 = vadd.f32 %v8466_v16, %v8465_v44  ;;  %v8446_v49 = vpop.f32.mrb[38].mxu1  ;;  %v8468_v50 = vpop.f32.mrb[42].mxu0  ;;  %v9307_v43 = vld [vmem:[#allocation2 + $0xdc] ss:$12 sps:$4 sm:$0xff]   ;;  %v9308_v44 = vld [vmem:[#allocation2 + $0xe0] ss:$12 sps:$4 sm:$0xff]  }
 0x960   : > { %v8447_v51 = vpop.f32.mrb[39].mxu1  ;;  %v8469_v52 = vpop.f32.mrb[43].mxu0  ;;  %4214 = vmatprep.subr.bf16.mxu1 %v9307_v43  ;;  %v9311_v46 = vld [vmem:[#allocation2 + $0xf4] ss:$12 sps:$4 sm:$0xff]   ;;  %8913 = vmatpush3.bf16.msra.mxu0 %v9308_v44  ;;  %v9309_v16 = vld [vmem:[#allocation2 + $0xf0] ss:$12 sps:$4 sm:$0xff]  }
 0x961   : > { %v3719_v53 = vadd.f32 %v8445_v47, %v7925_v45  ;;  %v9305_v45 = vld [vmem:[#allocation2 + $0xd8] ss:$12 sps:$4 sm:$0xff]   ;;  %8914 = vmatprep.subr.bf16.mxu0 %v9782_v19  ;;  %v9313_v52 = vld [vmem:[#allocation2 + $0x108] ss:$12 sps:$4 sm:$0xff]  }
 0x962   : > { %4215 = vmatpush1.bf16.msra.mxu1 %v9305_v45  ;;  %v9312_v50 = vld [vmem:[#allocation2 + $0xf8] ss:$12 sps:$4 sm:$0xff]  }
 0x963   : > { %v3759_v56 = vadd.f32 %v8467_v48, %v3719_v53  ;;  %4216 = vmatprep.subr.bf16.mxu1 %v9311_v46  ;;  %v9315_v51 = vld [vmem:[#allocation2 + $0x10c] ss:$12 sps:$4 sm:$0xff]   ;;  %v9316_v53 = vld [vmem:[#allocation2 + $0x110] ss:$12 sps:$4 sm:$0xff]  }
 0x964   : > { %8915 = vmatpush3.bf16.msra.mxu0 %v9312_v50 }
 0x965   : > { %8916 = vmatprep.subr.bf16.mxu0 %v9782_v19 }
 0x966   : > { %4217 = vmatpush1.bf16.msra.mxu1 %v9309_v16 }
 0x967   : > { %4218 = vmatprep.subr.bf16.mxu1 %v9315_v51 }
 0x968   : > { %8917 = vmatpush3.bf16.msra.mxu0 %v9316_v53 }
 0x969   : > { %8918 = vmatprep.subr.bf16.mxu0 %v9782_v19 }
 0x96a   : > { %4219 = vmatpush1.bf16.msra.mxu1 %v9313_v52 }
 0x97d   : > { %v8487_v57 = vpop.f32.mrb[40].mxu1  ;;  %v8509_v61 = vpop.f32.mrb[44].mxu0 }
 0x97e   : > { %v8488_v62 = vpop.f32.mrb[41].mxu1  ;;  %v8510_v63 = vpop.f32.mrb[45].mxu0 }
 0x97f   : > { %v8489_v2 = vadd.f32 %v8488_v62, %v8487_v57  ;;  %v8511_v5 = vadd.f32 %v8510_v63, %v8509_v61  ;;  %v8490_v21 = vpop.f32.mrb[42].mxu1  ;;  %v8512_v6 = vpop.f32.mrb[46].mxu0  ;;  %v9317_v57 = vld [vmem:[#allocation2 + $0x120] ss:$12 sps:$4 sm:$0xff]   ;;  %v9320_v61 = vld [vmem:[#allocation2 + $0x128] ss:$12 sps:$4 sm:$0xff]  }
 0x980   : > { %v8491_v7 = vpop.f32.mrb[43].mxu1  ;;  %v8513_v8 = vpop.f32.mrb[47].mxu0  ;;  %8919 = vmatpush3.bf16.msra.mxu0 %v9320_v61  ;;  %v9323_v62 = vld [vmem:[#allocation2 + $0x13c] ss:$12 sps:$4 sm:$0xff]   ;;  %v9321_v63 = vld [vmem:[#allocation2 + $0x138] ss:$12 sps:$4 sm:$0xff]  }
 0x981   : > { %v3799_v9 = vadd.f32 %v8489_v2, %v3759_v56  ;;  %v9319_v56 = vld [vmem:[#allocation2 + $0x124] ss:$12 sps:$4 sm:$0xff]   ;;  %8920 = vmatprep.subr.bf16.mxu0 %v9782_v19  ;;  %v9324_v2 = vld [vmem:[#allocation2 + $0x140] ss:$12 sps:$4 sm:$0xff]   ;;  %v9329_v8 = vld [vmem:[#allocation2 + $0x168] ss:$12 sps:$4 sm:$0xff]  }
 0x982   : > { %4220 = vmatprep.subr.bf16.mxu1 %v9319_v56  ;;  %v9325_v21 = vld [vmem:[#allocation2 + $0x150] ss:$12 sps:$4 sm:$0xff]   ;;  %v9328_v6 = vld [vmem:[#allocation2 + $0x158] ss:$12 sps:$4 sm:$0xff]  }
 0x983   : > { %v3839_v11 = vadd.f32 %v8511_v5, %v3799_v9  ;;  %4221 = vmatpush1.bf16.msra.mxu1 %v9317_v57  ;;  %v9327_v5 = vld [vmem:[#allocation2 + $0x154] ss:$12 sps:$4 sm:$0xff]   ;;  %v9331_v7 = vld [vmem:[#allocation2 + $0x16c] ss:$12 sps:$4 sm:$0xff]   ;;  %v9332_v9 = vld [vmem:[#allocation2 + $0x170] ss:$12 sps:$4 sm:$0xff]  }
 0x984   : > { %4222 = vmatprep.subr.bf16.mxu1 %v9323_v62  ;;  %8921 = vmatpush3.bf16.msra.mxu0 %v9324_v2 }
 0x985   : > { %8922 = vmatprep.subr.bf16.mxu0 %v9782_v19 }
 0x987   : > { %4223 = vmatpush1.bf16.msra.mxu1 %v9321_v63 }
 0x988   : > { %4224 = vmatprep.subr.bf16.mxu1 %v9327_v5  ;;  %8923 = vmatpush3.bf16.msra.mxu0 %v9328_v6 }
 0x989   : > { %8924 = vmatprep.subr.bf16.mxu0 %v9782_v19 }
 0x98b   : > { %4225 = vmatpush1.bf16.msra.mxu1 %v9325_v21 }
 0x98c   : > { %4226 = vmatprep.subr.bf16.mxu1 %v9331_v7  ;;  %8925 = vmatpush3.bf16.msra.mxu0 %v9332_v9 }
 0x98d   : > { %8954 = vmatprep.subr.bf16.mxu0 %v9782_v19 }
 0x98f   : > { %4227 = vmatpush1.bf16.msra.mxu1 %v9329_v8 }
 0x990   : > { %8930 = vmatprep.subr.bf16.mxu1 %v9782_v19 }
 0x99d   : > { %v8531_v12 = vpop.f32.mrb[44].mxu1  ;;  %v8553_v13 = vpop.f32.mrb[48].mxu0 }
 0x99e   : > { %v8532_v14 = vpop.f32.mrb[45].mxu1  ;;  %v8554_v17 = vpop.f32.mrb[49].mxu0 }
 0x99f   : > { %v8533_v18 = vadd.f32 %v8532_v14, %v8531_v12  ;;  %v8555_v20 = vadd.f32 %v8554_v17, %v8553_v13  ;;  %v8534_v23 = vpop.f32.mrb[46].mxu1  ;;  %v8556_v25 = vpop.f32.mrb[50].mxu0  ;;  %v8054_v17 = vld [vmem:[%s10606_s11] ss:$0 sm:$0xff] }
 0x9a0   : > { %v8535_v26 = vpop.f32.mrb[47].mxu1  ;;  %v8557_v3 = vpop.f32.mrb[51].mxu0 }
 0x9a1   : > { %v3879_v10 = vadd.f32 %v8533_v18, %v3839_v11  ;;  %v4067_v3 = vld [vmem:[#allocation5 + $0x3] sm:$0x7] }
 0x9a3   : > { %v3919_v27 = vadd.f32 %v8555_v20, %v3879_v10  ;;  %v8055_v20 = vld [vmem:[%s10658_s23] ss:$0 sm:$0xff]  ;;  %v4076_v10 = vrot.slane %v4067_v3, %v10088_v22 }
 0x9bd   : > { %v8575_v28 = vpop.f32.mrb[48].mxu1  ;;  %v8597_v29 = vpop.f32.mrb[52].mxu0 }
 0x9be   : > { %v8576_v30 = vpop.f32.mrb[49].mxu1  ;;  %v8598_v31 = vpop.f32.mrb[53].mxu0 }
 0x9bf   : > { %v8577_v32 = vadd.f32 %v8576_v30, %v8575_v28  ;;  %v8599_v1 = vadd.f32 %v8598_v31, %v8597_v29  ;;  %v8578_v33 = vpop.f32.mrb[50].mxu1  ;;  %v8600_v34 = vpop.f32.mrb[54].mxu0  ;;  %v4080_v31 = vrot.slane %v4067_v3, %v10138_v58 }
 0x9c0   : > { %v8579_v35 = vpop.f32.mrb[51].mxu1  ;;  %v8601_v36 = vpop.f32.mrb[55].mxu0 }
 0x9c1   : > { %v3959_v37 = vadd.f32 %v8577_v32, %v3919_v27  ;;  %v4072_v36 = vrot.slane %v4067_v3, %v10093_v24 }
 0x9c3   : > { %v3999_v38 = vadd.f32 %v8599_v1, %v3959_v37 }
 0x9c5   : > { %v4004_v39 = vadd.f32 %v3999_v38, %v10217_v15 }
 0x9c7   : > { %4007 = vadd.xlane.f32.xlu0 %v4004_v39 }
 0xa54   : > { %v4008_v15 = vpop.xlane.xlu0 %4007 }
 0xa55   : > { %v4009_v47 = vmul.f32 0.0078125, %v4008_v15 }
 0xa57   : > { %v4010_v48 = vsub.f32 %v4004_v39, %v4009_v47 }
 0xa59   : > { %v4011_v49 = vmul.f32 %v4010_v48, %v4010_v48 }
 0xa5b   : > { %4012 = vadd.xlane.f32.xlu0 %v4011_v49 }
 0xae8   : > { %v4013_v11 = vpop.xlane.xlu0 %4012 }
 0xae9   : > { %v4014_v12 = vmul.f32 0.0078125, %v4013_v11 }
 0xaeb   : > { %v4015_v13 = vadd.f32 1e-05, %v4014_v12 }
 0xaed   : > { %9495 = vrsqrt.f32 %v4015_v13 }
 0xaf7   : > { %v9496_v14 = vpop.eup %9495 }
 0xaf8   : > { %v4017_v18 = vmul.f32 %v9496_v14, %v4010_v48 }
 0xafa   : > { %v4024_v23 = vmul.f32 %v8054_v17, %v4017_v18 }
 0xafc   : > { %v10317_v25 = vadd.f32 %v8055_v20, %v4024_v23 }
 0xafe   : > { %v4032_v26 = vpack.c.bf16 %v10317_v25, %v10317_v25 }
 0xb00   : > { %4245 = vmatmul.mubr.bf16.vlgmr.msra.gmra.mrb[52].mxu1 %v4032_v26  ;;  %8927 = vmatmul.mubr.bf16.vlgmr.msra.gmra.mrb[56].mxu0 %v4032_v26 }
 0xb01   : > { %8932 = vmatprep.mubr.msk.bf16.mxu1 %vm9783_vm0, %v9782_v19  ;;  %8956 = vmatprep.mubr.msk.bf16.mxu0 %vm9783_vm0, %v9782_v19 }
 0xbd3   : > { %v4246_v27 = vpop.f32.mrb[52].mxu1  ;;  %v4287_v28 = vpop.f32.mrb[56].mxu0 }
 0xbd4   : > { %v4248_v29 = vpop.f32.mrb[53].mxu1  ;;  %v8928_v30 = vpop.f32.mrb[57].mxu0  ;;  %v4288_v38 = vadd.f32 %v4287_v28, %v4080_v31  ;;  %v4247_v40 = vadd.f32 %v4246_v27, %v4072_v36 }
 0xbd5   : > { %v4249_v32 = vadd.f32 %v4248_v29, %v4076_v10  ;;  %v4250_v1 = vpop.f32.mrb[54].mxu1  ;;  %v4290_v33 = vpop.f32.mrb[58].mxu0 }
 0xbd6   : > { %v4251_v34 = vpop.f32.mrb[55].mxu1  ;;  %v8929_v35 = vpop.f32.mrb[59].mxu0  ;;  %v10330_v41 = vpack.c.bf16 %v4288_v38, %v4288_v38  ;;  %v4293_v42 = vpack.c.bf16 %v4247_v40, %v4247_v40 }
 0xbd7   : > { %v4294_v37 = vpack.c.bf16 %v4249_v32, %v4249_v32 }
 0xbd8   : > { %v4358_v43 = vsel %vm905_vm3, %v10330_v41, 0 }
 0xbd9   : > { %v4300_v39 = vsel %vm842_vm1, %v4294_v37, 0 }
 0xbda   : > { %8931 = vmatpush3.bf16.xpose.msra.mxu1 %v4300_v39 }
 0xbdb   : > { %8936 = vmatprep.subr.bf16.mxu1 %v9782_v19 }
 0xbe1   : > { %8933 = vmatmul.mubr.msk.bf16.vlgmr.msra.gmra.mrb[56].mxu1 %vm842_vm1, %v4293_v42 }
 0xbe2   : > { %8937 = vmatpush3.bf16.msra.mxu1 %v4358_v43  ;;  %8938 = vmatprep.mubr.msk.bf16.mxu1 %vm9783_vm0, %v9782_v19 }
 0xbe3   : > { %8942 = vmatprep.subr.bf16.mxu1 %v9782_v19 }
 0xcb4   : > { %v4336_v44 = vpop.f32.mrb[56].mxu1 }
 0xcb5   : > { %v8934_v45 = vpop.f32.mrb[57].mxu1  ;;  %v4342_v46 = vsel %vm889_vm2, %v4336_v44, -inf }
 0xcb6   : > { %4343 = vmax.xlane.f32.xlu1 %v4342_v46  ;;  %v4339_v16 = vpop.f32.mrb[58].mxu1 }
 0xcb7   : > { %v8935_v15 = vpop.f32.mrb[59].mxu1 }
 0xcc7   : > { %4404 = vrot.lane.b32.xlu1 %v4294_v37, %s9785_s26 }
 0xccb   : > { %4515 = vrot.lane.b32.xlu1 %v4294_v37, %s9784_s19 }
 0xccf   : > { %4513 = vrot.lane.b32.xlu1 %v4293_v42, %s9784_s19 }
 0xcd3   : > { %4623 = vrot.lane.b32.xlu1 %v4293_v42, %s9786_s2 }
 0xd43   : > { %v4344_v47 = vpop.xlane.xlu1 %4343 }
 0xd44   : > { %v4345_v48 = vsub.f32 %v4336_v44, %v4344_v47 }
 0xd46   : > { %v4346_v49 = vmul.f32 1.442695, %v4345_v48 }
 0xd47   : > { %v4405_v50 = vpop.permute.xlu1 %4404 }
 0xd48   : > { %9497 = vpow2.f32 %v4346_v49  ;;  %v4410_v7 = vsel %vm842_vm1, %v4405_v50, 0 }
 0xd4b   : > { %v4516_v51 = vpop.permute.xlu1 %4515 }
 0xd4c   : > { %v4521_v52 = vsel %vm842_vm1, %v4516_v51, 0 }
 0xd4d   : > { %8955 = vmatpush3.bf16.xpose.msra.mxu0 %v4521_v52 }
 0xd4e   : > { %8966 = vmatprep.subr.bf16.mxu0 %v9782_v19 }
 0xd4f   : > { %v4514_v56 = vpop.permute.xlu1 %4513 }
 0xd52   : > { %v9498_v53 = vpop.eup %9497 }
 0xd53   : > { %v4348_v57 = vsel %vm889_vm2, %v9498_v53, 0.0  ;;  %v4624_v8 = vpop.permute.xlu1 %4623 }
 0xd54   : > { %4349 = vadd.xlane.f32.xlu0 %v4348_v57  ;;  %8957 = vmatmul.mubr.msk.bf16.vlgmr.msra.gmra.mrb[60].mxu0 %vm842_vm1, %v4514_v56 }
 0xd55   : > { %8968 = vmatprep.mubr.msk.bf16.mxu0 %vm9783_vm0, %v9782_v19 }
 0xd6a   : > { %4401 = vrot.lane.b32.xlu0 %v4293_v42, %s9785_s26 }
 0xd6e   : > { %4625 = vrot.lane.b32.xlu0 %v4294_v37, %s9786_s2 }
 0xde1   : > { %v4350_v61 = vpop.xlane.xlu0 %4349 }
 0xde2   : > { %9499 = vrcp.f32 %v4350_v61 }
 0xde5   : > { %v4402_v62 = vpop.permute.xlu0 %4401 }
 0xde9   : > { %v4626_v63 = vpop.permute.xlu0 %4625 }
 0xdea   : > { %v4631_v2 = vsel %vm842_vm1, %v4626_v63, 0 }
 0xdeb   : > { %8967 = vmatpush3.bf16.xpose.msra.mxu0 %v4631_v2 }
 0xdec   : > { %v9500_v5 = vpop.eup %9499  ;;  %8978 = vmatprep.subr.bf16.mxu0 %v9782_v19 }
 0xded   : > { %v4352_v21 = vmul.f32 %v9500_v5, %v9498_v53 }
 0xdef   : > { %v4353_v6 = vpack.c.bf16 %v4352_v21, %v4352_v21 }
 0xdf1   : > { %8939 = vmatmul.mubr.msk.bf16.vlgmr.msra.gmra.mrb[60].mxu1 %vm889_vm2, %v4353_v6 }
 0xdf2   : > { %8943 = vmatpush3.bf16.xpose.msra.mxu1 %v4410_v7  ;;  %8969 = vmatmul.mubr.msk.bf16.vlgmr.msra.gmra.mrb[64].mxu0 %vm842_vm1, %v4624_v8  ;;  %v9333_v8 = vld [vmem:[%s10598_s3 + $0x40] sm:$0xff]  }
 0xdf3   : > { %8944 = vmatprep.mubr.msk.bf16.mxu1 %vm9783_vm0, %v9782_v19  ;;  %8948 = vmatprep.subr.bf16.mxu1 %v9782_v19 }
 0xdf4   : > { %8994 = vmatprep.mubr.msk.bf16.mxu0 %vm9783_vm0, %v9782_v19  ;;  %8979 = vmatpush3.bf16.msra.mxu0 %v9333_v8 }
 0xdf5   : > { %8980 = vmatprep.subr.bf16.mxu0 %v9782_v19 }
 0xdf9   : > { %8945 = vmatmul.mubr.msk.bf16.vlgmr.msra.gmra.mrb[64].mxu1 %vm842_vm1, %v4402_v62 }
 0xdfa   : > { %8950 = vmatprep.mubr.msk.bf16.mxu1 %vm9783_vm0, %v9782_v19 }
 0xe27   : > { %v4557_v9 = vpop.f32.mrb[60].mxu0 }
 0xe28   : > { %v8958_v11 = vpop.f32.mrb[61].mxu0  ;;  %v4563_v12 = vsel %vm889_vm2, %v4557_v9, -inf }
 0xe29   : > { %4564 = vmax.xlane.f32.xlu1 %v4563_v12  ;;  %v4560_v13 = vpop.f32.mrb[62].mxu0  ;;  %v9335_v11 = vld [vmem:[%s10598_s3 + $0x50] sm:$0xff]   ;;  %v9336_v12 = vld [vmem:[%s10598_s3 + $0x58] sm:$0xff]  }
 0xe2a   : > { %v8959_v14 = vpop.f32.mrb[63].mxu0  ;;  %v9337_v13 = vld [vmem:[%s10598_s3 + $0x60] sm:$0xff]  }
 0xe2b   : > { %v9338_v14 = vld [vmem:[%s10598_s3 + $0x68] sm:$0xff]  }
 0xeb6   : > { %v4565_v17 = vpop.xlane.xlu1 %4564 }
 0xeb7   : > { %v4566_v18 = vsub.f32 %v4557_v9, %v4565_v17  ;;  %v9334_v9 = vld [vmem:[%s10598_s3 + $0x48] sm:$0xff]   ;;  %v9339_v17 = vld [vmem:[%s10598_s3 + $0x70] sm:$0xff]  }
 0xeb8   : > { %8981 = vmatpush3.bf16.msra.mxu0 %v9334_v9 }
 0xeb9   : > { %v4567_v20 = vmul.f32 1.442695, %v4566_v18  ;;  %8982 = vmatprep.subr.bf16.mxu0 %v9782_v19 }
 0xebb   : > { %9501 = vpow2.f32 %v4567_v20 }
 0xebc   : > { %8983 = vmatpush3.bf16.msra.mxu0 %v9335_v11 }
 0xebd   : > { %8984 = vmatprep.subr.bf16.mxu0 %v9782_v19 }
 0xec0   : > { %8985 = vmatpush3.bf16.msra.mxu0 %v9336_v12 }
 0xec1   : > { %8986 = vmatprep.subr.bf16.mxu0 %v9782_v19 }
 0xec4   : > { %v10365_v23 = vpop.f32.mrb[60].mxu1  ;;  %8987 = vmatpush3.bf16.msra.mxu0 %v9337_v13 }
 0xec5   : > { %v9502_v26 = vpop.eup %9501  ;;  %v8940_v3 = vpop.f32.mrb[61].mxu1  ;;  %8988 = vmatprep.subr.bf16.mxu0 %v9782_v19 }
 0xec6   : > { %v4667_v10 = vpop.f32.mrb[64].mxu0  ;;  %v4397_v27 = vpop.f32.mrb[62].mxu1  ;;  %v4569_v29 = vsel %vm889_vm2, %v9502_v26, 0.0 }
 0xec7   : > { %v8970_v28 = vpop.f32.mrb[65].mxu0  ;;  %4570 = vadd.xlane.f32.xlu1 %v4569_v29  ;;  %v8941_v31 = vpop.f32.mrb[63].mxu1  ;;  %v4673_v37 = vsel %vm889_vm2, %v4667_v10, -inf }
 0xec8   : > { %v4670_v30 = vpop.f32.mrb[66].mxu0  ;;  %8989 = vmatpush3.bf16.msra.mxu0 %v9338_v14 }
 0xec9   : > { %v8971_v32 = vpop.f32.mrb[67].mxu0  ;;  %8990 = vmatprep.subr.bf16.mxu0 %v9782_v19 }
 0xecc   : > { %v4446_v1 = vpop.f32.mrb[64].mxu1  ;;  %8991 = vmatpush3.bf16.msra.mxu0 %v9339_v17 }
 0xecd   : > { %v8946_v33 = vpop.f32.mrb[65].mxu1  ;;  %v4452_v34 = vsel %vm889_vm2, %v4446_v1, -inf  ;;  %8992 = vmatprep.subr.bf16.mxu0 %v9782_v19 }
 0xece   : > { %4453 = vmax.xlane.f32.xlu0 %v4452_v34  ;;  %v4449_v35 = vpop.f32.mrb[66].mxu1 }
 0xecf   : > { %v8947_v36 = vpop.f32.mrb[67].mxu1 }
 0xed2   : > { %4674 = vmax.xlane.f32.xlu0 %v4673_v37 }
 0xed8   : > { %4465 = vrot.lane.b32.xlu1 %v10330_v41, %s9785_s26 }
 0xedc   : > { %4685 = vrot.lane.b32.xlu1 %v10330_v41, %s9786_s2 }
 0xf54   : > { %v4571_v38 = vpop.xlane.xlu1 %4570 }
 0xf58   : > { %v4466_v39 = vpop.permute.xlu1 %4465 }
 0xf59   : > { %v4471_v40 = vsel %vm905_vm3, %v4466_v39, 0 }
 0xf5a   : > { %8949 = vmatpush3.bf16.msra.mxu1 %v4471_v40 }
 0xf5b   : > { %v4454_v42 = vpop.xlane.xlu0 %4453  ;;  %8960 = vmatprep.subr.bf16.mxu1 %v9782_v19 }
 0xf5c   : > { %v4455_v43 = vsub.f32 %v4446_v1, %v4454_v42  ;;  %v8105_v42 = vld [vmem:[%s10599_s4 + $0x1] ss:$0 sm:$0xff] }
 0xf5e   : > { %v4456_v44 = vmul.f32 1.442695, %v4455_v43 }
 0xf5f   : > { %v4675_v45 = vpop.xlane.xlu0 %4674 }
 0xf60   : > { %9503 = vpow2.f32 %v4456_v44  ;;  %v4676_v46 = vsub.f32 %v4667_v10, %v4675_v45  ;;  %v9340_v10 = vld [vmem:[%s10598_s3 + $0x78] sm:$0xff]  }
 0xf61   : > { %8993 = vmatpush3.bf16.msra.mxu0 %v9340_v10 }
 0xf62   : > { %v4677_v16 = vmul.f32 1.442695, %v4676_v46 }
 0xf64   : > { %9505 = vpow2.f32 %v4677_v16 }
 0xf6a   : > { %v9504_v15 = vpop.eup %9503 }
 0xf6b   : > { %v4458_v47 = vsel %vm889_vm2, %v9504_v15, 0.0 }
 0xf6c   : > { %4459 = vadd.xlane.f32.xlu0 %v4458_v47  ;;  %v4902_v47 = vld [vmem:[#allocation10 + $0x440] sm:$0xff] }
 0xf6e   : > { %v9506_v48 = vpop.eup %9505 }
 0xf6f   : > { %v4679_v49 = vsel %vm889_vm2, %v9506_v48, 0.0 }
 0xf70   : > { %4680 = vadd.xlane.f32.xlu0 %v4679_v49 }
 0xf86   : > { %4575 = vrot.lane.b32.xlu0 %v10330_v41, %s9784_s19  ;;  %v4686_v41 = vpop.permute.xlu1 %4685 }
 0xf87   : > { %v4691_v21 = vsel %vm905_vm3, %v4686_v41, 0  ;;  %v4926_v41 = vld [vmem:[#allocation10 + $0x500] sm:$0xff] }
 0xff9   : > { %v4460_v50 = vpop.xlane.xlu0 %4459 }
 0xffa   : > { %9507 = vrcp.f32 %v4460_v50 }
 0xffb   : > { %9509 = vrcp.f32 %v4571_v38 }
 0xffd   : > { %v4681_v51 = vpop.xlane.xlu0 %4680 }
 0xffe   : > { %9511 = vrcp.f32 %v4681_v51  ;;  %v4903_v51 = vld [vmem:[#allocation10 + $0x448] sm:$0xff] }
0x1001   : > { %v4576_v56 = vpop.permute.xlu0 %4575 }
0x1002   : > { %v4581_v62 = vsel %vm905_vm3, %v4576_v56, 0 }
0x1004   : > { %v9508_v52 = vpop.eup %9507 }
0x1005   : > { %v4462_v53 = vmul.f32 %v9508_v52, %v9504_v15  ;;  %v9510_v61 = vpop.eup %9509  ;;  %v4894_v15 = vld [vmem:[#allocation10 + $0x400] sm:$0xff] }
0x1006   : > { %v4573_v63 = vmul.f32 %v9510_v61, %v9502_v26  ;;  %v8118_v49 = vcombine.low %v4894_v15, %v4902_v47  ;;  %v8119_v50 = vcombine.high %v4894_v15, %v4902_v47  ;;  %v4910_v52 = vld [vmem:[#allocation10 + $0x480] sm:$0xff]  ;;  %v4991_v15 = vld [vmem:[#allocation10 + $0x708] sm:$0xff] }
0x1007   : > { %v4463_v57 = vpack.c.bf16 %v4462_v53, %v4462_v53  ;;  %v4918_v53 = vld [vmem:[#allocation10 + $0x4c0] sm:$0xff] }
0x1008   : > { %v4574_v2 = vpack.c.bf16 %v4573_v63, %v4573_v63  ;;  %v9512_v5 = vpop.eup %9511  ;;  %v8135_v61 = vcombine.high %v4910_v52, %v4918_v53  ;;  %v4919_v63 = vld [vmem:[#allocation10 + $0x4c8] sm:$0xff] }
0x1009   : > { %8951 = vmatmul.mubr.msk.bf16.vlgmr.msra.gmra.mrb[68].mxu1 %vm889_vm2, %v4463_v57  ;;  %v4683_v6 = vmul.f32 %v9512_v5, %v9506_v48  ;;  %v4895_v48 = vld [vmem:[#allocation10 + $0x408] sm:$0xff]  ;;  %v4934_v5 = vld [vmem:[#allocation10 + $0x540] sm:$0xff] }
0x100a   : > { %8961 = vmatpush3.bf16.msra.mxu1 %v4581_v62  ;;  %8962 = vmatprep.mubr.msk.bf16.mxu1 %vm9783_vm0, %v9782_v19  ;;  %v8120_v56 = vcombine.low %v4895_v48, %v4903_v51  ;;  %v8121_v57 = vcombine.high %v4895_v48, %v4903_v51  ;;  %v4911_v62 = vld [vmem:[#allocation10 + $0x488] sm:$0xff]  ;;  %v8151_v8 = vcombine.high %v4926_v41, %v4934_v5 }
0x100b   : > { %8972 = vmatprep.subr.bf16.mxu1 %v9782_v19  ;;  %v4684_v7 = vpack.c.bf16 %v4683_v6, %v4683_v6  ;;  %v8134_v6 = vcombine.low %v4910_v52, %v4918_v53  ;;  %v8150_v11 = vcombine.low %v4926_v41, %v4934_v5  ;;  %v4999_v48 = vld [vmem:[#allocation10 + $0x748] sm:$0xff]  ;;  %v5006_v52 = vld [vmem:[#allocation10 + $0x780] sm:$0xff]  ;;  %v4904_v5 = vld [vmem:[#allocation10 + $0x450] sm:$0xff] }
0x100c   : > { %5788 = vmatprep.subr.bf16.mxu0 %v8121_v57  ;;  %v8217_v51 = vcombine.high %v4991_v15, %v4999_v48  ;;  %v5014_v53 = vld [vmem:[#allocation10 + $0x7c0] sm:$0xff] }
0x100d   : > { %v8231_v57 = vcombine.high %v5006_v52, %v5014_v53 }
0x1011   : > { %8963 = vmatmul.mubr.msk.bf16.vlgmr.msra.gmra.mrb[72].mxu1 %vm889_vm2, %v4574_v2  ;;  %v8137_v2 = vcombine.high %v4911_v62, %v4919_v63 }
0x1012   : > { %8973 = vmatpush3.bf16.msra.mxu1 %v4691_v21  ;;  %8974 = vmatprep.mubr.msk.bf16.mxu1 %vm9783_vm0, %v9782_v19  ;;  %v4927_v21 = vld [vmem:[#allocation10 + $0x508] sm:$0xff] }
0x1013   : > { %5747 = vmatprep.subr.bf16.mxu1 %v8119_v50  ;;  %v8216_v50 = vcombine.low %v4991_v15, %v4999_v48  ;;  %v4960_v15 = vld [vmem:[#allocation10 + $0x610] sm:$0xff]  ;;  %v4961_v48 = vld [vmem:[#allocation10 + $0x618] sm:$0xff] }
0x1019   : > { %8975 = vmatmul.mubr.msk.bf16.vlgmr.msra.gmra.mrb[76].mxu1 %vm889_vm2, %v4684_v7  ;;  %v8136_v7 = vcombine.low %v4911_v62, %v4919_v63  ;;  %v8230_v62 = vcombine.low %v5006_v52, %v5014_v53 }
0x101a   : > { %5779 = vmatprep.mubr.bf16.mxu1 %v9781_v0  ;;  %5748 = vmatpush1.bf16.msra.mxu1 %v8118_v49 }
0x101b   : > { %5749 = vmatprep.subr.bf16.mxu1 %v8135_v61  ;;  %v5015_v61 = vld [vmem:[#allocation10 + $0x7c8] sm:$0xff] }
0x101e   : > { %5750 = vmatpush1.bf16.msra.mxu1 %v8134_v6 }
0x101f   : > { %5751 = vmatprep.subr.bf16.mxu1 %v8151_v8 }
0x1022   : > { %5752 = vmatpush1.bf16.msra.mxu1 %v8150_v11 }
0x10dc   : > { %v4507_v18 = vpop.f32.mrb[68].mxu1 }
0x10dd   : > { %4734 = vrot.lane.b32.xlu1 %v4507_v18, %s9786_s2  ;;  %v8952_v20 = vpop.f32.mrb[69].mxu1  ;;  %s8390_s2 = sshll.u32 %s9889_s22, 7 }
0x10de   : > { %v4510_v26 = vpop.f32.mrb[70].mxu1  ;;  %v4942_v20 = vld [vmem:[#allocation10 + $0x580] sm:$0xff]  ;;  %s10553_s13 = scalar_lea.hbm %s10663_s12, %s8390_s2 }
0x10df   : > { %v8953_v3 = vpop.f32.mrb[71].mxu1  ;;  %v4950_v26 = vld [vmem:[#allocation10 + $0x5c0] sm:$0xff] }
0x10e0   : > { %v4943_v3 = vld [vmem:[#allocation10 + $0x588] sm:$0xff]  ;;  %v8167_v10 = vcombine.high %v4942_v20, %v4950_v26 }
0x10e2   : > { %5753 = vmatprep.subr.bf16.mxu1 %v8167_v10  ;;  %v4912_v10 = vld [vmem:[#allocation10 + $0x490] sm:$0xff] }
0x10e4   : > { %v4617_v27 = vpop.f32.mrb[72].mxu1 }
0x10e5   : > { %4738 = vrot.lane.b32.xlu0 %v4617_v27, %s9784_s19  ;;  %v8964_v28 = vpop.f32.mrb[73].mxu1  ;;  %v4951_v27 = vld [vmem:[#allocation10 + $0x5c8] sm:$0xff]  ;;  %s10662_s19 = sld [smem:[#allocation25_spill]] }
0x10e6   : > { %v4620_v29 = vpop.f32.mrb[74].mxu1  ;;  %v8166_v28 = vcombine.low %v4942_v20, %v4950_v26  ;;  %v8115_v26 = vld [vmem:[#allocation8 + $0x1] ss:$0 sm:$0xff] }
0x10e7   : > { %v8965_v30 = vpop.f32.mrb[75].mxu1  ;;  %v8168_v29 = vcombine.low %v4943_v3, %v4951_v27 }
0x10e8   : > { %v8169_v30 = vcombine.high %v4943_v3, %v4951_v27  ;;  %5754 = vmatpush1.bf16.msra.mxu1 %v8166_v28  ;;  %v4920_v27 = vld [vmem:[#allocation10 + $0x4d0] sm:$0xff]  ;;  %v4913_v28 = vld [vmem:[#allocation10 + $0x498] sm:$0xff] }
0x10eb   : > { %p10664_p7 = scmp.ne.s32.totalorder %s10662_s19, 0 }
0x10ec   : > { %v4727_v31 = vpop.f32.mrb[76].mxu1 }
0x10ed   : > { %4742 = vrot.lane.b32.xlu1 %v4727_v31, %s9785_s26  ;;  %v8976_v32 = vpop.f32.mrb[77].mxu1  ;;  %v4958_v31 = vld [vmem:[#allocation10 + $0x600] sm:$0xff]  ;;  %s573_s26 = scalar_lea.vmem [#allocation13], %s7752_s25 }
0x10ee   : > { %v4730_v1 = vpop.f32.mrb[78].mxu1  ;;  %v4966_v32 = vld [vmem:[#allocation10 + $0x640] sm:$0xff]  ;;  %s7617_s20 = sshll.u32 %s573_s26, 4  ;;  %s10555_s20 = int_to_ptr.vmem [resolvable:$true] %s7617_s20 }
0x10ef   : > { %v8977_v33 = vpop.f32.mrb[79].mxu1  ;;  %v4959_v1 = vld [vmem:[#allocation10 + $0x608] sm:$0xff]  ;;  %s9686_s22 = scalar_lea.vmem %s10555_s20, 128  ;;  %p9693_p5 = scmp.lt.s32.totalorder %s10555_s20, %s9691_s21 }
0x10f0   : > { %v8183_v33 = vcombine.high %v4958_v31, %v4966_v32  ;;  %p9687_p4 = scmp.ne.s32.totalorder %s10555_s20, %s9686_s22  ;;  %p9694_p6 = scmp.lt.s32.totalorder %s9692_s15, %s9686_s22 }
0x10f2   : > { %5755 = vmatprep.subr.bf16.mxu1 %v8183_v33  ;;  %v4928_v33 = vld [vmem:[#allocation10 + $0x510] sm:$0xff]  ;;  %p9688_p8 = pnand %p9687_p4, %p10664_p7  ;;  %p9695_p0 = por %p9694_p6, %p9693_p5 }
0x10f4   : > { %p9689_p11 = pneg %p9688_p8 }
0x10f6   : > { %p9696_p9 = pnand %p9695_p0, %p9689_p11 }
0x114f   : > { %v4735_v34 = vpop.permute.xlu1 %4734 }
0x1150   : > { %v4745_v36 = vsel %vm842_vm1, %v10365_v23, %v4735_v34  ;;  %v4967_v34 = vld [vmem:[#allocation10 + $0x648] sm:$0xff] }
0x1157   : > { %v4739_v35 = vpop.permute.xlu0 %4738 }
0x1158   : > { %v4746_v37 = vsel %vm1295_vm4, %v4745_v36, %v4739_v35  ;;  %v8182_v35 = vcombine.low %v4958_v31, %v4966_v32  ;;  %v8184_v36 = vcombine.low %v4959_v1, %v4967_v34  ;;  %v8139_v32 = vcombine.high %v4912_v10, %v4920_v27 }
0x115a   : > { %5756 = vmatpush1.bf16.msra.mxu1 %v8182_v35  ;;  %v4929_v35 = vld [vmem:[#allocation10 + $0x518] sm:$0xff] }
0x115f   : > { %v4743_v38 = vpop.permute.xlu1 %4742 }
0x1160   : > { %v4747_v39 = vsel %vm1297_vm5, %v4746_v37, %v4743_v38  ;;  %v8185_v37 = vcombine.high %v4959_v1, %v4967_v34  ;;  %v4974_v38 = vld [vmem:[#allocation10 + $0x680] sm:$0xff]  ;;  %v4936_v34 = vld [vmem:[#allocation10 + $0x550] sm:$0xff] }
0x1161   : > { %v4748_v40 = vpack.c.bf16 %v4747_v39, %v4747_v39  ;;  %v4982_v39 = vld [vmem:[#allocation10 + $0x6c0] sm:$0xff] }
0x1163   : > { %8995 = vmatmul.mubr.bf16.vlgmr.msra.gmra.mrb[68].mxu0 %v4748_v40  ;;  %v4975_v40 = vld [vmem:[#allocation10 + $0x688] sm:$0xff] }
0x1164   : > { %5820 = vmatprep.mubr.bf16.mxu0 %v9781_v0  ;;  %5789 = vmatpush1.bf16.msra.mxu0 %v8120_v56  ;;  %v5007_v56 = vld [vmem:[#allocation10 + $0x788] sm:$0xff] }
0x1165   : > { %5790 = vmatprep.subr.bf16.mxu0 %v8137_v2  ;;  %v8232_v63 = vcombine.low %v5007_v56, %v5015_v61  ;;  %v8233_v41 = vcombine.high %v5007_v56, %v5015_v61  ;;  %v4896_v2 = vld [vmem:[#allocation10 + $0x410] sm:$0xff]  ;;  %v4977_v61 = vld [vmem:[#allocation10 + $0x698] sm:$0xff] }
0x1166   : > { %v8123_v6 = vcombine.high %v4896_v2, %v4904_v5  ;;  %v4976_v56 = vld [vmem:[#allocation10 + $0x690] sm:$0xff] }
0x1168   : > { %5791 = vmatpush1.bf16.msra.mxu0 %v8136_v7  ;;  %v4905_v7 = vld [vmem:[#allocation10 + $0x458] sm:$0xff] }
0x1236   : > { %v4856_v43 = vpop.f32.mrb[68].mxu0 }
0x1237   : > { %v4857_v44 = vadd.f32 %v8105_v42, %v4856_v43  ;;  %v8996_v45 = vpop.f32.mrb[69].mxu0  ;;  %v8199_v42 = vcombine.high %v4974_v38, %v4982_v39  ;;  %v4983_v43 = vld [vmem:[#allocation10 + $0x6c8] sm:$0xff] }
0x1238   : > { %v4859_v46 = vpop.f32.mrb[70].mxu0  ;;  %v8200_v45 = vcombine.low %v4975_v40, %v4983_v43 }
0x1239   : > { %v8997_v16 = vpop.f32.mrb[71].mxu0  ;;  %v4862_v23 = vadd.f32 %v4857_v44, %v10317_v25  ;;  %v4935_v25 = vld [vmem:[#allocation10 + $0x548] sm:$0xff]  ;;  %v8198_v44 = vcombine.low %v4974_v38, %v4982_v39  ;;  %v8201_v46 = vcombine.high %v4975_v40, %v4983_v43  ;;  %5757 = vmatprep.subr.bf16.mxu1 %v8199_v42  ;;  %v8155_v38 = vcombine.high %v4928_v33, %v4936_v34  ;;  %v4944_v40 = vld [vmem:[#allocation10 + $0x590] sm:$0xff]  ;;  %v4945_v43 = vld [vmem:[#allocation10 + $0x598] sm:$0xff] }
0x123a   : > { %v8153_v9 = vcombine.high %v4927_v21, %v4935_v25  ;;  %v8152_v12 = vcombine.low %v4927_v21, %v4935_v25  ;;  %v4990_v16 = vld [vmem:[#allocation10 + $0x700] sm:$0xff]  ;;  %v4897_v21 = vld [vmem:[#allocation10 + $0x418] sm:$0xff]  ;;  %v8122_v25 = vcombine.low %v4896_v2, %v4904_v5  ;;  %v4952_v42 = vld [vmem:[#allocation10 + $0x5d0] sm:$0xff] }
0x123b   : > { %4867 = vadd.xlane.f32.xlu0 %v4862_v23  ;;  %5758 = vmatpush1.bf16.msra.mxu1 %v8198_v44  ;;  %v8124_v8 = vcombine.low %v4897_v21, %v4905_v7  ;;  %v4953_v44 = vld [vmem:[#allocation10 + $0x5d8] sm:$0xff] }
0x123c   : > { %5792 = vmatprep.subr.bf16.mxu0 %v8153_v9  ;;  %v8125_v9 = vcombine.high %v4897_v21, %v4905_v7  ;;  %v4992_v21 = vld [vmem:[#allocation10 + $0x710] sm:$0xff]  ;;  %v5001_v7 = vld [vmem:[#allocation10 + $0x758] sm:$0xff] }
0x123d   : > { %5793 = vmatpush1.bf16.msra.mxu0 %v8152_v12 }
0x123e   : > { %5794 = vmatprep.subr.bf16.mxu0 %v8169_v30 }
0x1241   : > { %5795 = vmatpush1.bf16.msra.mxu0 %v8168_v29  ;;  %v4921_v29 = vld [vmem:[#allocation10 + $0x4d8] sm:$0xff] }
0x1242   : > { %5796 = vmatprep.subr.bf16.mxu0 %v8185_v37  ;;  %v8141_v1 = vcombine.high %v4913_v28, %v4921_v29  ;;  %v8140_v37 = vcombine.low %v4913_v28, %v4921_v29  ;;  %v4898_v28 = vld [vmem:[#allocation10 + $0x420] sm:$0xff] }
0x1243   : > { %v4906_v29 = vld [vmem:[#allocation10 + $0x460] sm:$0xff] }
0x1245   : > { %5797 = vmatpush1.bf16.msra.mxu0 %v8184_v36  ;;  %v4937_v36 = vld [vmem:[#allocation10 + $0x558] sm:$0xff] }
0x1246   : > { %5798 = vmatprep.subr.bf16.mxu0 %v8201_v46  ;;  %v8157_v39 = vcombine.high %v4929_v35, %v4937_v36  ;;  %v8156_v46 = vcombine.low %v4929_v35, %v4937_v36  ;;  %v8127_v35 = vcombine.high %v4898_v28, %v4906_v29 }
0x1249   : > { %5799 = vmatpush1.bf16.msra.mxu0 %v8200_v45  ;;  %v8154_v45 = vcombine.low %v4928_v33, %v4936_v34 }
0x124a   : > { %5800 = vmatprep.subr.bf16.mxu0 %v8217_v51  ;;  %v8172_v51 = vcombine.low %v4945_v43, %v4953_v44 }
0x124d   : > { %5801 = vmatpush1.bf16.msra.mxu0 %v8216_v50  ;;  %v8170_v50 = vcombine.low %v4944_v40, %v4952_v42 }
0x124e   : > { %5802 = vmatprep.subr.bf16.mxu0 %v8233_v41 }
0x1251   : > { %5803 = vmatpush1.bf16.msra.mxu0 %v8232_v63 }
0x1252   : > { %5870 = vmatprep.subr.bf16.mxu0 %v8125_v9 }
0x12c8   : > { %v4868_v13 = vpop.xlane.xlu0 %4867 }
0x12c9   : > { %v4869_v14 = vmul.f32 0.0078125, %v4868_v13 }
0x12cb   : > { %v10434_v17 = vsub.f32 %v4862_v23, %v4869_v14  ;;  %v4998_v23 = vld [vmem:[#allocation10 + $0x740] sm:$0xff] }
0x12cc   : > { %v8215_v47 = vcombine.high %v4990_v16, %v4998_v23  ;;  %v8214_v49 = vcombine.low %v4990_v16, %v4998_v23  ;;  %v8171_v16 = vcombine.high %v4944_v40, %v4952_v42  ;;  %v8173_v23 = vcombine.high %v4945_v43, %v4953_v44 }
0x12cd   : > { %v4871_v18 = vmul.f32 %v10434_v17, %v10434_v17  ;;  %v8126_v40 = vcombine.low %v4898_v28, %v4906_v29 }
0x12ce   : > { %5759 = vmatprep.subr.bf16.mxu1 %v8215_v47  ;;  %v4968_v47 = vld [vmem:[#allocation10 + $0x650] sm:$0xff] }
0x12cf   : > { %4872 = vadd.xlane.f32.xlu1 %v4871_v18  ;;  %5760 = vmatpush1.bf16.msra.mxu1 %v8214_v49  ;;  %v8114_v18 = vld [vmem:[#allocation7 + $0x1] ss:$0 sm:$0xff]  ;;  %v8187_v52 = vcombine.high %v4960_v15, %v4968_v47  ;;  %v8186_v63 = vcombine.low %v4960_v15, %v4968_v47 }
0x12d0   : > { %5761 = vmatprep.subr.bf16.mxu1 %v8231_v57  ;;  %v4969_v49 = vld [vmem:[#allocation10 + $0x658] sm:$0xff]  ;;  %v4984_v57 = vld [vmem:[#allocation10 + $0x6d0] sm:$0xff] }
0x12d1   : > { %v8189_v53 = vcombine.high %v4961_v48, %v4969_v49  ;;  %v8188_v41 = vcombine.low %v4961_v48, %v4969_v49  ;;  %v8203_v2 = vcombine.high %v4976_v56, %v4984_v57 }
0x12d3   : > { %5762 = vmatpush1.bf16.msra.mxu1 %v8230_v62  ;;  %v4985_v62 = vld [vmem:[#allocation10 + $0x6d8] sm:$0xff] }
0x12d4   : > { %5829 = vmatprep.subr.bf16.mxu1 %v8123_v6  ;;  %v8205_v5 = vcombine.high %v4977_v61, %v4985_v62  ;;  %v4993_v6 = vld [vmem:[#allocation10 + $0x718] sm:$0xff]  ;;  %v8204_v9 = vcombine.low %v4977_v61, %v4985_v62 }
0x135c   : > { %v4873_v11 = vpop.xlane.xlu1 %4872 }
0x135d   : > { %v4874_v12 = vmul.f32 0.0078125, %v4873_v11 }
0x135f   : > { %v4875_v13 = vadd.f32 1e-05, %v4874_v12  ;;  %v8221_v12 = vcombine.high %v4993_v6, %v5001_v7 }
0x1361   : > { %9513 = vrsqrt.f32 %v4875_v13  ;;  %v5008_v13 = vld [vmem:[#allocation10 + $0x790] sm:$0xff] }
0x136b   : > { %v9514_v14 = vpop.eup %9513 }
0x136c   : > { %v4877_v20 = vmul.f32 %v9514_v14, %v10434_v17  ;;  %v8138_v17 = vcombine.low %v4912_v10, %v4920_v27  ;;  %v5016_v14 = vld [vmem:[#allocation10 + $0x7d0] sm:$0xff] }
0x136d   : > { %v8235_v10 = vcombine.high %v5008_v13, %v5016_v14  ;;  %v8234_v33 = vcombine.low %v5008_v13, %v5016_v14 }
0x136e   : > { %v4884_v3 = vmul.f32 %v8114_v18, %v4877_v20  ;;  %v5009_v18 = vld [vmem:[#allocation10 + $0x798] sm:$0xff] }
0x136f   : > { %v5017_v20 = vld [vmem:[#allocation10 + $0x7d8] sm:$0xff] }
0x1370   : > { %v10439_v30 = vadd.f32 %v8115_v26, %v4884_v3  ;;  %v8220_v3 = vcombine.low %v4993_v6, %v5001_v7  ;;  %v8237_v27 = vcombine.high %v5009_v18, %v5017_v20  ;;  %v8236_v34 = vcombine.low %v5009_v18, %v5017_v20 }
0x1372   : > { %v10443_v31 = vpack.c.bf16 %v10439_v30, %v10439_v30 }
0x1374   : > { %5780 = vmatmul.mubr.bf16.vlgmr.msra.gmra.mrb[80].mxu1 %v10443_v31  ;;  %5821 = vmatmul.mubr.bf16.vlgmr.msra.gmra.mrb[72].mxu0 %v10443_v31 }
0x1375   : > { %5830 = vmatpush1.bf16.msra.mxu1 %v8122_v25  ;;  %5871 = vmatpush1.bf16.msra.mxu0 %v8124_v8  ;;  %v5000_v25 = vld [vmem:[#allocation10 + $0x750] sm:$0xff]  ;;  %v8202_v8 = vcombine.low %v4976_v56, %v4984_v57 }
0x1376   : > { %5831 = vmatprep.subr.bf16.mxu1 %v8139_v32  ;;  %5872 = vmatprep.subr.bf16.mxu0 %v8141_v1  ;;  %v8219_v11 = vcombine.high %v4992_v21, %v5000_v25  ;;  %v8218_v26 = vcombine.low %v4992_v21, %v5000_v25  ;;  %v4899_v32 = vld [vmem:[#allocation10 + $0x428] sm:$0xff] }
0x1377   : > { %5861 = vmatprep.mubr.bf16.mxu1 %v9781_v0  ;;  %5902 = vmatprep.mubr.bf16.mxu0 %v9781_v0  ;;  %v4907_v1 = vld [vmem:[#allocation10 + $0x468] sm:$0xff] }
0x1378   : > { %v8129_v36 = vcombine.high %v4899_v32, %v4907_v1  ;;  %v8128_v42 = vcombine.low %v4899_v32, %v4907_v1 }
0x1379   : > { %5832 = vmatpush1.bf16.msra.mxu1 %v8138_v17  ;;  %5873 = vmatpush1.bf16.msra.mxu0 %v8140_v37  ;;  %v4914_v17 = vld [vmem:[#allocation10 + $0x4a0] sm:$0xff] }
0x137a   : > { %5833 = vmatprep.subr.bf16.mxu1 %v8155_v38  ;;  %5874 = vmatprep.subr.bf16.mxu0 %v8157_v39  ;;  %v4922_v37 = vld [vmem:[#allocation10 + $0x4e0] sm:$0xff]  ;;  %v4915_v38 = vld [vmem:[#allocation10 + $0x4a8] sm:$0xff] }
0x137b   : > { %v4923_v39 = vld [vmem:[#allocation10 + $0x4e8] sm:$0xff]  ;;  %v8143_v43 = vcombine.high %v4914_v17, %v4922_v37  ;;  %v8142_v15 = vcombine.low %v4914_v17, %v4922_v37 }
0x137c   : > { %v8145_v44 = vcombine.high %v4915_v38, %v4923_v39  ;;  %v8144_v47 = vcombine.low %v4915_v38, %v4923_v39 }
0x137d   : > { %5834 = vmatpush1.bf16.msra.mxu1 %v8154_v45  ;;  %5875 = vmatpush1.bf16.msra.mxu0 %v8156_v46  ;;  %v4930_v45 = vld [vmem:[#allocation10 + $0x520] sm:$0xff] }
0x137e   : > { %5835 = vmatprep.subr.bf16.mxu1 %v8171_v16  ;;  %5876 = vmatprep.subr.bf16.mxu0 %v8173_v23  ;;  %v4938_v46 = vld [vmem:[#allocation10 + $0x560] sm:$0xff]  ;;  %v4931_v16 = vld [vmem:[#allocation10 + $0x528] sm:$0xff] }
0x137f   : > { %v4939_v23 = vld [vmem:[#allocation10 + $0x568] sm:$0xff]  ;;  %v8159_v48 = vcombine.high %v4930_v45, %v4938_v46  ;;  %v8158_v56 = vcombine.low %v4930_v45, %v4938_v46 }
0x1380   : > { %v8161_v49 = vcombine.high %v4931_v16, %v4939_v23  ;;  %v8160_v57 = vcombine.low %v4931_v16, %v4939_v23 }
0x1381   : > { %5836 = vmatpush1.bf16.msra.mxu1 %v8170_v50  ;;  %5877 = vmatpush1.bf16.msra.mxu0 %v8172_v51  ;;  %v4946_v50 = vld [vmem:[#allocation10 + $0x5a0] sm:$0xff] }
0x1382   : > { %5837 = vmatprep.subr.bf16.mxu1 %v8187_v52  ;;  %5878 = vmatprep.subr.bf16.mxu0 %v8189_v53  ;;  %v4954_v51 = vld [vmem:[#allocation10 + $0x5e0] sm:$0xff]  ;;  %v4947_v52 = vld [vmem:[#allocation10 + $0x5a8] sm:$0xff] }
0x1383   : > { %v4955_v53 = vld [vmem:[#allocation10 + $0x5e8] sm:$0xff]  ;;  %v8175_v61 = vcombine.high %v4946_v50, %v4954_v51  ;;  %v8174_v21 = vcombine.low %v4946_v50, %v4954_v51 }
0x1384   : > { %v8177_v62 = vcombine.high %v4947_v52, %v4955_v53  ;;  %v8176_v25 = vcombine.low %v4947_v52, %v4955_v53 }
0x1385   : > { %5838 = vmatpush1.bf16.msra.mxu1 %v8186_v63  ;;  %5879 = vmatpush1.bf16.msra.mxu0 %v8188_v41  ;;  %v4962_v63 = vld [vmem:[#allocation10 + $0x620] sm:$0xff] }
0x1386   : > { %5839 = vmatprep.subr.bf16.mxu1 %v8203_v2  ;;  %5880 = vmatprep.subr.bf16.mxu0 %v8205_v5  ;;  %v4970_v41 = vld [vmem:[#allocation10 + $0x660] sm:$0xff]  ;;  %v4963_v2 = vld [vmem:[#allocation10 + $0x628] sm:$0xff] }
0x1387   : > { %v4971_v5 = vld [vmem:[#allocation10 + $0x668] sm:$0xff]  ;;  %v8191_v6 = vcombine.high %v4962_v63, %v4970_v41  ;;  %v8190_v13 = vcombine.low %v4962_v63, %v4970_v41 }
0x1388   : > { %v8193_v7 = vcombine.high %v4963_v2, %v4971_v5  ;;  %v8192_v14 = vcombine.low %v4963_v2, %v4971_v5 }
0x1389   : > { %5840 = vmatpush1.bf16.msra.mxu1 %v8202_v8  ;;  %5881 = vmatpush1.bf16.msra.mxu0 %v8204_v9  ;;  %v4978_v8 = vld [vmem:[#allocation10 + $0x6a0] sm:$0xff] }
0x138a   : > { %5841 = vmatprep.subr.bf16.mxu1 %v8219_v11  ;;  %5882 = vmatprep.subr.bf16.mxu0 %v8221_v12  ;;  %v4986_v9 = vld [vmem:[#allocation10 + $0x6e0] sm:$0xff]  ;;  %v4979_v11 = vld [vmem:[#allocation10 + $0x6a8] sm:$0xff] }
0x138b   : > { %v4987_v12 = vld [vmem:[#allocation10 + $0x6e8] sm:$0xff]  ;;  %v8207_v18 = vcombine.high %v4978_v8, %v4986_v9  ;;  %v8206_v28 = vcombine.low %v4978_v8, %v4986_v9 }
0x138c   : > { %v8209_v20 = vcombine.high %v4979_v11, %v4987_v12  ;;  %v8208_v29 = vcombine.low %v4979_v11, %v4987_v12 }
0x138d   : > { %5842 = vmatpush1.bf16.msra.mxu1 %v8218_v26  ;;  %5883 = vmatpush1.bf16.msra.mxu0 %v8220_v3  ;;  %v4994_v26 = vld [vmem:[#allocation10 + $0x720] sm:$0xff] }
0x138e   : > { %5843 = vmatprep.subr.bf16.mxu1 %v8235_v10  ;;  %5884 = vmatprep.subr.bf16.mxu0 %v8237_v27  ;;  %v5002_v3 = vld [vmem:[#allocation10 + $0x760] sm:$0xff]  ;;  %v4995_v10 = vld [vmem:[#allocation10 + $0x728] sm:$0xff] }
0x138f   : > { %v5003_v27 = vld [vmem:[#allocation10 + $0x768] sm:$0xff]  ;;  %v8223_v32 = vcombine.high %v4994_v26, %v5002_v3  ;;  %v8222_v17 = vcombine.low %v4994_v26, %v5002_v3 }
0x1390   : > { %v8225_v1 = vcombine.high %v4995_v10, %v5003_v27  ;;  %v8224_v37 = vcombine.low %v4995_v10, %v5003_v27  ;;  %v4980_v27 = vld [vmem:[#allocation10 + $0x6b0] sm:$0xff] }
0x1391   : > { %5844 = vmatpush1.bf16.msra.mxu1 %v8234_v33  ;;  %5885 = vmatpush1.bf16.msra.mxu0 %v8236_v34  ;;  %v5010_v33 = vld [vmem:[#allocation10 + $0x7a0] sm:$0xff] }
0x1392   : > { %5911 = vmatprep.subr.bf16.mxu1 %v8127_v35  ;;  %5952 = vmatprep.subr.bf16.mxu0 %v8129_v36  ;;  %v5018_v34 = vld [vmem:[#allocation10 + $0x7e0] sm:$0xff]  ;;  %v5011_v35 = vld [vmem:[#allocation10 + $0x7a8] sm:$0xff] }
0x1393   : > { %v5019_v36 = vld [vmem:[#allocation10 + $0x7e8] sm:$0xff]  ;;  %v8239_v38 = vcombine.high %v5010_v33, %v5018_v34  ;;  %v8238_v45 = vcombine.low %v5010_v33, %v5018_v34 }
0x1394   : > { %5862 = vmatmul.mubr.bf16.vlgmr.msra.gmra.mrb[84].mxu1 %v10443_v31  ;;  %5903 = vmatmul.mubr.bf16.vlgmr.msra.gmra.mrb[76].mxu0 %v10443_v31  ;;  %v8241_v39 = vcombine.high %v5011_v35, %v5019_v36  ;;  %v8240_v46 = vcombine.low %v5011_v35, %v5019_v36  ;;  %v4996_v36 = vld [vmem:[#allocation10 + $0x730] sm:$0xff] }
0x1395   : > { %5912 = vmatpush1.bf16.msra.mxu1 %v8126_v40  ;;  %5953 = vmatpush1.bf16.msra.mxu0 %v8128_v42  ;;  %v4900_v40 = vld [vmem:[#allocation10 + $0x430] sm:$0xff] }
0x1396   : > { %5913 = vmatprep.subr.bf16.mxu1 %v8143_v43  ;;  %5954 = vmatprep.subr.bf16.mxu0 %v8145_v44  ;;  %v4908_v42 = vld [vmem:[#allocation10 + $0x470] sm:$0xff]  ;;  %v4901_v43 = vld [vmem:[#allocation10 + $0x438] sm:$0xff] }
0x1397   : > { %5943 = vmatprep.mubr.bf16.mxu1 %v9781_v0  ;;  %5984 = vmatprep.mubr.bf16.mxu0 %v9781_v0  ;;  %v4909_v44 = vld [vmem:[#allocation10 + $0x478] sm:$0xff]  ;;  %v8131_v16 = vcombine.high %v4900_v40, %v4908_v42  ;;  %v8130_v50 = vcombine.low %v4900_v40, %v4908_v42 }
0x1398   : > { %v8133_v23 = vcombine.high %v4901_v43, %v4909_v44  ;;  %v8132_v51 = vcombine.low %v4901_v43, %v4909_v44  ;;  %v5012_v44 = vld [vmem:[#allocation10 + $0x7b0] sm:$0xff] }
0x1399   : > { %5914 = vmatpush1.bf16.msra.mxu1 %v8142_v15  ;;  %5955 = vmatpush1.bf16.msra.mxu0 %v8144_v47  ;;  %v4916_v15 = vld [vmem:[#allocation10 + $0x4b0] sm:$0xff] }
0x139a   : > { %5915 = vmatprep.subr.bf16.mxu1 %v8159_v48  ;;  %5956 = vmatprep.subr.bf16.mxu0 %v8161_v49  ;;  %v4924_v47 = vld [vmem:[#allocation10 + $0x4f0] sm:$0xff]  ;;  %v4917_v48 = vld [vmem:[#allocation10 + $0x4b8] sm:$0xff] }
0x139b   : > { %v4925_v49 = vld [vmem:[#allocation10 + $0x4f8] sm:$0xff]  ;;  %v8147_v52 = vcombine.high %v4916_v15, %v4924_v47  ;;  %v8146_v63 = vcombine.low %v4916_v15, %v4924_v47 }
0x139c   : > { %v8149_v53 = vcombine.high %v4917_v48, %v4925_v49  ;;  %v8148_v41 = vcombine.low %v4917_v48, %v4925_v49 }
0x139d   : > { %5916 = vmatpush1.bf16.msra.mxu1 %v8158_v56  ;;  %5957 = vmatpush1.bf16.msra.mxu0 %v8160_v57  ;;  %v4932_v56 = vld [vmem:[#allocation10 + $0x530] sm:$0xff] }
0x139e   : > { %5917 = vmatprep.subr.bf16.mxu1 %v8175_v61  ;;  %5958 = vmatprep.subr.bf16.mxu0 %v8177_v62  ;;  %v4940_v57 = vld [vmem:[#allocation10 + $0x570] sm:$0xff]  ;;  %v4933_v61 = vld [vmem:[#allocation10 + $0x538] sm:$0xff] }
0x139f   : > { %v4941_v62 = vld [vmem:[#allocation10 + $0x578] sm:$0xff]  ;;  %v8163_v2 = vcombine.high %v4932_v56, %v4940_v57  ;;  %v8162_v8 = vcombine.low %v4932_v56, %v4940_v57  ;;  %v9344_v56 = vld [vmem:[#allocation11 + $0x480] sm:$0xff]   ;;  %v9345_v57 = vld [vmem:[#allocation11 + $0x448] sm:$0xff]  }
0x13a0   : > { %v8165_v5 = vcombine.high %v4933_v61, %v4941_v62  ;;  %v8164_v9 = vcombine.low %v4933_v61, %v4941_v62  ;;  %v9346_v61 = vld [vmem:[#allocation11 + $0x4c8] sm:$0xff]  }
0x13a1   : > { %5918 = vmatpush1.bf16.msra.mxu1 %v8174_v21  ;;  %5959 = vmatpush1.bf16.msra.mxu0 %v8176_v25  ;;  %v4948_v21 = vld [vmem:[#allocation10 + $0x5b0] sm:$0xff]  ;;  %v9347_v62 = vld [vmem:[#allocation11 + $0x408] sm:$0xff]  }
0x13a2   : > { %5919 = vmatprep.subr.bf16.mxu1 %v8191_v6  ;;  %5960 = vmatprep.subr.bf16.mxu0 %v8193_v7  ;;  %v4956_v25 = vld [vmem:[#allocation10 + $0x5f0] sm:$0xff]  ;;  %v4949_v6 = vld [vmem:[#allocation10 + $0x5b8] sm:$0xff] }
0x13a3   : > { %v4957_v7 = vld [vmem:[#allocation10 + $0x5f8] sm:$0xff]  ;;  %v8179_v11 = vcombine.high %v4948_v21, %v4956_v25  ;;  %v8178_v26 = vcombine.low %v4948_v21, %v4956_v25  ;;  %v9352_v21 = vld [vmem:[#allocation11 + $0x490] sm:$0xff]  }
0x13a4   : > { %v8181_v12 = vcombine.high %v4949_v6, %v4957_v7  ;;  %v8180_v3 = vcombine.low %v4949_v6, %v4957_v7  ;;  %v9353_v25 = vld [vmem:[#allocation11 + $0x458] sm:$0xff]  }
0x13a5   : > { %5920 = vmatpush1.bf16.msra.mxu1 %v8190_v13  ;;  %5961 = vmatpush1.bf16.msra.mxu0 %v8192_v14  ;;  %v4964_v13 = vld [vmem:[#allocation10 + $0x630] sm:$0xff]  ;;  %v9354_v6 = vld [vmem:[#allocation11 + $0x4d8] sm:$0xff]  }
0x13a6   : > { %5921 = vmatprep.subr.bf16.mxu1 %v8207_v18  ;;  %5962 = vmatprep.subr.bf16.mxu0 %v8209_v20  ;;  %v4972_v14 = vld [vmem:[#allocation10 + $0x670] sm:$0xff]  ;;  %v4965_v18 = vld [vmem:[#allocation10 + $0x638] sm:$0xff] }
0x13a7   : > { %v4973_v20 = vld [vmem:[#allocation10 + $0x678] sm:$0xff]  ;;  %v8195_v10 = vcombine.high %v4964_v13, %v4972_v14 }
0x13a8   : > { %v8196_v33 = vcombine.low %v4965_v18, %v4973_v20  ;;  %v9355_v7 = vld [vmem:[#allocation11 + $0x418] sm:$0xff]  }
0x13a9   : > { %5922 = vmatpush1.bf16.msra.mxu1 %v8206_v28  ;;  %5963 = vmatpush1.bf16.msra.mxu0 %v8208_v29  ;;  %v4988_v28 = vld [vmem:[#allocation10 + $0x6f0] sm:$0xff]  ;;  %v4981_v29 = vld [vmem:[#allocation10 + $0x6b8] sm:$0xff] }
0x13aa   : > { %5923 = vmatprep.subr.bf16.mxu1 %v8223_v32  ;;  %5964 = vmatprep.subr.bf16.mxu0 %v8225_v1  ;;  %v4989_v32 = vld [vmem:[#allocation10 + $0x6f8] sm:$0xff]  ;;  %v8194_v1 = vcombine.low %v4964_v13, %v4972_v14  ;;  %v8211_v34 = vcombine.high %v4980_v27, %v4988_v28  ;;  %v9361_v13 = vld [vmem:[#allocation11 + $0x468] sm:$0xff]  }
0x13ab   : > { %v8213_v35 = vcombine.high %v4981_v29, %v4989_v32  ;;  %v8212_v40 = vcombine.low %v4981_v29, %v4989_v32  ;;  %v9362_v14 = vld [vmem:[#allocation11 + $0x4e8] sm:$0xff]   ;;  %v9371_v29 = vld [vmem:[#allocation11 + $0x438] sm:$0xff]  }
0x13ac   : > { %v9372_v32 = vld [vmem:[#allocation11 + $0x4b8] sm:$0xff]  }
0x13ad   : > { %5924 = vmatpush1.bf16.msra.mxu1 %v8222_v17  ;;  %5965 = vmatpush1.bf16.msra.mxu0 %v8224_v37  ;;  %v5004_v17 = vld [vmem:[#allocation10 + $0x770] sm:$0xff]  ;;  %v4997_v37 = vld [vmem:[#allocation10 + $0x738] sm:$0xff] }
0x13ae   : > { %5925 = vmatprep.subr.bf16.mxu1 %v8239_v38  ;;  %5966 = vmatprep.subr.bf16.mxu0 %v8241_v39  ;;  %v5005_v38 = vld [vmem:[#allocation10 + $0x778] sm:$0xff]  ;;  %v8210_v39 = vcombine.low %v4980_v27, %v4988_v28  ;;  %v8227_v42 = vcombine.high %v4996_v36, %v5004_v17 }
0x13af   : > { %v8229_v43 = vcombine.high %v4997_v37, %v5005_v38  ;;  %v8228_v15 = vcombine.low %v4997_v37, %v5005_v38  ;;  %v9369_v27 = vld [vmem:[#allocation11 + $0x478] sm:$0xff]  }
0x13b0   : > { %v9370_v28 = vld [vmem:[#allocation11 + $0x4f8] sm:$0xff]  }
0x13b1   : > { %5926 = vmatpush1.bf16.msra.mxu1 %v8238_v45  ;;  %5967 = vmatpush1.bf16.msra.mxu0 %v8240_v46  ;;  %v5020_v45 = vld [vmem:[#allocation10 + $0x7f0] sm:$0xff]  ;;  %v5013_v46 = vld [vmem:[#allocation10 + $0x7b8] sm:$0xff] }
0x13b2   : > { %5993 = vmatprep.subr.bf16.mxu1 %v8131_v16  ;;  %6034 = vmatprep.subr.bf16.mxu0 %v8133_v23  ;;  %v5021_v16 = vld [vmem:[#allocation10 + $0x7f8] sm:$0xff]  ;;  %v8226_v23 = vcombine.low %v4996_v36, %v5004_v17  ;;  %v8243_v47 = vcombine.high %v5012_v44, %v5020_v45  ;;  %v8242_v49 = vcombine.low %v5012_v44, %v5020_v45 }
0x13b3   : > { %v8245_v48 = vcombine.high %v5013_v46, %v5021_v16 }
0x13b4   : > { %5944 = vmatmul.mubr.bf16.vlgmr.msra.gmra.mrb[88].mxu1 %v10443_v31  ;;  %5985 = vmatmul.mubr.bf16.vlgmr.msra.gmra.mrb[80].mxu0 %v10443_v31 }
0x13b5   : > { %5994 = vmatpush1.bf16.msra.mxu1 %v8130_v50  ;;  %6035 = vmatpush1.bf16.msra.mxu0 %v8132_v51  ;;  %v8244_v50 = vcombine.low %v5013_v46, %v5021_v16  ;;  %v9341_v51 = vld [vmem:[#allocation11 + $0x440] sm:$0xff]  }
0x13b6   : > { %5995 = vmatprep.subr.bf16.mxu1 %v8147_v52  ;;  %6036 = vmatprep.subr.bf16.mxu0 %v8149_v53  ;;  %v9342_v52 = vld [vmem:[#allocation11 + $0x4c0] sm:$0xff]  }
0x13b7   : > { %6025 = vmatprep.mubr.bf16.mxu1 %v9781_v0  ;;  %6066 = vmatprep.mubr.bf16.mxu0 %v9781_v0  ;;  %v8197_v0 = vcombine.high %v4965_v18, %v4973_v20  ;;  %v9343_v53 = vld [vmem:[#allocation11 + $0x400] sm:$0xff]   ;;  %v9363_v18 = vld [vmem:[#allocation11 + $0x428] sm:$0xff]  }
0x13b8   : > { %v9364_v20 = vld [vmem:[#allocation11 + $0x4a8] sm:$0xff]  }
0x13b9   : > { %5996 = vmatpush1.bf16.msra.mxu1 %v8146_v63  ;;  %6037 = vmatpush1.bf16.msra.mxu0 %v8148_v41  ;;  %v9348_v63 = vld [vmem:[#allocation11 + $0x488] sm:$0xff]   ;;  %v9349_v41 = vld [vmem:[#allocation11 + $0x450] sm:$0xff]  }
0x13ba   : > { %5997 = vmatprep.subr.bf16.mxu1 %v8163_v2  ;;  %6038 = vmatprep.subr.bf16.mxu0 %v8165_v5  ;;  %v9350_v2 = vld [vmem:[#allocation11 + $0x4d0] sm:$0xff]  }
0x13bb   : > { %v9351_v5 = vld [vmem:[#allocation11 + $0x410] sm:$0xff]  }
0x13bd   : > { %5998 = vmatpush1.bf16.msra.mxu1 %v8162_v8  ;;  %6039 = vmatpush1.bf16.msra.mxu0 %v8164_v9  ;;  %v9357_v8 = vld [vmem:[#allocation11 + $0x460] sm:$0xff]  }
0x13be   : > { %5999 = vmatprep.subr.bf16.mxu1 %v8179_v11  ;;  %6040 = vmatprep.subr.bf16.mxu0 %v8181_v12  ;;  %v9358_v9 = vld [vmem:[#allocation11 + $0x4e0] sm:$0xff]  }
0x13bf   : > { %v9359_v11 = vld [vmem:[#allocation11 + $0x420] sm:$0xff]  }
0x13c0   : > { %v9360_v12 = vld [vmem:[#allocation11 + $0x4a0] sm:$0xff]  }
0x13c1   : > { %6000 = vmatpush1.bf16.msra.mxu1 %v8178_v26  ;;  %6041 = vmatpush1.bf16.msra.mxu0 %v8180_v3  ;;  %v9365_v26 = vld [vmem:[#allocation11 + $0x470] sm:$0xff]  }
0x13c2   : > { %6001 = vmatprep.subr.bf16.mxu1 %v8195_v10  ;;  %6042 = vmatprep.subr.bf16.mxu0 %v8197_v0  ;;  %v9366_v3 = vld [vmem:[#allocation11 + $0x4f0] sm:$0xff]  }
0x13c3   : > { %v9367_v10 = vld [vmem:[#allocation11 + $0x430] sm:$0xff]  }
0x13c4   : > { %v9368_v0 = vld [vmem:[#allocation11 + $0x4b0] sm:$0xff]  }
0x13c5   : > { %6002 = vmatpush1.bf16.msra.mxu1 %v8194_v1  ;;  %6043 = vmatpush1.bf16.msra.mxu0 %v8196_v33  ;;  %v9373_v1 = vld [vmem:[#allocation11 + $0x540] sm:$0xff]  }
0x13c6   : > { %6003 = vmatprep.subr.bf16.mxu1 %v8211_v34  ;;  %6044 = vmatprep.subr.bf16.mxu0 %v8213_v35  ;;  %v9374_v33 = vld [vmem:[#allocation11 + $0x5c0] sm:$0xff]  }
0x13c7   : > { %v10462_v34 = vld [vmem:[%s10603_s8 + $0x10] sm:$0xff] }
0x13c8   : > { %v5030_v35 = vrot.slane %v10462_v34, %v10093_v24  ;;  %v5038_v36 = vrot.slane %v10462_v34, %v10138_v58  ;;  %v5034_v17 = vrot.slane %v10462_v34, %v10088_v22  ;;  %v5042_v37 = vrot.slane %v10462_v34, %v10243_v4 }
0x13c9   : > { %6004 = vmatpush1.bf16.msra.mxu1 %v8210_v39  ;;  %6045 = vmatpush1.bf16.msra.mxu0 %v8212_v40 }
0x13ca   : > { %6005 = vmatprep.subr.bf16.mxu1 %v8227_v42  ;;  %6046 = vmatprep.subr.bf16.mxu0 %v8229_v43 }
0x13cd   : > { %6006 = vmatpush1.bf16.msra.mxu1 %v8226_v23  ;;  %6047 = vmatpush1.bf16.msra.mxu0 %v8228_v15 }
0x13ce   : > { %6007 = vmatprep.subr.bf16.mxu1 %v8243_v47  ;;  %6048 = vmatprep.subr.bf16.mxu0 %v8245_v48 }
0x13d1   : > { %6008 = vmatpush1.bf16.msra.mxu1 %v8242_v49  ;;  %6049 = vmatpush1.bf16.msra.mxu0 %v8244_v50 }
0x13d2   : > { %8637 = vmatprep.subr.bf16.mxu1 %v9341_v51  ;;  %8659 = vmatprep.subr.bf16.mxu0 %v9342_v52 }
0x13d4   : > { %6026 = vmatmul.mubr.bf16.vlgmr.msra.gmra.mrb[92].mxu1 %v10443_v31  ;;  %6067 = vmatmul.mubr.bf16.vlgmr.msra.gmra.mrb[84].mxu0 %v10443_v31  ;;  %v9356_v31 = vld [vmem:[#allocation11 + $0x498] sm:$0xff]  }
0x13d5   : > { %8638 = vmatpush3.bf16.msra.mxu1 %v9343_v53  ;;  %8660 = vmatpush3.bf16.msra.mxu0 %v9344_v56  ;;  %v9375_v56 = vld [vmem:[#allocation11 + $0x500] sm:$0xff]  }
0x13d6   : > { %8639 = vmatprep.subr.bf16.mxu1 %v9345_v57  ;;  %8661 = vmatprep.subr.bf16.mxu0 %v9346_v61  ;;  %v9376_v57 = vld [vmem:[#allocation11 + $0x580] sm:$0xff]  }
0x13d9   : > { %8640 = vmatpush3.bf16.msra.mxu1 %v9347_v62  ;;  %8662 = vmatpush3.bf16.msra.mxu0 %v9348_v63  ;;  %v9377_v63 = vld [vmem:[#allocation11 + $0x548] sm:$0xff]  }
0x13da   : > { %8641 = vmatprep.subr.bf16.mxu1 %v9349_v41  ;;  %8663 = vmatprep.subr.bf16.mxu0 %v9350_v2  ;;  %v9378_v41 = vld [vmem:[#allocation11 + $0x5c8] sm:$0xff]  }
0x13db   : > { %v9379_v2 = vld [vmem:[#allocation11 + $0x508] sm:$0xff]  }
0x13dd   : > { %8642 = vmatpush3.bf16.msra.mxu1 %v9351_v5  ;;  %8664 = vmatpush3.bf16.msra.mxu0 %v9352_v21  ;;  %v9380_v5 = vld [vmem:[#allocation11 + $0x588] sm:$0xff]   ;;  %v9381_v21 = vld [vmem:[#allocation11 + $0x550] sm:$0xff]  }
0x13de   : > { %8643 = vmatprep.subr.bf16.mxu1 %v9353_v25  ;;  %8665 = vmatprep.subr.bf16.mxu0 %v9354_v6  ;;  %v9382_v25 = vld [vmem:[#allocation11 + $0x5d0] sm:$0xff]  }
0x13df   : > { %v9383_v6 = vld [vmem:[#allocation11 + $0x510] sm:$0xff]  }
0x13e1   : > { %8644 = vmatpush3.bf16.msra.mxu1 %v9355_v7  ;;  %8666 = vmatpush3.bf16.msra.mxu0 %v9356_v31  ;;  %v9384_v7 = vld [vmem:[#allocation11 + $0x590] sm:$0xff]   ;;  %v9385_v31 = vld [vmem:[#allocation11 + $0x558] sm:$0xff]  }
0x13e2   : > { %8645 = vmatprep.subr.bf16.mxu1 %v9357_v8  ;;  %8667 = vmatprep.subr.bf16.mxu0 %v9358_v9  ;;  %v9386_v8 = vld [vmem:[#allocation11 + $0x5d8] sm:$0xff]  }
0x13e3   : > { %v9387_v9 = vld [vmem:[#allocation11 + $0x518] sm:$0xff]  }
0x13e5   : > { %8646 = vmatpush3.bf16.msra.mxu1 %v9359_v11  ;;  %8668 = vmatpush3.bf16.msra.mxu0 %v9360_v12  ;;  %v9388_v11 = vld [vmem:[#allocation11 + $0x598] sm:$0xff]   ;;  %v9389_v12 = vld [vmem:[#allocation11 + $0x560] sm:$0xff]  }
0x13e6   : > { %8647 = vmatprep.subr.bf16.mxu1 %v9361_v13  ;;  %8669 = vmatprep.subr.bf16.mxu0 %v9362_v14  ;;  %v9390_v13 = vld [vmem:[#allocation11 + $0x5e0] sm:$0xff]  }
0x13e7   : > { %v9391_v14 = vld [vmem:[#allocation11 + $0x520] sm:$0xff]  }
0x13e9   : > { %8648 = vmatpush3.bf16.msra.mxu1 %v9363_v18  ;;  %8670 = vmatpush3.bf16.msra.mxu0 %v9364_v20  ;;  %v9392_v18 = vld [vmem:[#allocation11 + $0x5a0] sm:$0xff]   ;;  %v9393_v20 = vld [vmem:[#allocation11 + $0x568] sm:$0xff]  }
0x13ea   : > { %8649 = vmatprep.subr.bf16.mxu1 %v9365_v26  ;;  %8671 = vmatprep.subr.bf16.mxu0 %v9366_v3  ;;  %v9394_v26 = vld [vmem:[#allocation11 + $0x5e8] sm:$0xff]  }
0x13eb   : > { %v9395_v3 = vld [vmem:[#allocation11 + $0x528] sm:$0xff]  }
0x13ed   : > { %8650 = vmatpush3.bf16.msra.mxu1 %v9367_v10  ;;  %8672 = vmatpush3.bf16.msra.mxu0 %v9368_v0  ;;  %v9396_v10 = vld [vmem:[#allocation11 + $0x5a8] sm:$0xff]   ;;  %v9397_v0 = vld [vmem:[#allocation11 + $0x570] sm:$0xff]  }
0x13ee   : > { %8651 = vmatprep.subr.bf16.mxu1 %v9369_v27  ;;  %8673 = vmatprep.subr.bf16.mxu0 %v9370_v28  ;;  %v9398_v27 = vld [vmem:[#allocation11 + $0x5f0] sm:$0xff]   ;;  %v5046_v28 = vrot.slane %v10462_v34, %v10254_v54 }
0x13f1   : > { %8652 = vmatpush3.bf16.msra.mxu1 %v9371_v29  ;;  %8674 = vmatpush3.bf16.msra.mxu0 %v9372_v32  ;;  %v5054_v29 = vrot.slane %v10462_v34, %v10257_v55  ;;  %v5050_v32 = vrot.slane %v10462_v34, %v10260_v59 }
0x13f2   : > { %8681 = vmatprep.subr.bf16.mxu1 %v9373_v1  ;;  %8703 = vmatprep.subr.bf16.mxu0 %v9374_v33  ;;  %v5058_v1 = vrot.slane %v10462_v34, %v10263_v60  ;;  %v9399_v33 = vld [vmem:[#allocation11 + $0x530] sm:$0xff]   ;;  %v9404_v34 = vld [vmem:[#allocation11 + $0x5b8] sm:$0xff]  }
0x1447   : > { %v5781_v38 = vpop.f32.mrb[80].mxu1  ;;  %v5822_v39 = vpop.f32.mrb[72].mxu0 }
0x1448   : > { %v5782_v40 = vadd.f32 %v5781_v38, %v5030_v35  ;;  %v5823_v42 = vadd.f32 %v5822_v39, %v5038_v36  ;;  %v5783_v43 = vpop.f32.mrb[81].mxu1  ;;  %v5824_v44 = vpop.f32.mrb[73].mxu0  ;;  %v9400_v35 = vld [vmem:[#allocation11 + $0x5b0] sm:$0xff]   ;;  %v9401_v36 = vld [vmem:[#allocation11 + $0x578] sm:$0xff]  }
0x1449   : > { %v5784_v45 = vadd.f32 %v5783_v43, %v5034_v17  ;;  %v5825_v46 = vadd.f32 %v5824_v44, %v5042_v37  ;;  %v5785_v16 = vpop.f32.mrb[82].mxu1  ;;  %v5826_v23 = vpop.f32.mrb[74].mxu0  ;;  %v9402_v17 = vld [vmem:[#allocation11 + $0x5f8] sm:$0xff]  }
0x144a   : > { %v6075_v15 = vmax.f32 %v5782_v40, 0.0  ;;  %v6077_v47 = vmax.f32 %v5823_v42, 0.0  ;;  %v5786_v48 = vpop.f32.mrb[83].mxu1  ;;  %v5827_v49 = vpop.f32.mrb[75].mxu0  ;;  %v9403_v23 = vld [vmem:[#allocation11 + $0x538] sm:$0xff]  }
0x144b   : > { %v6076_v50 = vmax.f32 %v5784_v45, 0.0  ;;  %v6078_v51 = vmax.f32 %v5825_v46, 0.0 }
0x144c   : > { %v6091_v61 = vpack.c.bf16 %v6075_v15, %v6075_v15  ;;  %v6093_v62 = vpack.c.bf16 %v6077_v47, %v6077_v47 }
0x144d   : > { %v6092_v52 = vpack.c.bf16 %v6076_v50, %v6076_v50  ;;  %v6094_v53 = vpack.c.bf16 %v6078_v51, %v6078_v51  ;;  %v9405_v50 = vld [vmem:[#allocation11 + $0x640] sm:$0xff]  }
0x144e   : > { %v9406_v51 = vld [vmem:[#allocation11 + $0x6c0] sm:$0xff]  }
0x144f   : > { %7172 = vmatprep.mubr.bf16.mxu1 %v6092_v52  ;;  %7212 = vmatprep.mubr.bf16.mxu0 %v6094_v53 }
0x1450   : > { %7173 = vmatmul.mubr.bf16.vlgmr.msra.gmra.mrb[96].mxu1 %v6091_v61  ;;  %7213 = vmatmul.mubr.bf16.vlgmr.msra.gmra.mrb[88].mxu0 %v6093_v62  ;;  %v9407_v61 = vld [vmem:[#allocation11 + $0x600] sm:$0xff]  }
0x1451   : > { %8682 = vmatpush3.bf16.msra.mxu1 %v9375_v56  ;;  %8704 = vmatpush3.bf16.msra.mxu0 %v9376_v57  ;;  %v9408_v62 = vld [vmem:[#allocation11 + $0x680] sm:$0xff]  }
0x1452   : > { %8683 = vmatprep.subr.bf16.mxu1 %v9377_v63  ;;  %8705 = vmatprep.subr.bf16.mxu0 %v9378_v41 }
0x1455   : > { %8684 = vmatpush3.bf16.msra.mxu1 %v9379_v2  ;;  %8706 = vmatpush3.bf16.msra.mxu0 %v9380_v5  ;;  %v9409_v2 = vld [vmem:[#allocation11 + $0x648] sm:$0xff]  }
0x1456   : > { %8685 = vmatprep.subr.bf16.mxu1 %v9381_v21  ;;  %8707 = vmatprep.subr.bf16.mxu0 %v9382_v25  ;;  %v9410_v5 = vld [vmem:[#allocation11 + $0x6c8] sm:$0xff]  }
0x1457   : > { %v9411_v21 = vld [vmem:[#allocation11 + $0x608] sm:$0xff]  }
0x1458   : > { %v9412_v25 = vld [vmem:[#allocation11 + $0x688] sm:$0xff]  }
0x1459   : > { %8686 = vmatpush3.bf16.msra.mxu1 %v9383_v6  ;;  %8708 = vmatpush3.bf16.msra.mxu0 %v9384_v7  ;;  %v9413_v6 = vld [vmem:[#allocation11 + $0x650] sm:$0xff]  }
0x145a   : > { %8687 = vmatprep.subr.bf16.mxu1 %v9385_v31  ;;  %8709 = vmatprep.subr.bf16.mxu0 %v9386_v8  ;;  %v9414_v7 = vld [vmem:[#allocation11 + $0x6d0] sm:$0xff]  }
0x145b   : > { %v9415_v31 = vld [vmem:[#allocation11 + $0x610] sm:$0xff]  }
0x145c   : > { %v9416_v8 = vld [vmem:[#allocation11 + $0x690] sm:$0xff]  }
0x145d   : > { %8688 = vmatpush3.bf16.msra.mxu1 %v9387_v9  ;;  %8710 = vmatpush3.bf16.msra.mxu0 %v9388_v11  ;;  %v9417_v9 = vld [vmem:[#allocation11 + $0x658] sm:$0xff]  }
0x145e   : > { %8689 = vmatprep.subr.bf16.mxu1 %v9389_v12  ;;  %8711 = vmatprep.subr.bf16.mxu0 %v9390_v13  ;;  %v9418_v11 = vld [vmem:[#allocation11 + $0x6d8] sm:$0xff]  }
0x145f   : > { %v9419_v12 = vld [vmem:[#allocation11 + $0x618] sm:$0xff]  }
0x1460   : > { %v9420_v13 = vld [vmem:[#allocation11 + $0x698] sm:$0xff]  }
0x1461   : > { %8690 = vmatpush3.bf16.msra.mxu1 %v9391_v14  ;;  %8712 = vmatpush3.bf16.msra.mxu0 %v9392_v18  ;;  %v9421_v14 = vld [vmem:[#allocation11 + $0x660] sm:$0xff]  }
0x1462   : > { %8691 = vmatprep.subr.bf16.mxu1 %v9393_v20  ;;  %8713 = vmatprep.subr.bf16.mxu0 %v9394_v26  ;;  %v9422_v18 = vld [vmem:[#allocation11 + $0x6e0] sm:$0xff]  }
0x1463   : > { %v9423_v20 = vld [vmem:[#allocation11 + $0x620] sm:$0xff]  }
0x1464   : > { %v9424_v26 = vld [vmem:[#allocation11 + $0x6a0] sm:$0xff]  }
0x1465   : > { %8692 = vmatpush3.bf16.msra.mxu1 %v9395_v3  ;;  %8714 = vmatpush3.bf16.msra.mxu0 %v9396_v10  ;;  %v9425_v3 = vld [vmem:[#allocation11 + $0x668] sm:$0xff]  }
0x1466   : > { %8693 = vmatprep.subr.bf16.mxu1 %v9397_v0  ;;  %8715 = vmatprep.subr.bf16.mxu0 %v9398_v27  ;;  %v9426_v10 = vld [vmem:[#allocation11 + $0x6e8] sm:$0xff]  }
0x1467   : > { %v5863_v37 = vpop.f32.mrb[84].mxu1  ;;  %v5904_v38 = vpop.f32.mrb[76].mxu0  ;;  %v9427_v0 = vld [vmem:[#allocation11 + $0x628] sm:$0xff]  }
0x1468   : > { %v5864_v39 = vadd.f32 %v5863_v37, %v5046_v28  ;;  %v5905_v40 = vadd.f32 %v5904_v38, %v5054_v29  ;;  %v5865_v42 = vpop.f32.mrb[85].mxu1  ;;  %v5906_v43 = vpop.f32.mrb[77].mxu0  ;;  %v9428_v27 = vld [vmem:[#allocation11 + $0x6a8] sm:$0xff]   ;;  %v9429_v29 = vld [vmem:[#allocation11 + $0x670] sm:$0xff]   ;;  %v9433_v38 = vld [vmem:[#allocation11 + $0x678] sm:$0xff]  }
0x1469   : > { %v5866_v44 = vadd.f32 %v5865_v42, %v5050_v32  ;;  %v5907_v45 = vadd.f32 %v5906_v43, %v5058_v1  ;;  %v5867_v46 = vpop.f32.mrb[86].mxu1  ;;  %v5908_v16 = vpop.f32.mrb[78].mxu0  ;;  %8694 = vmatpush3.bf16.msra.mxu1 %v9399_v33  ;;  %8716 = vmatpush3.bf16.msra.mxu0 %v9400_v35  ;;  %v10483_v28 = vld [vmem:[%s10603_s8 + $0x18] sm:$0xff] }
0x146a   : > { %v6079_v15 = vmax.f32 %v5864_v39, 0.0  ;;  %v6081_v47 = vmax.f32 %v5905_v40, 0.0  ;;  %v5868_v48 = vpop.f32.mrb[87].mxu1  ;;  %v5909_v49 = vpop.f32.mrb[79].mxu0  ;;  %8695 = vmatprep.subr.bf16.mxu1 %v9401_v36  ;;  %8717 = vmatprep.subr.bf16.mxu0 %v9402_v17  ;;  %v9430_v32 = vld [vmem:[#allocation11 + $0x6f0] sm:$0xff]   ;;  %v5062_v1 = vrot.slane %v10483_v28, %v10093_v24  ;;  %v5070_v33 = vrot.slane %v10483_v28, %v10138_v58  ;;  %v9434_v39 = vld [vmem:[#allocation11 + $0x6f8] sm:$0xff]  }
0x146b   : > { %v6080_v52 = vmax.f32 %v5866_v44, 0.0  ;;  %v6082_v53 = vmax.f32 %v5907_v45, 0.0  ;;  %v5066_v35 = vrot.slane %v10483_v28, %v10088_v22  ;;  %v5074_v36 = vrot.slane %v10483_v28, %v10243_v4  ;;  %v9431_v17 = vld [vmem:[#allocation11 + $0x630] sm:$0xff]   ;;  %v9435_v22 = vld [vmem:[#allocation11 + $0x638] sm:$0xff]   ;;  %v9437_v49 = vld [vmem:[#allocation11 + $0x740] sm:$0xff]  }
0x146c   : > { %v6095_v63 = vpack.c.bf16 %v6079_v15, %v6079_v15  ;;  %v6097_v41 = vpack.c.bf16 %v6081_v47, %v6081_v47  ;;  %v9432_v37 = vld [vmem:[#allocation11 + $0x6b0] sm:$0xff]   ;;  %v9436_v4 = vld [vmem:[#allocation11 + $0x6b8] sm:$0xff]  }
0x146d   : > { %v6096_v56 = vpack.c.bf16 %v6080_v52, %v6080_v52  ;;  %v6098_v57 = vpack.c.bf16 %v6082_v53, %v6082_v53  ;;  %8696 = vmatpush3.bf16.msra.mxu1 %v9403_v23  ;;  %8718 = vmatpush3.bf16.msra.mxu0 %v9404_v34 }
0x146e   : > { %8725 = vmatprep.subr.bf16.mxu1 %v9405_v50  ;;  %8747 = vmatprep.subr.bf16.mxu0 %v9406_v51  ;;  %v9438_v50 = vld [vmem:[#allocation11 + $0x7c0] sm:$0xff]  }
0x146f   : > { %7252 = vmatprep.mubr.bf16.mxu1 %v6096_v56  ;;  %7292 = vmatprep.mubr.bf16.mxu0 %v6098_v57  ;;  %v9439_v57 = vld [vmem:[#allocation11 + $0x700] sm:$0xff]  }
0x1470   : > { %7253 = vmatmul.mubr.bf16.vlgmr.msra.gmra.mrb[100].mxu1 %v6095_v63  ;;  %7293 = vmatmul.mubr.bf16.vlgmr.msra.gmra.mrb[92].mxu0 %v6097_v41  ;;  %v9441_v41 = vld [vmem:[#allocation11 + $0x748] sm:$0xff]  }
0x1471   : > { %8726 = vmatpush3.bf16.msra.mxu1 %v9407_v61  ;;  %8748 = vmatpush3.bf16.msra.mxu0 %v9408_v62  ;;  %v9440_v61 = vld [vmem:[#allocation11 + $0x780] sm:$0xff]  }
0x1472   : > { %8727 = vmatprep.subr.bf16.mxu1 %v9409_v2  ;;  %8749 = vmatprep.subr.bf16.mxu0 %v9410_v5  ;;  %v9442_v2 = vld [vmem:[#allocation11 + $0x7c8] sm:$0xff]  }
0x1473   : > { %v9443_v5 = vld [vmem:[#allocation11 + $0x708] sm:$0xff]  }
0x1475   : > { %8728 = vmatpush3.bf16.msra.mxu1 %v9411_v21  ;;  %8750 = vmatpush3.bf16.msra.mxu0 %v9412_v25  ;;  %v9444_v21 = vld [vmem:[#allocation11 + $0x788] sm:$0xff]   ;;  %v9445_v25 = vld [vmem:[#allocation11 + $0x750] sm:$0xff]  }
0x1476   : > { %8729 = vmatprep.subr.bf16.mxu1 %v9413_v6  ;;  %8751 = vmatprep.subr.bf16.mxu0 %v9414_v7  ;;  %v9446_v6 = vld [vmem:[#allocation11 + $0x7d0] sm:$0xff]  }
0x1477   : > { %v9447_v7 = vld [vmem:[#allocation11 + $0x710] sm:$0xff]  }
0x1479   : > { %8730 = vmatpush3.bf16.msra.mxu1 %v9415_v31  ;;  %8752 = vmatpush3.bf16.msra.mxu0 %v9416_v8  ;;  %v9448_v31 = vld [vmem:[#allocation11 + $0x790] sm:$0xff]   ;;  %v9449_v8 = vld [vmem:[#allocation11 + $0x758] sm:$0xff]  }
0x147a   : > { %8731 = vmatprep.subr.bf16.mxu1 %v9417_v9  ;;  %8753 = vmatprep.subr.bf16.mxu0 %v9418_v11  ;;  %v9450_v9 = vld [vmem:[#allocation11 + $0x7d8] sm:$0xff]  }
0x147b   : > { %v9451_v11 = vld [vmem:[#allocation11 + $0x718] sm:$0xff]  }
0x147d   : > { %8732 = vmatpush3.bf16.msra.mxu1 %v9419_v12  ;;  %8754 = vmatpush3.bf16.msra.mxu0 %v9420_v13  ;;  %v9452_v12 = vld [vmem:[#allocation11 + $0x798] sm:$0xff]   ;;  %v9453_v13 = vld [vmem:[#allocation11 + $0x760] sm:$0xff]  }
0x147e   : > { %8733 = vmatprep.subr.bf16.mxu1 %v9421_v14  ;;  %8755 = vmatprep.subr.bf16.mxu0 %v9422_v18  ;;  %v9454_v14 = vld [vmem:[#allocation11 + $0x7e0] sm:$0xff]  }
0x147f   : > { %v9455_v18 = vld [vmem:[#allocation11 + $0x720] sm:$0xff]  }
0x1481   : > { %8734 = vmatpush3.bf16.msra.mxu1 %v9423_v20  ;;  %8756 = vmatpush3.bf16.msra.mxu0 %v9424_v26  ;;  %v9456_v20 = vld [vmem:[#allocation11 + $0x7a0] sm:$0xff]   ;;  %v9457_v26 = vld [vmem:[#allocation11 + $0x768] sm:$0xff]  }
0x1482   : > { %8735 = vmatprep.subr.bf16.mxu1 %v9425_v3  ;;  %8757 = vmatprep.subr.bf16.mxu0 %v9426_v10  ;;  %v9458_v3 = vld [vmem:[#allocation11 + $0x7e8] sm:$0xff]  }
0x1483   : > { %v9459_v10 = vld [vmem:[#allocation11 + $0x728] sm:$0xff]  }
0x1485   : > { %8736 = vmatpush3.bf16.msra.mxu1 %v9427_v0  ;;  %8758 = vmatpush3.bf16.msra.mxu0 %v9428_v27  ;;  %v9460_v0 = vld [vmem:[#allocation11 + $0x7a8] sm:$0xff]   ;;  %v9461_v27 = vld [vmem:[#allocation11 + $0x770] sm:$0xff]  }
0x1486   : > { %8737 = vmatprep.subr.bf16.mxu1 %v9429_v29  ;;  %8759 = vmatprep.subr.bf16.mxu0 %v9430_v32  ;;  %v9462_v29 = vld [vmem:[#allocation11 + $0x7f0] sm:$0xff]   ;;  %v5078_v32 = vrot.slane %v10483_v28, %v10254_v54 }
0x1487   : > { %v5945_v40 = vpop.f32.mrb[88].mxu1  ;;  %v5986_v42 = vpop.f32.mrb[80].mxu0 }
0x1488   : > { %v5946_v24 = vadd.f32 %v5945_v40, %v5062_v1  ;;  %v5987_v43 = vadd.f32 %v5986_v42, %v5070_v33  ;;  %v5947_v44 = vpop.f32.mrb[89].mxu1  ;;  %v5988_v58 = vpop.f32.mrb[81].mxu0  ;;  %v5086_v1 = vrot.slane %v10483_v28, %v10257_v55  ;;  %v5082_v33 = vrot.slane %v10483_v28, %v10260_v59  ;;  %v9467_v59 = vld [vmem:[#allocation11 + $0x738] sm:$0xff]  }
0x1489   : > { %v5948_v45 = vadd.f32 %v5947_v44, %v5066_v35  ;;  %v5989_v46 = vadd.f32 %v5988_v58, %v5074_v36  ;;  %v5949_v16 = vpop.f32.mrb[90].mxu1  ;;  %v5990_v23 = vpop.f32.mrb[82].mxu0  ;;  %8738 = vmatpush3.bf16.msra.mxu1 %v9431_v17  ;;  %8760 = vmatpush3.bf16.msra.mxu0 %v9432_v37  ;;  %v5090_v35 = vrot.slane %v10483_v28, %v10263_v60  ;;  %v9463_v36 = vld [vmem:[#allocation11 + $0x730] sm:$0xff]   ;;  %v9465_v37 = vld [vmem:[#allocation11 + $0x778] sm:$0xff]  }
0x148a   : > { %v6083_v34 = vmax.f32 %v5946_v24, 0.0  ;;  %v6085_v15 = vmax.f32 %v5987_v43, 0.0  ;;  %v5950_v47 = vpop.f32.mrb[91].mxu1  ;;  %v5991_v48 = vpop.f32.mrb[83].mxu0  ;;  %8739 = vmatprep.subr.bf16.mxu1 %v9433_v38  ;;  %8761 = vmatprep.subr.bf16.mxu0 %v9434_v39  ;;  %v9464_v17 = vld [vmem:[#allocation11 + $0x7b0] sm:$0xff]   ;;  %v9466_v38 = vld [vmem:[#allocation11 + $0x7f8] sm:$0xff]  }
0x148b   : > { %v6084_v51 = vmax.f32 %v5948_v45, 0.0  ;;  %v6086_v52 = vmax.f32 %v5989_v46, 0.0  ;;  %v9468_v60 = vld [vmem:[#allocation11 + $0x7b8] sm:$0xff]  }
0x148c   : > { %v6099_v62 = vpack.c.bf16 %v6083_v34, %v6083_v34  ;;  %v6101_v63 = vpack.c.bf16 %v6085_v15, %v6085_v15 }
0x148d   : > { %v6100_v53 = vpack.c.bf16 %v6084_v51, %v6084_v51  ;;  %v6102_v56 = vpack.c.bf16 %v6086_v52, %v6086_v52  ;;  %8740 = vmatpush3.bf16.msra.mxu1 %v9435_v22  ;;  %8762 = vmatpush3.bf16.msra.mxu0 %v9436_v4  ;;  %v8247_v51 = vld [vmem:[%s10605_s10 + $0x1] ss:$0 sm:$0xff] }
0x148e   : > { %8769 = vmatprep.subr.bf16.mxu1 %v9437_v49  ;;  %8791 = vmatprep.subr.bf16.mxu0 %v9438_v50 }
0x148f   : > { %7332 = vmatprep.mubr.bf16.mxu1 %v6100_v53  ;;  %7372 = vmatprep.mubr.bf16.mxu0 %v6102_v56 }
0x1490   : > { %7333 = vmatmul.mubr.bf16.vlgmr.msra.gmra.mrb[104].mxu1 %v6099_v62  ;;  %7373 = vmatmul.mubr.bf16.vlgmr.msra.gmra.mrb[96].mxu0 %v6101_v63 }
0x1491   : > { %8770 = vmatpush3.bf16.msra.mxu1 %v9439_v57  ;;  %8792 = vmatpush3.bf16.msra.mxu0 %v9440_v61 }
0x1492   : > { %8771 = vmatprep.subr.bf16.mxu1 %v9441_v41  ;;  %8793 = vmatprep.subr.bf16.mxu0 %v9442_v2 }
0x1495   : > { %8772 = vmatpush3.bf16.msra.mxu1 %v9443_v5  ;;  %8794 = vmatpush3.bf16.msra.mxu0 %v9444_v21 }
0x1496   : > { %8773 = vmatprep.subr.bf16.mxu1 %v9445_v25  ;;  %8795 = vmatprep.subr.bf16.mxu0 %v9446_v6 }
0x1499   : > { %8774 = vmatpush3.bf16.msra.mxu1 %v9447_v7  ;;  %8796 = vmatpush3.bf16.msra.mxu0 %v9448_v31 }
0x149a   : > { %8775 = vmatprep.subr.bf16.mxu1 %v9449_v8  ;;  %8797 = vmatprep.subr.bf16.mxu0 %v9450_v9 }
0x149d   : > { %8776 = vmatpush3.bf16.msra.mxu1 %v9451_v11  ;;  %8798 = vmatpush3.bf16.msra.mxu0 %v9452_v12 }
0x149e   : > { %8777 = vmatprep.subr.bf16.mxu1 %v9453_v13  ;;  %8799 = vmatprep.subr.bf16.mxu0 %v9454_v14 }
0x14a1   : > { %8778 = vmatpush3.bf16.msra.mxu1 %v9455_v18  ;;  %8800 = vmatpush3.bf16.msra.mxu0 %v9456_v20 }
0x14a2   : > { %8779 = vmatprep.subr.bf16.mxu1 %v9457_v26  ;;  %8801 = vmatprep.subr.bf16.mxu0 %v9458_v3 }
0x14a5   : > { %8780 = vmatpush3.bf16.msra.mxu1 %v9459_v10  ;;  %8802 = vmatpush3.bf16.msra.mxu0 %v9460_v0 }
0x14a6   : > { %8781 = vmatprep.subr.bf16.mxu1 %v9461_v27  ;;  %8803 = vmatprep.subr.bf16.mxu0 %v9462_v29 }
0x14a7   : > { %v6027_v39 = vpop.f32.mrb[92].mxu1  ;;  %v6068_v40 = vpop.f32.mrb[84].mxu0 }
0x14a8   : > { %v6028_v54 = vadd.f32 %v6027_v39, %v5078_v32  ;;  %v6069_v42 = vadd.f32 %v6068_v40, %v5086_v1  ;;  %v6029_v24 = vpop.f32.mrb[93].mxu1  ;;  %v6070_v55 = vpop.f32.mrb[85].mxu0 }
0x14a9   : > { %v6030_v43 = vadd.f32 %v6029_v24, %v5082_v33  ;;  %v6071_v44 = vadd.f32 %v6070_v55, %v5090_v35  ;;  %v6031_v58 = vpop.f32.mrb[94].mxu1  ;;  %v6072_v45 = vpop.f32.mrb[86].mxu0  ;;  %8782 = vmatpush3.bf16.msra.mxu1 %v9463_v36  ;;  %8804 = vmatpush3.bf16.msra.mxu0 %v9464_v17 }
0x14aa   : > { %v6087_v28 = vmax.f32 %v6028_v54, 0.0  ;;  %v6089_v46 = vmax.f32 %v6069_v42, 0.0  ;;  %v6032_v16 = vpop.f32.mrb[95].mxu1  ;;  %v6073_v23 = vpop.f32.mrb[87].mxu0  ;;  %8783 = vmatprep.subr.bf16.mxu1 %v9465_v37  ;;  %8805 = vmatprep.subr.bf16.mxu0 %v9466_v38 }
0x14ab   : > { %v6088_v22 = vmax.f32 %v6030_v43, 0.0  ;;  %v6090_v4 = vmax.f32 %v6071_v44, 0.0 }
0x14ac   : > { %v6103_v47 = vpack.c.bf16 %v6087_v28, %v6087_v28  ;;  %v6105_v48 = vpack.c.bf16 %v6089_v46, %v6089_v46 }
0x14ad   : > { %v6104_v34 = vpack.c.bf16 %v6088_v22, %v6088_v22  ;;  %v6106_v15 = vpack.c.bf16 %v6090_v4, %v6090_v4  ;;  %8784 = vmatpush3.bf16.msra.mxu1 %v9467_v59  ;;  %8806 = vmatpush3.bf16.msra.mxu0 %v9468_v60  ;;  %v9469_v59 = vld [vmem:[%s10659_s27] sm:$0xff]   ;;  %v9470_v60 = vld [vmem:[%s10659_s27 + $0x8] sm:$0xff]   ;;  %v9472_v22 = vld [vmem:[%s10659_s27 + $0x18] sm:$0xff]  }
0x14ae   : > { %8998 = vmatprep.subr.bf16.mxu1 %v9782_v19  ;;  %v9473_v4 = vld [vmem:[%s10659_s27 + $0x20] sm:$0xff]  }
0x14af   : > { %7412 = vmatprep.mubr.bf16.mxu1 %v6104_v34  ;;  %7452 = vmatprep.mubr.bf16.mxu0 %v6106_v15  ;;  %v9474_v34 = vld [vmem:[%s10659_s27 + $0x28] sm:$0xff]   ;;  %v9475_v15 = vld [vmem:[%s10659_s27 + $0x30] sm:$0xff]  }
0x14b0   : > { %7413 = vmatmul.mubr.bf16.vlgmr.msra.gmra.mrb[108].mxu1 %v6103_v47  ;;  %7453 = vmatmul.mubr.bf16.vlgmr.msra.gmra.mrb[100].mxu0 %v6105_v48  ;;  %v9476_v47 = vld [vmem:[%s10659_s27 + $0x38] sm:$0xff]  }
0x14b1   : > { %9014 = vmatprep.mubr.msk.bf16.mxu1 %vm9783_vm0, %v9782_v19  ;;  %8999 = vmatpush3.bf16.msra.mxu1 %v9469_v59 }
0x14b2   : > { %9000 = vmatprep.subr.bf16.mxu1 %v9782_v19 }
0x14b5   : > { %9001 = vmatpush3.bf16.msra.mxu1 %v9470_v60 }
0x14b6   : > { %9002 = vmatprep.subr.bf16.mxu1 %v9782_v19 }
0x1523   : > { %v8653_v49 = vpop.f32.mrb[96].mxu1  ;;  %v8675_v50 = vpop.f32.mrb[88].mxu0 }
0x1524   : > { %v8654_v52 = vpop.f32.mrb[97].mxu1  ;;  %v8676_v53 = vpop.f32.mrb[89].mxu0 }
0x1525   : > { %v8655_v56 = vadd.f32 %v8654_v52, %v8653_v49  ;;  %v8677_v57 = vadd.f32 %v8676_v53, %v8675_v50  ;;  %v8656_v61 = vpop.f32.mrb[98].mxu1  ;;  %v8678_v62 = vpop.f32.mrb[90].mxu0  ;;  %v8378_v52 = vld [vmem:[%s10606_s11 + $0x1] ss:$0 sm:$0xff] }
0x1526   : > { %v8657_v63 = vpop.f32.mrb[99].mxu1  ;;  %v8679_v41 = vpop.f32.mrb[91].mxu0 }
0x1527   : > { %v7175_v2 = vadd.f32 %v8655_v56, %v8247_v51  ;;  %v8379_v56 = vld [vmem:[%s10658_s23 + $0x1] ss:$0 sm:$0xff] }
0x1529   : > { %v7215_v5 = vadd.f32 %v8677_v57, %v7175_v2 }
0x1543   : > { %v8697_v21 = vpop.f32.mrb[100].mxu1  ;;  %v8719_v25 = vpop.f32.mrb[92].mxu0 }
0x1544   : > { %v8698_v6 = vpop.f32.mrb[101].mxu1  ;;  %v8720_v7 = vpop.f32.mrb[93].mxu0 }
0x1545   : > { %v8699_v31 = vadd.f32 %v8698_v6, %v8697_v21  ;;  %v8721_v8 = vadd.f32 %v8720_v7, %v8719_v25  ;;  %v8700_v9 = vpop.f32.mrb[102].mxu1  ;;  %v8722_v11 = vpop.f32.mrb[94].mxu0 }
0x1546   : > { %v8701_v12 = vpop.f32.mrb[103].mxu1  ;;  %v8723_v13 = vpop.f32.mrb[95].mxu0 }
0x1547   : > { %v7255_v14 = vadd.f32 %v8699_v31, %v7215_v5 }
0x1549   : > { %v7295_v18 = vadd.f32 %v8721_v8, %v7255_v14 }
0x1563   : > { %v8741_v20 = vpop.f32.mrb[104].mxu1  ;;  %v8763_v26 = vpop.f32.mrb[96].mxu0 }
0x1564   : > { %v8742_v3 = vpop.f32.mrb[105].mxu1  ;;  %v8764_v10 = vpop.f32.mrb[97].mxu0 }
0x1565   : > { %v8743_v0 = vadd.f32 %v8742_v3, %v8741_v20  ;;  %v8765_v27 = vadd.f32 %v8764_v10, %v8763_v26  ;;  %v8744_v29 = vpop.f32.mrb[106].mxu1  ;;  %v8766_v32 = vpop.f32.mrb[98].mxu0 }
0x1566   : > { %v8745_v1 = vpop.f32.mrb[107].mxu1  ;;  %v8767_v33 = vpop.f32.mrb[99].mxu0 }
0x1567   : > { %v7335_v35 = vadd.f32 %v8743_v0, %v7295_v18 }
0x1569   : > { %v7375_v36 = vadd.f32 %v8765_v27, %v7335_v35 }
0x1583   : > { %v8785_v17 = vpop.f32.mrb[108].mxu1  ;;  %v8807_v37 = vpop.f32.mrb[100].mxu0 }
0x1584   : > { %v8786_v38 = vpop.f32.mrb[109].mxu1  ;;  %v8808_v39 = vpop.f32.mrb[101].mxu0 }
0x1585   : > { %v8787_v40 = vadd.f32 %v8786_v38, %v8785_v17  ;;  %v8809_v54 = vadd.f32 %v8808_v39, %v8807_v37  ;;  %v8788_v42 = vpop.f32.mrb[110].mxu1  ;;  %v8810_v24 = vpop.f32.mrb[102].mxu0 }
0x1586   : > { %v8789_v55 = vpop.f32.mrb[111].mxu1  ;;  %v8811_v43 = vpop.f32.mrb[103].mxu0 }
0x1587   : > { %v7415_v44 = vadd.f32 %v8787_v40, %v7375_v36 }
0x1589   : > { %v7455_v58 = vadd.f32 %v8809_v54, %v7415_v44 }
0x158b   : > { %v7460_v45 = vadd.f32 %v7455_v58, %v10439_v30  ;;  %v9471_v30 = vld [vmem:[%s10659_s27 + $0x10] sm:$0xff]  }
0x158c   : > { %9003 = vmatpush3.bf16.msra.mxu1 %v9471_v30 }
0x158d   : > { %7465 = vadd.xlane.f32.xlu0 %v7460_v45  ;;  %9004 = vmatprep.subr.bf16.mxu1 %v9782_v19 }
0x1590   : > { %9005 = vmatpush3.bf16.msra.mxu1 %v9472_v22 }
0x1591   : > { %9006 = vmatprep.subr.bf16.mxu1 %v9782_v19 }
0x1594   : > { %9007 = vmatpush3.bf16.msra.mxu1 %v9473_v4 }
0x1595   : > { %9008 = vmatprep.subr.bf16.mxu1 %v9782_v19 }
0x1598   : > { %9009 = vmatpush3.bf16.msra.mxu1 %v9474_v34 }
0x1599   : > { %9010 = vmatprep.subr.bf16.mxu1 %v9782_v19 }
0x159c   : > { %9011 = vmatpush3.bf16.msra.mxu1 %v9475_v15 }
0x159d   : > { %9012 = vmatprep.subr.bf16.mxu1 %v9782_v19  ;;  %v8380_v19 = vld [vmem:[%s10661_s16] ss:$0 sm:$0xff] }
0x15a0   : > { %9013 = vmatpush3.bf16.msra.mxu1 %v9476_v47 }
0x161a   : > { %v7466_v28 = vpop.xlane.xlu0 %7465 }
0x161b   : > { %v7467_v46 = vmul.f32 0.0078125, %v7466_v28 }
0x161d   : > { %v7468_v16 = vsub.f32 %v7460_v45, %v7467_v46 }
0x161f   : > { %v7469_v23 = vmul.f32 %v7468_v16, %v7468_v16 }
0x1621   : > { %7470 = vadd.xlane.f32.xlu0 %v7469_v23 }
0x16ae   : > { %v7471_v48 = vpop.xlane.xlu0 %7470 }
0x16af   : > { %v7472_v49 = vmul.f32 0.0078125, %v7471_v48 }
0x16b1   : > { %v7473_v50 = vadd.f32 1e-05, %v7472_v49 }
0x16b3   : > { %9515 = vrsqrt.f32 %v7473_v50 }
0x16bd   : > { %v9516_v51 = vpop.eup %9515 }
0x16be   : > { %v7475_v53 = vmul.f32 %v9516_v51, %v7468_v16 }
0x16c0   : > { %v7482_v57 = vmul.f32 %v8378_v52, %v7475_v53 }
0x16c2   : > { %v7489_v61 = vadd.f32 %v8379_v56, %v7482_v57 }
0x16c4   : > { %v7490_v62 = vpack.c.bf16 %v7489_v61, %v7489_v61 }
0x16c6   : > { %9015 = vmatmul.mubr.bf16.vlgmr.msra.gmra.mrb[112].mxu1 %v7490_v62 }
0x1799   : > { %v7596_v63 = vpop.f32.mrb[112].mxu1 }
0x179a   : > { %v7597_v41 = vadd.f32 %v8380_v19, %v7596_v63  ;;  %v9016_v2 = vpop.f32.mrb[113].mxu1 }
0x179b   : > { %v7599_v5 = vpop.f32.mrb[114].mxu1 }
0x179c   : > { %7602 = vst [vmem:[%s573_s26] sm:$0xff] %v7597_v41  ;;  %v9017_v21 = vpop.f32.mrb[115].mxu1 }
0x179d   : > { %9699 = shalt.err (!%p9696_p9)
}
0x179e   : > { %s9700_s24 = scalar_lea.hbm %s10553_s13, 128  ;;  %s9704_s30 = scalar_lea.hbm %s10663_s12, 256 }
0x179f   : > { %p9701_p10 = scmp.ne.s32.totalorder %s10553_s13, %s9700_s24  ;;  %p9705_p1 = scmp.lt.u32.totalorder %s10553_s13, %s10663_s12 }
0x17a0   : > { %p9706_p2 = scmp.lt.u32.totalorder %s9704_s30, %s9700_s24  ;;  %p9708_p4 = scmp.lt.u32.totalorder %s9700_s24, %s10553_s13 }
0x17a1   : > { %p9702_p13 = pnand %p9701_p10, %p10664_p7 }
0x17a2   : > { %p9707_p3 = por %p9706_p2, %p9705_p1 }
0x17a3   : > { %p9703_p12 = pneg %p9702_p13 }
0x17a4   : > { %p9709_p8 = por %p9708_p4, %p9707_p3 }
0x17a6   : > { %p9710_p11 = pnand %p9709_p8, %p9703_p12 }
0x17a8   : > { %9713 = shalt.err (!%p9710_p11)
}
0x17a9   : > { %9042 = dma.vmem_to_hbm [thread:$0]  (%p10664_p7), %s10555_s20, 128, %s10553_s13, %s7604_s29  }
0x17aa PF: > { %s10665_s26 = sld [smem:[#allocation22_spill]]  ;;  %s10666_s28 = sld [smem:[#allocation19_spill]] }
0x17ab   : > { %s10667_s17 = sld [smem:[#allocation26_spill]] }
0x17b0   : > { %p9079_p5 = scmp.ge.s32.totalorder %s10665_s26, 2  ;;  %s7629_s22 = sand.u32 1, %s10666_s28  }
0x17b1   : > { %p10668_p6 = scmp.ne.s32.totalorder %s10667_s17, 0  ;;  %s7630_s14 = scalar_lea.sflag [#allocation4], %s7629_s22 }
0x17b3   : > { %p9064_p0 = pnand %p9079_p5, %p10668_p6 }
0x17b5   : > { %9747 = dma.done.wait (!%p9064_p0), %s7630_s14, 128  }
0x17b6   : > { %9749 = vsyncadd (!%p9064_p0), %s7630_s14, 4294967168  ;;  %s10669_s21 = sld [smem:[#allocation23_spill]]  ;;  %s10670_s18 = sld [smem:[#allocation20_spill]] }
0x17b7   : > { %s10671_s19 = sld [smem:[#allocation21_spill]]  ;;  %s10672_s20 = sld [smem:[#allocation24_spill]] }
0x17bc   : > { %p29_p9 = scmp.ge.s32.totalorder %s10669_s21, 4  }
0x17be   :  { %31 = sbr.rel (!%p29_p9) target bundleno = 13 (0xd), region = 152 }
0x17c5   :  { %7635 = vsyncpa [#allocation3], 1 }
0x17c6   :  { %7637 = vsyncpa [#allocation3 + $0x1], 1 }
0x17c7   :  { %7638 = vsyncpa [#allocation6], 1 }
0x17c8   :  { %7639 = vsyncpa [#allocation9], 1 }
0x17c9   :  { %7640 = vsyncpa [#allocation12], 1 }
0x17ca   :  { %7641 = vsyncpa [#allocation4], 1 }
0x17cb   :  { %7643 = vsyncpa [#allocation4 + $0x1], 1 }

</bundles_post_ra>
